<compile_context>
chip_gen: v7x
topology: tpu7x:2x2x1
jax: 0.10.0
libtpu: 0.0.40
codegen_flags: <defaults>
</compile_context>

<pallas_src>
import functools

import jax
import jax.numpy as jnp
from jax.experimental import pallas as pl
from jax.experimental.pallas import tpu as pltpu  # noqa: F401  (no scratch needed anymore)

INPUT_SIZE = 40        # n_mfcc=40 in extract_mfcc
HIDDEN = 256
NUM_CLASSES = 7        # len(emotions)
FC1 = 128
FC2 = 64
SUBLANE = 8
LANE = 128


def lstm_model_kernel(x_ref,          # (T*B, D)   bf16, time-major flattened
                      wih_ref,        # (D, 4H)    bf16  input->gates (i,f,g,o PyTorch order)
                      whh_ref,        # (H, 4H)    bf16  hidden->gates
                      bg_ref,         # (1, 4H)    f32   b_ih + b_hh
                      w1_ref, b1_ref,  # (H, 128) bf16, (1, 128) f32
                      w2_ref, b2_ref,  # (128, 64) bf16, (1, 64)  f32
                      w3_ref, b3_ref,  # (64, Cp) bf16, (1, Cp)   f32
                      out_ref,        # (B, Cp)    f32
                      *, seq_len, batch):
    H = whh_ref.shape[0]

    # ---- prologue: hoisted input projection for ALL timesteps in one matmul ----
    # (T*B, D) @ (D, 4H) -> (T*B, 4H) f32, plus bias broadcast (done once, not per step)
    xw = jnp.dot(x_ref[...], wih_ref[...],
                 preferred_element_type=jnp.float32) + bg_ref[...]

    def sigmoid(z):
        # one EUP tanh instead of exp + reciprocal chain
        return 0.5 * jnp.tanh(0.5 * z) + 0.5

    # h/c live in vregs across the (fully unrolled, static-T) recurrence.
    h = jnp.zeros((batch, H), jnp.float32)
    c = jnp.zeros((batch, H), jnp.float32)

    for t in range(seq_len):
        gates = xw[t * batch:(t + 1) * batch, :] + jnp.dot(
            h.astype(jnp.bfloat16), whh_ref[...],
            preferred_element_type=jnp.float32)                       # (B, 4H) f32
        i_g = sigmoid(gates[:, 0 * H:1 * H])
        f_g = sigmoid(gates[:, 1 * H:2 * H])
        g_g = jnp.tanh(gates[:, 2 * H:3 * H])
        o_g = sigmoid(gates[:, 3 * H:4 * H])
        c = f_g * c + i_g * g_g
        h = o_g * jnp.tanh(c)

    # ---- FC head: out[:, -1, :] == final hidden state; dropout is identity at eval ----
    z1 = jnp.maximum(jnp.dot(h.astype(jnp.bfloat16), w1_ref[...],
                             preferred_element_type=jnp.float32) + b1_ref[...], 0.0)
    z2 = jnp.maximum(jnp.dot(z1.astype(jnp.bfloat16), w2_ref[...],
                             preferred_element_type=jnp.float32) + b2_ref[...], 0.0)
    out_ref[...] = jnp.dot(z2.astype(jnp.bfloat16), w3_ref[...],
                           preferred_element_type=jnp.float32) + b3_ref[...]


def init_params(key, input_size=INPUT_SIZE, hidden=HIDDEN, num_classes=NUM_CLASSES):
    """Deterministic synthetic parameters (PyTorch-style shapes, then transposed), f32."""
    ks = jax.random.split(key, 10)

    def u(k, shape, fan_in):
        bound = 1.0 / jnp.sqrt(fan_in)
        return jax.random.uniform(k, shape, jnp.float32, -bound, bound)

    # nn.LSTM weights: weight_ih (4H, D), weight_hh (4H, H), biases (4H,)
    w_ih = u(ks[0], (4 * hidden, input_size), hidden)
    w_hh = u(ks[1], (4 * hidden, hidden), hidden)
    b_ih = u(ks[2], (4 * hidden,), hidden)
    b_hh = u(ks[3], (4 * hidden,), hidden)
    # nn.Linear weights: (out, in)
    w1 = u(ks[4], (FC1, hidden), hidden)
    b1 = u(ks[5], (FC1,), hidden)
    w2 = u(ks[6], (FC2, FC1), FC1)
    b2 = u(ks[7], (FC2,), FC1)
    w3 = u(ks[8], (num_classes, FC2), FC2)
    b3 = u(ks[9], (num_classes,), FC2)

    return dict(
        wih_t=w_ih.T,                                 # (D, 4H)
        whh_t=w_hh.T,                                 # (H, 4H)
        b_gates=(b_ih + b_hh).reshape(1, 4 * hidden),
        w1_t=w1.T, b1=b1.reshape(1, FC1),
        w2_t=w2.T, b2=b2.reshape(1, FC2),
        w3_t=w3.T, b3=b3.reshape(1, num_classes),
    )


def lstm_model_forward(x_btd, params):
    """x_btd: (B, T, D) float32 (PyTorch batch_first layout)."""
    B, T, D = x_btd.shape
    H = HIDDEN
    C = params["b3"].shape[-1]
    Bp = ((B + SUBLANE - 1) // SUBLANE) * SUBLANE     # pad batch to a sublane tile
    Cp = LANE                                         # pad classes to a full lane tile

    # Time-major, batch-padded, flattened to (T*Bp, D); bf16 MXU operand.
    x_tbd = jnp.transpose(x_btd, (1, 0, 2))
    if Bp != B:
        x_tbd = jnp.pad(x_tbd, ((0, 0), (0, Bp - B), (0, 0)))
    x_flat = x_tbd.reshape(T * Bp, D).astype(jnp.bfloat16)

    bf16 = lambda a: a.astype(jnp.bfloat16)
    w3p = jnp.pad(params["w3_t"], ((0, 0), (0, Cp - C)))
    b3p = jnp.pad(params["b3"], ((0, 0), (0, Cp - C)))

    full = lambda shape: pl.BlockSpec(shape, lambda: (0,) * len(shape))
    kernel = functools.partial(lstm_model_kernel, seq_len=T, batch=Bp)

    out_padded = pl.pallas_call(
        kernel,
        out_shape=jax.ShapeDtypeStruct((Bp, Cp), jnp.float32),
        in_specs=[
            full((T * Bp, D)),
            full((D, 4 * H)),
            full((H, 4 * H)),
            full((1, 4 * H)),
            full((H, FC1)), full((1, FC1)),
            full((FC1, FC2)), full((1, FC2)),
            full((FC2, Cp)), full((1, Cp)),
        ],
        out_specs=full((Bp, Cp)),
    )(x_flat,
      bf16(params["wih_t"]), bf16(params["whh_t"]), params["b_gates"],
      bf16(params["w1_t"]), params["b1"],
      bf16(params["w2_t"]), params["b2"],
      bf16(w3p), b3p)

    return out_padded[:B, :C]


def reference_forward(x_btd, params, mm_dtype=jnp.float32):
    """Pure-JAX reference matching PyTorch LSTM + MLP head (eval mode).

    mm_dtype controls the matmul-operand precision so we can also build a
    reference that mirrors the kernel's bf16-operand / f32-accumulate policy.
    """
    B, T, D = x_btd.shape
    H = HIDDEN
    cast = lambda a: a.astype(mm_dtype)
    h = jnp.zeros((B, H), jnp.float32)
    c = jnp.zeros((B, H), jnp.float32)
    for t in range(T):
        g = (jnp.dot(cast(x_btd[:, t, :]), cast(params["wih_t"]),
                     preferred_element_type=jnp.float32)
             + jnp.dot(cast(h), cast(params["whh_t"]),
                       preferred_element_type=jnp.float32)
             + params["b_gates"])
        i = jax.nn.sigmoid(g[:, 0 * H:1 * H])
        f = jax.nn.sigmoid(g[:, 1 * H:2 * H])
        gg = jnp.tanh(g[:, 2 * H:3 * H])
        o = jax.nn.sigmoid(g[:, 3 * H:4 * H])
        c = f * c + i * gg
        h = o * jnp.tanh(c)
    z1 = jnp.maximum(jnp.dot(cast(h), cast(params["w1_t"]),
                             preferred_element_type=jnp.float32) + params["b1"], 0.0)
    z2 = jnp.maximum(jnp.dot(cast(z1), cast(params["w2_t"]),
                             preferred_element_type=jnp.float32) + params["b2"], 0.0)
    return jnp.dot(cast(z2), cast(params["w3_t"]),
                   preferred_element_type=jnp.float32) + params["b3"]


if __name__ == "__main__":
    key = jax.random.PRNGKey(0)
    k_x, k_p = jax.random.split(key)

    B, T, D = 2, 8, INPUT_SIZE                        # small MFCC-like sequence batch
    x = jax.random.normal(k_x, (B, T, D), jnp.float32)
    params = init_params(k_p)

    out = jax.block_until_ready(lstm_model_forward(x, params))
    assert out.shape == (B, NUM_CLASSES), out.shape

    # tight check against a reference using the same bf16-operand policy ...
    ref_bf16 = reference_forward(x, params, mm_dtype=jnp.bfloat16)
    err_bf16 = float(jnp.max(jnp.abs(out - ref_bf16)))
    assert jnp.allclose(out, ref_bf16, atol=5e-3, rtol=5e-3), err_bf16
    # ... and a loose check against the full-f32 PyTorch-equivalent reference.
    ref_f32 = reference_forward(x, params, mm_dtype=jnp.float32)
    err_f32 = float(jnp.max(jnp.abs(out - ref_f32)))
    assert jnp.allclose(out, ref_f32, atol=5e-2, rtol=5e-2), err_f32

    print("KERNEL_OK")
</pallas_src>

<mosaic_0001>
module attributes {stable_mosaic.version = 11 : i64} {
  func.func @lstm_model_kernel(%arg0: memref<64x40xbf16, #tpu.memory_space<vmem>>, %arg1: memref<40x1024xbf16, #tpu.memory_space<vmem>>, %arg2: memref<256x1024xbf16, #tpu.memory_space<vmem>>, %arg3: memref<1x1024xf32, #tpu.memory_space<vmem>>, %arg4: memref<256x128xbf16, #tpu.memory_space<vmem>>, %arg5: memref<1x128xf32, #tpu.memory_space<vmem>>, %arg6: memref<128x64xbf16, #tpu.memory_space<vmem>>, %arg7: memref<1x64xf32, #tpu.memory_space<vmem>>, %arg8: memref<64x128xbf16, #tpu.memory_space<vmem>>, %arg9: memref<1x128xf32, #tpu.memory_space<vmem>>, %arg10: memref<8x128xf32, #tpu.memory_space<vmem>>) attributes {dimension_semantics = [], scalar_prefetch = 0 : i64, scratch_operands = 0 : i64, tpu.core_type = #tpu.core_type<tc>} {
    %c0 = arith.constant 0 : index
    %c0_0 = arith.constant 0 : index
    %0 = vector.load %arg0[%c0, %c0_0] : memref<64x40xbf16, #tpu.memory_space<vmem>>, vector<64x40xbf16>
    %c0_1 = arith.constant 0 : index
    %c0_2 = arith.constant 0 : index
    %1 = vector.load %arg1[%c0_1, %c0_2] : memref<40x1024xbf16, #tpu.memory_space<vmem>>, vector<40x1024xbf16>
    %cst = arith.constant dense<0.000000e+00> : vector<64x1024xf32>
    %2 = tpu.matmul %0, %1, %cst {dimension_numbers = #tpu.dot_dimension_numbers<[1], [0], [0], [1], [0, 0, 1, 1], [], []>} : vector<64x40xbf16>, vector<40x1024xbf16>, vector<64x1024xf32> -> vector<64x1024xf32>
    %c0_3 = arith.constant 0 : index
    %c0_4 = arith.constant 0 : index
    %3 = vector.load %arg3[%c0_3, %c0_4] : memref<1x1024xf32, #tpu.memory_space<vmem>>, vector<1x1024xf32>
    %4 = vector.broadcast %3 : vector<1x1024xf32> to vector<64x1024xf32>
    %5 = arith.addf %2, %4 : vector<64x1024xf32>
    %cst_5 = arith.constant 0.000000e+00 : f32
    %6 = vector.broadcast %cst_5 : f32 to vector<8x256xf32>
    %cst_6 = arith.constant 0.000000e+00 : f32
    %7 = vector.broadcast %cst_6 : f32 to vector<8x256xf32>
    %8 = vector.extract_strided_slice %5 {offsets = [0, 0], sizes = [8, 1024], strides = [1, 1]} : vector<64x1024xf32> to vector<8x1024xf32>
    %9 = arith.truncf %6 : vector<8x256xf32> to vector<8x256xbf16>
    %c0_7 = arith.constant 0 : index
    %c0_8 = arith.constant 0 : index
    %10 = vector.load %arg2[%c0_7, %c0_8] : memref<256x1024xbf16, #tpu.memory_space<vmem>>, vector<256x1024xbf16>
    %cst_9 = arith.constant dense<0.000000e+00> : vector<8x1024xf32>
    %11 = tpu.matmul %9, %10, %cst_9 {dimension_numbers = #tpu.dot_dimension_numbers<[1], [0], [0], [1], [0, 0, 1, 1], [], []>} : vector<8x256xbf16>, vector<256x1024xbf16>, vector<8x1024xf32> -> vector<8x1024xf32>
    %12 = arith.addf %8, %11 : vector<8x1024xf32>
    %13 = vector.extract_strided_slice %12 {offsets = [0, 0], sizes = [8, 256], strides = [1, 1]} : vector<8x1024xf32> to vector<8x256xf32>
    %cst_10 = arith.constant 5.000000e-01 : f32
    %14 = vector.broadcast %cst_10 : f32 to vector<8x256xf32>
    %15 = arith.mulf %14, %13 : vector<8x256xf32>
    %16 = math.tanh %15 : vector<8x256xf32>
    %cst_11 = arith.constant 5.000000e-01 : f32
    %17 = vector.broadcast %cst_11 : f32 to vector<8x256xf32>
    %18 = arith.mulf %17, %16 : vector<8x256xf32>
    %cst_12 = arith.constant 5.000000e-01 : f32
    %19 = vector.broadcast %cst_12 : f32 to vector<8x256xf32>
    %20 = arith.addf %18, %19 : vector<8x256xf32>
    %21 = vector.extract_strided_slice %12 {offsets = [0, 256], sizes = [8, 256], strides = [1, 1]} : vector<8x1024xf32> to vector<8x256xf32>
    %cst_13 = arith.constant 5.000000e-01 : f32
    %22 = vector.broadcast %cst_13 : f32 to vector<8x256xf32>
    %23 = arith.mulf %22, %21 : vector<8x256xf32>
    %24 = math.tanh %23 : vector<8x256xf32>
    %cst_14 = arith.constant 5.000000e-01 : f32
    %25 = vector.broadcast %cst_14 : f32 to vector<8x256xf32>
    %26 = arith.mulf %25, %24 : vector<8x256xf32>
    %cst_15 = arith.constant 5.000000e-01 : f32
    %27 = vector.broadcast %cst_15 : f32 to vector<8x256xf32>
    %28 = arith.addf %26, %27 : vector<8x256xf32>
    %29 = vector.extract_strided_slice %12 {offsets = [0, 512], sizes = [8, 256], strides = [1, 1]} : vector<8x1024xf32> to vector<8x256xf32>
    %30 = math.tanh %29 : vector<8x256xf32>
    %31 = vector.extract_strided_slice %12 {offsets = [0, 768], sizes = [8, 256], strides = [1, 1]} : vector<8x1024xf32> to vector<8x256xf32>
    %cst_16 = arith.constant 5.000000e-01 : f32
    %32 = vector.broadcast %cst_16 : f32 to vector<8x256xf32>
    %33 = arith.mulf %32, %31 : vector<8x256xf32>
    %34 = math.tanh %33 : vector<8x256xf32>
    %cst_17 = arith.constant 5.000000e-01 : f32
    %35 = vector.broadcast %cst_17 : f32 to vector<8x256xf32>
    %36 = arith.mulf %35, %34 : vector<8x256xf32>
    %cst_18 = arith.constant 5.000000e-01 : f32
    %37 = vector.broadcast %cst_18 : f32 to vector<8x256xf32>
    %38 = arith.addf %36, %37 : vector<8x256xf32>
    %39 = arith.mulf %28, %7 : vector<8x256xf32>
    %40 = arith.mulf %20, %30 : vector<8x256xf32>
    %41 = arith.addf %39, %40 : vector<8x256xf32>
    %42 = math.tanh %41 : vector<8x256xf32>
    %43 = arith.mulf %38, %42 : vector<8x256xf32>
    %44 = vector.extract_strided_slice %5 {offsets = [8, 0], sizes = [8, 1024], strides = [1, 1]} : vector<64x1024xf32> to vector<8x1024xf32>
    %45 = arith.truncf %43 : vector<8x256xf32> to vector<8x256xbf16>
    %c0_19 = arith.constant 0 : index
    %c0_20 = arith.constant 0 : index
    %46 = vector.load %arg2[%c0_19, %c0_20] : memref<256x1024xbf16, #tpu.memory_space<vmem>>, vector<256x1024xbf16>
    %cst_21 = arith.constant dense<0.000000e+00> : vector<8x1024xf32>
    %47 = tpu.matmul %45, %46, %cst_21 {dimension_numbers = #tpu.dot_dimension_numbers<[1], [0], [0], [1], [0, 0, 1, 1], [], []>} : vector<8x256xbf16>, vector<256x1024xbf16>, vector<8x1024xf32> -> vector<8x1024xf32>
    %48 = arith.addf %44, %47 : vector<8x1024xf32>
    %49 = vector.extract_strided_slice %48 {offsets = [0, 0], sizes = [8, 256], strides = [1, 1]} : vector<8x1024xf32> to vector<8x256xf32>
    %cst_22 = arith.constant 5.000000e-01 : f32
    %50 = vector.broadcast %cst_22 : f32 to vector<8x256xf32>
    %51 = arith.mulf %50, %49 : vector<8x256xf32>
    %52 = math.tanh %51 : vector<8x256xf32>
    %cst_23 = arith.constant 5.000000e-01 : f32
    %53 = vector.broadcast %cst_23 : f32 to vector<8x256xf32>
    %54 = arith.mulf %53, %52 : vector<8x256xf32>
    %cst_24 = arith.constant 5.000000e-01 : f32
    %55 = vector.broadcast %cst_24 : f32 to vector<8x256xf32>
    %56 = arith.addf %54, %55 : vector<8x256xf32>
    %57 = vector.extract_strided_slice %48 {offsets = [0, 256], sizes = [8, 256], strides = [1, 1]} : vector<8x1024xf32> to vector<8x256xf32>
    %cst_25 = arith.constant 5.000000e-01 : f32
    %58 = vector.broadcast %cst_25 : f32 to vector<8x256xf32>
    %59 = arith.mulf %58, %57 : vector<8x256xf32>
    %60 = math.tanh %59 : vector<8x256xf32>
    %cst_26 = arith.constant 5.000000e-01 : f32
    %61 = vector.broadcast %cst_26 : f32 to vector<8x256xf32>
    %62 = arith.mulf %61, %60 : vector<8x256xf32>
    %cst_27 = arith.constant 5.000000e-01 : f32
    %63 = vector.broadcast %cst_27 : f32 to vector<8x256xf32>
    %64 = arith.addf %62, %63 : vector<8x256xf32>
    %65 = vector.extract_strided_slice %48 {offsets = [0, 512], sizes = [8, 256], strides = [1, 1]} : vector<8x1024xf32> to vector<8x256xf32>
    %66 = math.tanh %65 : vector<8x256xf32>
    %67 = vector.extract_strided_slice %48 {offsets = [0, 768], sizes = [8, 256], strides = [1, 1]} : vector<8x1024xf32> to vector<8x256xf32>
    %cst_28 = arith.constant 5.000000e-01 : f32
    %68 = vector.broadcast %cst_28 : f32 to vector<8x256xf32>
    %69 = arith.mulf %68, %67 : vector<8x256xf32>
    %70 = math.tanh %69 : vector<8x256xf32>
    %cst_29 = arith.constant 5.000000e-01 : f32
    %71 = vector.broadcast %cst_29 : f32 to vector<8x256xf32>
    %72 = arith.mulf %71, %70 : vector<8x256xf32>
    %cst_30 = arith.constant 5.000000e-01 : f32
    %73 = vector.broadcast %cst_30 : f32 to vector<8x256xf32>
    %74 = arith.addf %72, %73 : vector<8x256xf32>
    %75 = arith.mulf %64, %41 : vector<8x256xf32>
    %76 = arith.mulf %56, %66 : vector<8x256xf32>
    %77 = arith.addf %75, %76 : vector<8x256xf32>
    %78 = math.tanh %77 : vector<8x256xf32>
    %79 = arith.mulf %74, %78 : vector<8x256xf32>
    %80 = vector.extract_strided_slice %5 {offsets = [16, 0], sizes = [8, 1024], strides = [1, 1]} : vector<64x1024xf32> to vector<8x1024xf32>
    %81 = arith.truncf %79 : vector<8x256xf32> to vector<8x256xbf16>
    %c0_31 = arith.constant 0 : index
    %c0_32 = arith.constant 0 : index
    %82 = vector.load %arg2[%c0_31, %c0_32] : memref<256x1024xbf16, #tpu.memory_space<vmem>>, vector<256x1024xbf16>
    %cst_33 = arith.constant dense<0.000000e+00> : vector<8x1024xf32>
    %83 = tpu.matmul %81, %82, %cst_33 {dimension_numbers = #tpu.dot_dimension_numbers<[1], [0], [0], [1], [0, 0, 1, 1], [], []>} : vector<8x256xbf16>, vector<256x1024xbf16>, vector<8x1024xf32> -> vector<8x1024xf32>
    %84 = arith.addf %80, %83 : vector<8x1024xf32>
    %85 = vector.extract_strided_slice %84 {offsets = [0, 0], sizes = [8, 256], strides = [1, 1]} : vector<8x1024xf32> to vector<8x256xf32>
    %cst_34 = arith.constant 5.000000e-01 : f32
    %86 = vector.broadcast %cst_34 : f32 to vector<8x256xf32>
    %87 = arith.mulf %86, %85 : vector<8x256xf32>
    %88 = math.tanh %87 : vector<8x256xf32>
    %cst_35 = arith.constant 5.000000e-01 : f32
    %89 = vector.broadcast %cst_35 : f32 to vector<8x256xf32>
    %90 = arith.mulf %89, %88 : vector<8x256xf32>
    %cst_36 = arith.constant 5.000000e-01 : f32
    %91 = vector.broadcast %cst_36 : f32 to vector<8x256xf32>
    %92 = arith.addf %90, %91 : vector<8x256xf32>
    %93 = vector.extract_strided_slice %84 {offsets = [0, 256], sizes = [8, 256], strides = [1, 1]} : vector<8x1024xf32> to vector<8x256xf32>
    %cst_37 = arith.constant 5.000000e-01 : f32
    %94 = vector.broadcast %cst_37 : f32 to vector<8x256xf32>
    %95 = arith.mulf %94, %93 : vector<8x256xf32>
    %96 = math.tanh %95 : vector<8x256xf32>
    %cst_38 = arith.constant 5.000000e-01 : f32
    %97 = vector.broadcast %cst_38 : f32 to vector<8x256xf32>
    %98 = arith.mulf %97, %96 : vector<8x256xf32>
    %cst_39 = arith.constant 5.000000e-01 : f32
    %99 = vector.broadcast %cst_39 : f32 to vector<8x256xf32>
    %100 = arith.addf %98, %99 : vector<8x256xf32>
    %101 = vector.extract_strided_slice %84 {offsets = [0, 512], sizes = [8, 256], strides = [1, 1]} : vector<8x1024xf32> to vector<8x256xf32>
    %102 = math.tanh %101 : vector<8x256xf32>
    %103 = vector.extract_strided_slice %84 {offsets = [0, 768], sizes = [8, 256], strides = [1, 1]} : vector<8x1024xf32> to vector<8x256xf32>
    %cst_40 = arith.constant 5.000000e-01 : f32
    %104 = vector.broadcast %cst_40 : f32 to vector<8x256xf32>
    %105 = arith.mulf %104, %103 : vector<8x256xf32>
    %106 = math.tanh %105 : vector<8x256xf32>
    %cst_41 = arith.constant 5.000000e-01 : f32
    %107 = vector.broadcast %cst_41 : f32 to vector<8x256xf32>
    %108 = arith.mulf %107, %106 : vector<8x256xf32>
    %cst_42 = arith.constant 5.000000e-01 : f32
    %109 = vector.broadcast %cst_42 : f32 to vector<8x256xf32>
    %110 = arith.addf %108, %109 : vector<8x256xf32>
    %111 = arith.mulf %100, %77 : vector<8x256xf32>
    %112 = arith.mulf %92, %102 : vector<8x256xf32>
    %113 = arith.addf %111, %112 : vector<8x256xf32>
    %114 = math.tanh %113 : vector<8x256xf32>
    %115 = arith.mulf %110, %114 : vector<8x256xf32>
    %116 = vector.extract_strided_slice %5 {offsets = [24, 0], sizes = [8, 1024], strides = [1, 1]} : vector<64x1024xf32> to vector<8x1024xf32>
    %117 = arith.truncf %115 : vector<8x256xf32> to vector<8x256xbf16>
    %c0_43 = arith.constant 0 : index
    %c0_44 = arith.constant 0 : index
    %118 = vector.load %arg2[%c0_43, %c0_44] : memref<256x1024xbf16, #tpu.memory_space<vmem>>, vector<256x1024xbf16>
    %cst_45 = arith.constant dense<0.000000e+00> : vector<8x1024xf32>
    %119 = tpu.matmul %117, %118, %cst_45 {dimension_numbers = #tpu.dot_dimension_numbers<[1], [0], [0], [1], [0, 0, 1, 1], [], []>} : vector<8x256xbf16>, vector<256x1024xbf16>, vector<8x1024xf32> -> vector<8x1024xf32>
    %120 = arith.addf %116, %119 : vector<8x1024xf32>
    %121 = vector.extract_strided_slice %120 {offsets = [0, 0], sizes = [8, 256], strides = [1, 1]} : vector<8x1024xf32> to vector<8x256xf32>
    %cst_46 = arith.constant 5.000000e-01 : f32
    %122 = vector.broadcast %cst_46 : f32 to vector<8x256xf32>
    %123 = arith.mulf %122, %121 : vector<8x256xf32>
    %124 = math.tanh %123 : vector<8x256xf32>
    %cst_47 = arith.constant 5.000000e-01 : f32
    %125 = vector.broadcast %cst_47 : f32 to vector<8x256xf32>
    %126 = arith.mulf %125, %124 : vector<8x256xf32>
    %cst_48 = arith.constant 5.000000e-01 : f32
    %127 = vector.broadcast %cst_48 : f32 to vector<8x256xf32>
    %128 = arith.addf %126, %127 : vector<8x256xf32>
    %129 = vector.extract_strided_slice %120 {offsets = [0, 256], sizes = [8, 256], strides = [1, 1]} : vector<8x1024xf32> to vector<8x256xf32>
    %cst_49 = arith.constant 5.000000e-01 : f32
    %130 = vector.broadcast %cst_49 : f32 to vector<8x256xf32>
    %131 = arith.mulf %130, %129 : vector<8x256xf32>
    %132 = math.tanh %131 : vector<8x256xf32>
    %cst_50 = arith.constant 5.000000e-01 : f32
    %133 = vector.broadcast %cst_50 : f32 to vector<8x256xf32>
    %134 = arith.mulf %133, %132 : vector<8x256xf32>
    %cst_51 = arith.constant 5.000000e-01 : f32
    %135 = vector.broadcast %cst_51 : f32 to vector<8x256xf32>
    %136 = arith.addf %134, %135 : vector<8x256xf32>
    %137 = vector.extract_strided_slice %120 {offsets = [0, 512], sizes = [8, 256], strides = [1, 1]} : vector<8x1024xf32> to vector<8x256xf32>
    %138 = math.tanh %137 : vector<8x256xf32>
    %139 = vector.extract_strided_slice %120 {offsets = [0, 768], sizes = [8, 256], strides = [1, 1]} : vector<8x1024xf32> to vector<8x256xf32>
    %cst_52 = arith.constant 5.000000e-01 : f32
    %140 = vector.broadcast %cst_52 : f32 to vector<8x256xf32>
    %141 = arith.mulf %140, %139 : vector<8x256xf32>
    %142 = math.tanh %141 : vector<8x256xf32>
    %cst_53 = arith.constant 5.000000e-01 : f32
    %143 = vector.broadcast %cst_53 : f32 to vector<8x256xf32>
    %144 = arith.mulf %143, %142 : vector<8x256xf32>
    %cst_54 = arith.constant 5.000000e-01 : f32
    %145 = vector.broadcast %cst_54 : f32 to vector<8x256xf32>
    %146 = arith.addf %144, %145 : vector<8x256xf32>
    %147 = arith.mulf %136, %113 : vector<8x256xf32>
    %148 = arith.mulf %128, %138 : vector<8x256xf32>
    %149 = arith.addf %147, %148 : vector<8x256xf32>
    %150 = math.tanh %149 : vector<8x256xf32>
    %151 = arith.mulf %146, %150 : vector<8x256xf32>
    %152 = vector.extract_strided_slice %5 {offsets = [32, 0], sizes = [8, 1024], strides = [1, 1]} : vector<64x1024xf32> to vector<8x1024xf32>
    %153 = arith.truncf %151 : vector<8x256xf32> to vector<8x256xbf16>
    %c0_55 = arith.constant 0 : index
    %c0_56 = arith.constant 0 : index
    %154 = vector.load %arg2[%c0_55, %c0_56] : memref<256x1024xbf16, #tpu.memory_space<vmem>>, vector<256x1024xbf16>
    %cst_57 = arith.constant dense<0.000000e+00> : vector<8x1024xf32>
    %155 = tpu.matmul %153, %154, %cst_57 {dimension_numbers = #tpu.dot_dimension_numbers<[1], [0], [0], [1], [0, 0, 1, 1], [], []>} : vector<8x256xbf16>, vector<256x1024xbf16>, vector<8x1024xf32> -> vector<8x1024xf32>
    %156 = arith.addf %152, %155 : vector<8x1024xf32>
    %157 = vector.extract_strided_slice %156 {offsets = [0, 0], sizes = [8, 256], strides = [1, 1]} : vector<8x1024xf32> to vector<8x256xf32>
    %cst_58 = arith.constant 5.000000e-01 : f32
    %158 = vector.broadcast %cst_58 : f32 to vector<8x256xf32>
    %159 = arith.mulf %158, %157 : vector<8x256xf32>
    %160 = math.tanh %159 : vector<8x256xf32>
    %cst_59 = arith.constant 5.000000e-01 : f32
    %161 = vector.broadcast %cst_59 : f32 to vector<8x256xf32>
    %162 = arith.mulf %161, %160 : vector<8x256xf32>
    %cst_60 = arith.constant 5.000000e-01 : f32
    %163 = vector.broadcast %cst_60 : f32 to vector<8x256xf32>
    %164 = arith.addf %162, %163 : vector<8x256xf32>
    %165 = vector.extract_strided_slice %156 {offsets = [0, 256], sizes = [8, 256], strides = [1, 1]} : vector<8x1024xf32> to vector<8x256xf32>
    %cst_61 = arith.constant 5.000000e-01 : f32
    %166 = vector.broadcast %cst_61 : f32 to vector<8x256xf32>
    %167 = arith.mulf %166, %165 : vector<8x256xf32>
    %168 = math.tanh %167 : vector<8x256xf32>
    %cst_62 = arith.constant 5.000000e-01 : f32
    %169 = vector.broadcast %cst_62 : f32 to vector<8x256xf32>
    %170 = arith.mulf %169, %168 : vector<8x256xf32>
    %cst_63 = arith.constant 5.000000e-01 : f32
    %171 = vector.broadcast %cst_63 : f32 to vector<8x256xf32>
    %172 = arith.addf %170, %171 : vector<8x256xf32>
    %173 = vector.extract_strided_slice %156 {offsets = [0, 512], sizes = [8, 256], strides = [1, 1]} : vector<8x1024xf32> to vector<8x256xf32>
    %174 = math.tanh %173 : vector<8x256xf32>
    %175 = vector.extract_strided_slice %156 {offsets = [0, 768], sizes = [8, 256], strides = [1, 1]} : vector<8x1024xf32> to vector<8x256xf32>
    %cst_64 = arith.constant 5.000000e-01 : f32
    %176 = vector.broadcast %cst_64 : f32 to vector<8x256xf32>
    %177 = arith.mulf %176, %175 : vector<8x256xf32>
    %178 = math.tanh %177 : vector<8x256xf32>
    %cst_65 = arith.constant 5.000000e-01 : f32
    %179 = vector.broadcast %cst_65 : f32 to vector<8x256xf32>
    %180 = arith.mulf %179, %178 : vector<8x256xf32>
    %cst_66 = arith.constant 5.000000e-01 : f32
    %181 = vector.broadcast %cst_66 : f32 to vector<8x256xf32>
    %182 = arith.addf %180, %181 : vector<8x256xf32>
    %183 = arith.mulf %172, %149 : vector<8x256xf32>
    %184 = arith.mulf %164, %174 : vector<8x256xf32>
    %185 = arith.addf %183, %184 : vector<8x256xf32>
    %186 = math.tanh %185 : vector<8x256xf32>
    %187 = arith.mulf %182, %186 : vector<8x256xf32>
    %188 = vector.extract_strided_slice %5 {offsets = [40, 0], sizes = [8, 1024], strides = [1, 1]} : vector<64x1024xf32> to vector<8x1024xf32>
    %189 = arith.truncf %187 : vector<8x256xf32> to vector<8x256xbf16>
    %c0_67 = arith.constant 0 : index
    %c0_68 = arith.constant 0 : index
    %190 = vector.load %arg2[%c0_67, %c0_68] : memref<256x1024xbf16, #tpu.memory_space<vmem>>, vector<256x1024xbf16>
    %cst_69 = arith.constant dense<0.000000e+00> : vector<8x1024xf32>
    %191 = tpu.matmul %189, %190, %cst_69 {dimension_numbers = #tpu.dot_dimension_numbers<[1], [0], [0], [1], [0, 0, 1, 1], [], []>} : vector<8x256xbf16>, vector<256x1024xbf16>, vector<8x1024xf32> -> vector<8x1024xf32>
    %192 = arith.addf %188, %191 : vector<8x1024xf32>
    %193 = vector.extract_strided_slice %192 {offsets = [0, 0], sizes = [8, 256], strides = [1, 1]} : vector<8x1024xf32> to vector<8x256xf32>
    %cst_70 = arith.constant 5.000000e-01 : f32
    %194 = vector.broadcast %cst_70 : f32 to vector<8x256xf32>
    %195 = arith.mulf %194, %193 : vector<8x256xf32>
    %196 = math.tanh %195 : vector<8x256xf32>
    %cst_71 = arith.constant 5.000000e-01 : f32
    %197 = vector.broadcast %cst_71 : f32 to vector<8x256xf32>
    %198 = arith.mulf %197, %196 : vector<8x256xf32>
    %cst_72 = arith.constant 5.000000e-01 : f32
    %199 = vector.broadcast %cst_72 : f32 to vector<8x256xf32>
    %200 = arith.addf %198, %199 : vector<8x256xf32>
    %201 = vector.extract_strided_slice %192 {offsets = [0, 256], sizes = [8, 256], strides = [1, 1]} : vector<8x1024xf32> to vector<8x256xf32>
    %cst_73 = arith.constant 5.000000e-01 : f32
    %202 = vector.broadcast %cst_73 : f32 to vector<8x256xf32>
    %203 = arith.mulf %202, %201 : vector<8x256xf32>
    %204 = math.tanh %203 : vector<8x256xf32>
    %cst_74 = arith.constant 5.000000e-01 : f32
    %205 = vector.broadcast %cst_74 : f32 to vector<8x256xf32>
    %206 = arith.mulf %205, %204 : vector<8x256xf32>
    %cst_75 = arith.constant 5.000000e-01 : f32
    %207 = vector.broadcast %cst_75 : f32 to vector<8x256xf32>
    %208 = arith.addf %206, %207 : vector<8x256xf32>
    %209 = vector.extract_strided_slice %192 {offsets = [0, 512], sizes = [8, 256], strides = [1, 1]} : vector<8x1024xf32> to vector<8x256xf32>
    %210 = math.tanh %209 : vector<8x256xf32>
    %211 = vector.extract_strided_slice %192 {offsets = [0, 768], sizes = [8, 256], strides = [1, 1]} : vector<8x1024xf32> to vector<8x256xf32>
    %cst_76 = arith.constant 5.000000e-01 : f32
    %212 = vector.broadcast %cst_76 : f32 to vector<8x256xf32>
    %213 = arith.mulf %212, %211 : vector<8x256xf32>
    %214 = math.tanh %213 : vector<8x256xf32>
    %cst_77 = arith.constant 5.000000e-01 : f32
    %215 = vector.broadcast %cst_77 : f32 to vector<8x256xf32>
    %216 = arith.mulf %215, %214 : vector<8x256xf32>
    %cst_78 = arith.constant 5.000000e-01 : f32
    %217 = vector.broadcast %cst_78 : f32 to vector<8x256xf32>
    %218 = arith.addf %216, %217 : vector<8x256xf32>
    %219 = arith.mulf %208, %185 : vector<8x256xf32>
    %220 = arith.mulf %200, %210 : vector<8x256xf32>
    %221 = arith.addf %219, %220 : vector<8x256xf32>
    %222 = math.tanh %221 : vector<8x256xf32>
    %223 = arith.mulf %218, %222 : vector<8x256xf32>
    %224 = vector.extract_strided_slice %5 {offsets = [48, 0], sizes = [8, 1024], strides = [1, 1]} : vector<64x1024xf32> to vector<8x1024xf32>
    %225 = arith.truncf %223 : vector<8x256xf32> to vector<8x256xbf16>
    %c0_79 = arith.constant 0 : index
    %c0_80 = arith.constant 0 : index
    %226 = vector.load %arg2[%c0_79, %c0_80] : memref<256x1024xbf16, #tpu.memory_space<vmem>>, vector<256x1024xbf16>
    %cst_81 = arith.constant dense<0.000000e+00> : vector<8x1024xf32>
    %227 = tpu.matmul %225, %226, %cst_81 {dimension_numbers = #tpu.dot_dimension_numbers<[1], [0], [0], [1], [0, 0, 1, 1], [], []>} : vector<8x256xbf16>, vector<256x1024xbf16>, vector<8x1024xf32> -> vector<8x1024xf32>
    %228 = arith.addf %224, %227 : vector<8x1024xf32>
    %229 = vector.extract_strided_slice %228 {offsets = [0, 0], sizes = [8, 256], strides = [1, 1]} : vector<8x1024xf32> to vector<8x256xf32>
    %cst_82 = arith.constant 5.000000e-01 : f32
    %230 = vector.broadcast %cst_82 : f32 to vector<8x256xf32>
    %231 = arith.mulf %230, %229 : vector<8x256xf32>
    %232 = math.tanh %231 : vector<8x256xf32>
    %cst_83 = arith.constant 5.000000e-01 : f32
    %233 = vector.broadcast %cst_83 : f32 to vector<8x256xf32>
    %234 = arith.mulf %233, %232 : vector<8x256xf32>
    %cst_84 = arith.constant 5.000000e-01 : f32
    %235 = vector.broadcast %cst_84 : f32 to vector<8x256xf32>
    %236 = arith.addf %234, %235 : vector<8x256xf32>
    %237 = vector.extract_strided_slice %228 {offsets = [0, 256], sizes = [8, 256], strides = [1, 1]} : vector<8x1024xf32> to vector<8x256xf32>
    %cst_85 = arith.constant 5.000000e-01 : f32
    %238 = vector.broadcast %cst_85 : f32 to vector<8x256xf32>
    %239 = arith.mulf %238, %237 : vector<8x256xf32>
    %240 = math.tanh %239 : vector<8x256xf32>
    %cst_86 = arith.constant 5.000000e-01 : f32
    %241 = vector.broadcast %cst_86 : f32 to vector<8x256xf32>
    %242 = arith.mulf %241, %240 : vector<8x256xf32>
    %cst_87 = arith.constant 5.000000e-01 : f32
    %243 = vector.broadcast %cst_87 : f32 to vector<8x256xf32>
    %244 = arith.addf %242, %243 : vector<8x256xf32>
    %245 = vector.extract_strided_slice %228 {offsets = [0, 512], sizes = [8, 256], strides = [1, 1]} : vector<8x1024xf32> to vector<8x256xf32>
    %246 = math.tanh %245 : vector<8x256xf32>
    %247 = vector.extract_strided_slice %228 {offsets = [0, 768], sizes = [8, 256], strides = [1, 1]} : vector<8x1024xf32> to vector<8x256xf32>
    %cst_88 = arith.constant 5.000000e-01 : f32
    %248 = vector.broadcast %cst_88 : f32 to vector<8x256xf32>
    %249 = arith.mulf %248, %247 : vector<8x256xf32>
    %250 = math.tanh %249 : vector<8x256xf32>
    %cst_89 = arith.constant 5.000000e-01 : f32
    %251 = vector.broadcast %cst_89 : f32 to vector<8x256xf32>
    %252 = arith.mulf %251, %250 : vector<8x256xf32>
    %cst_90 = arith.constant 5.000000e-01 : f32
    %253 = vector.broadcast %cst_90 : f32 to vector<8x256xf32>
    %254 = arith.addf %252, %253 : vector<8x256xf32>
    %255 = arith.mulf %244, %221 : vector<8x256xf32>
    %256 = arith.mulf %236, %246 : vector<8x256xf32>
    %257 = arith.addf %255, %256 : vector<8x256xf32>
    %258 = math.tanh %257 : vector<8x256xf32>
    %259 = arith.mulf %254, %258 : vector<8x256xf32>
    %260 = vector.extract_strided_slice %5 {offsets = [56, 0], sizes = [8, 1024], strides = [1, 1]} : vector<64x1024xf32> to vector<8x1024xf32>
    %261 = arith.truncf %259 : vector<8x256xf32> to vector<8x256xbf16>
    %c0_91 = arith.constant 0 : index
    %c0_92 = arith.constant 0 : index
    %262 = vector.load %arg2[%c0_91, %c0_92] : memref<256x1024xbf16, #tpu.memory_space<vmem>>, vector<256x1024xbf16>
    %cst_93 = arith.constant dense<0.000000e+00> : vector<8x1024xf32>
    %263 = tpu.matmul %261, %262, %cst_93 {dimension_numbers = #tpu.dot_dimension_numbers<[1], [0], [0], [1], [0, 0, 1, 1], [], []>} : vector<8x256xbf16>, vector<256x1024xbf16>, vector<8x1024xf32> -> vector<8x1024xf32>
    %264 = arith.addf %260, %263 : vector<8x1024xf32>
    %265 = vector.extract_strided_slice %264 {offsets = [0, 0], sizes = [8, 256], strides = [1, 1]} : vector<8x1024xf32> to vector<8x256xf32>
    %cst_94 = arith.constant 5.000000e-01 : f32
    %266 = vector.broadcast %cst_94 : f32 to vector<8x256xf32>
    %267 = arith.mulf %266, %265 : vector<8x256xf32>
    %268 = math.tanh %267 : vector<8x256xf32>
    %cst_95 = arith.constant 5.000000e-01 : f32
    %269 = vector.broadcast %cst_95 : f32 to vector<8x256xf32>
    %270 = arith.mulf %269, %268 : vector<8x256xf32>
    %cst_96 = arith.constant 5.000000e-01 : f32
    %271 = vector.broadcast %cst_96 : f32 to vector<8x256xf32>
    %272 = arith.addf %270, %271 : vector<8x256xf32>
    %273 = vector.extract_strided_slice %264 {offsets = [0, 256], sizes = [8, 256], strides = [1, 1]} : vector<8x1024xf32> to vector<8x256xf32>
    %cst_97 = arith.constant 5.000000e-01 : f32
    %274 = vector.broadcast %cst_97 : f32 to vector<8x256xf32>
    %275 = arith.mulf %274, %273 : vector<8x256xf32>
    %276 = math.tanh %275 : vector<8x256xf32>
    %cst_98 = arith.constant 5.000000e-01 : f32
    %277 = vector.broadcast %cst_98 : f32 to vector<8x256xf32>
    %278 = arith.mulf %277, %276 : vector<8x256xf32>
    %cst_99 = arith.constant 5.000000e-01 : f32
    %279 = vector.broadcast %cst_99 : f32 to vector<8x256xf32>
    %280 = arith.addf %278, %279 : vector<8x256xf32>
    %281 = vector.extract_strided_slice %264 {offsets = [0, 512], sizes = [8, 256], strides = [1, 1]} : vector<8x1024xf32> to vector<8x256xf32>
    %282 = math.tanh %281 : vector<8x256xf32>
    %283 = vector.extract_strided_slice %264 {offsets = [0, 768], sizes = [8, 256], strides = [1, 1]} : vector<8x1024xf32> to vector<8x256xf32>
    %cst_100 = arith.constant 5.000000e-01 : f32
    %284 = vector.broadcast %cst_100 : f32 to vector<8x256xf32>
    %285 = arith.mulf %284, %283 : vector<8x256xf32>
    %286 = math.tanh %285 : vector<8x256xf32>
    %cst_101 = arith.constant 5.000000e-01 : f32
    %287 = vector.broadcast %cst_101 : f32 to vector<8x256xf32>
    %288 = arith.mulf %287, %286 : vector<8x256xf32>
    %cst_102 = arith.constant 5.000000e-01 : f32
    %289 = vector.broadcast %cst_102 : f32 to vector<8x256xf32>
    %290 = arith.addf %288, %289 : vector<8x256xf32>
    %291 = arith.mulf %280, %257 : vector<8x256xf32>
    %292 = arith.mulf %272, %282 : vector<8x256xf32>
    %293 = arith.addf %291, %292 : vector<8x256xf32>
    %294 = math.tanh %293 : vector<8x256xf32>
    %295 = arith.mulf %290, %294 : vector<8x256xf32>
    %296 = arith.truncf %295 : vector<8x256xf32> to vector<8x256xbf16>
    %c0_103 = arith.constant 0 : index
    %c0_104 = arith.constant 0 : index
    %297 = vector.load %arg4[%c0_103, %c0_104] : memref<256x128xbf16, #tpu.memory_space<vmem>>, vector<256x128xbf16>
    %cst_105 = arith.constant dense<0.000000e+00> : vector<8x128xf32>
    %298 = tpu.matmul %296, %297, %cst_105 {dimension_numbers = #tpu.dot_dimension_numbers<[1], [0], [0], [1], [0, 0, 1, 1], [], []>} : vector<8x256xbf16>, vector<256x128xbf16>, vector<8x128xf32> -> vector<8x128xf32>
    %c0_106 = arith.constant 0 : index
    %c0_107 = arith.constant 0 : index
    %299 = vector.load %arg5[%c0_106, %c0_107] : memref<1x128xf32, #tpu.memory_space<vmem>>, vector<1x128xf32>
    %300 = vector.broadcast %299 : vector<1x128xf32> to vector<8x128xf32>
    %301 = arith.addf %298, %300 : vector<8x128xf32>
    %cst_108 = arith.constant 0.000000e+00 : f32
    %302 = vector.broadcast %cst_108 : f32 to vector<8x128xf32>
    %303 = arith.maximumf %301, %302 : vector<8x128xf32>
    %304 = arith.truncf %303 : vector<8x128xf32> to vector<8x128xbf16>
    %c0_109 = arith.constant 0 : index
    %c0_110 = arith.constant 0 : index
    %305 = vector.load %arg6[%c0_109, %c0_110] : memref<128x64xbf16, #tpu.memory_space<vmem>>, vector<128x64xbf16>
    %cst_111 = arith.constant dense<0.000000e+00> : vector<8x64xf32>
    %306 = tpu.matmul %304, %305, %cst_111 {dimension_numbers = #tpu.dot_dimension_numbers<[1], [0], [0], [1], [0, 0, 1, 1], [], []>} : vector<8x128xbf16>, vector<128x64xbf16>, vector<8x64xf32> -> vector<8x64xf32>
    %c0_112 = arith.constant 0 : index
    %c0_113 = arith.constant 0 : index
    %307 = vector.load %arg7[%c0_112, %c0_113] : memref<1x64xf32, #tpu.memory_space<vmem>>, vector<1x64xf32>
    %308 = vector.broadcast %307 : vector<1x64xf32> to vector<8x64xf32>
    %309 = arith.addf %306, %308 : vector<8x64xf32>
    %cst_114 = arith.constant 0.000000e+00 : f32
    %310 = vector.broadcast %cst_114 : f32 to vector<8x64xf32>
    %311 = arith.maximumf %309, %310 : vector<8x64xf32>
    %312 = arith.truncf %311 : vector<8x64xf32> to vector<8x64xbf16>
    %c0_115 = arith.constant 0 : index
    %c0_116 = arith.constant 0 : index
    %313 = vector.load %arg8[%c0_115, %c0_116] : memref<64x128xbf16, #tpu.memory_space<vmem>>, vector<64x128xbf16>
    %cst_117 = arith.constant dense<0.000000e+00> : vector<8x128xf32>
    %314 = tpu.matmul %312, %313, %cst_117 {dimension_numbers = #tpu.dot_dimension_numbers<[1], [0], [0], [1], [0, 0, 1, 1], [], []>} : vector<8x64xbf16>, vector<64x128xbf16>, vector<8x128xf32> -> vector<8x128xf32>
    %c0_118 = arith.constant 0 : index
    %c0_119 = arith.constant 0 : index
    %315 = vector.load %arg9[%c0_118, %c0_119] : memref<1x128xf32, #tpu.memory_space<vmem>>, vector<1x128xf32>
    %316 = vector.broadcast %315 : vector<1x128xf32> to vector<8x128xf32>
    %317 = arith.addf %314, %316 : vector<8x128xf32>
    %c0_120 = arith.constant 0 : index
    %c0_121 = arith.constant 0 : index
    %318 = vector.load %arg10[%c0_120, %c0_121] : memref<8x128xf32, #tpu.memory_space<vmem>>, vector<8x128xf32>
    tpu.vector_store %arg10[%c0_120, %c0_121], %317 {strides = array<i32>} : memref<8x128xf32, #tpu.memory_space<vmem>>, vector<8x128xf32>,
    return
  }
}

</mosaic_0001>

<bundles_post_ra>
// kernel: tpu_custom_call.1
= control target key start
LH: loop header
LB: loop body
LE: loop exit
PB: predicated region body
PF: predicated region fallthrough
CT: control target
= control target key end

     0   :  { %15 = vsyncpa [#allocation3], 0  ;;  %s6045_s0 = inlined_call_operand.vmem [shape: bf16[64,40], index: 0, kind: input, shape index: {}]   ;;  %s6046_s1 = inlined_call_operand.hbm [shape: bf16[40,1024], index: 1, kind: input, shape index: {}]   ;;  %s6047_s2 = inlined_call_operand.hbm [shape: bf16[256,1024], index: 2, kind: input, shape index: {}]   ;;  %s6048_s3 = inlined_call_operand.hbm [shape: f32[1,1024], index: 3, kind: input, shape index: {}]   ;;  %s6049_s4 = inlined_call_operand.vmem [shape: bf16[256,128], index: 4, kind: input, shape index: {}]   ;;  %s6050_s5 = inlined_call_operand.vmem [shape: f32[1,128], index: 5, kind: input, shape index: {}]   ;;  %s6051_s6 = inlined_call_operand.vmem [shape: bf16[128,64], index: 6, kind: input, shape index: {}]   ;;  %s6052_s7 = inlined_call_operand.vmem [shape: f32[1,64], index: 7, kind: input, shape index: {}]   ;;  %s6053_s8 = inlined_call_operand.hbm [shape: bf16[64,128], index: 8, kind: input, shape index: {}]   ;;  %s6054_s9 = inlined_call_operand.vmem [shape: f32[1,128], index: 9, kind: input, shape index: {}]   ;;  %s6055_s10 = inlined_call_operand.hbm [shape: f32[8,128], index: 10, kind: output, shape index: {}]  }
   0x1   :  { %16 = vsyncpa [#allocation6], 0 }
   0x2   :  { %17 = vsyncpa [#allocation9], 0 }
   0x3   :  { %18 = vsyncpa [#allocation4], 0  ;;  %s4055_s13 = smov [#allocation5]   ;;  %s4056_s15 = smov [#allocation2]  }
   0x4   :  { %s38_s14 = sshll.u32 %s4055_s13, 4  ;;  %s26_s16 = sshll.u32 %s4056_s15, 4  ;;  %s39_s14 = int_to_ptr.vmem [resolvable:$true] %s38_s14  ;;  %s4122_s16 = int_to_ptr.vmem [resolvable:$true] %s26_s16 }
   0x5   :  { %s3937_s19 = scalar_lea.hbm %s6047_s2, 16384 }
   0x6   :  { %p3938_p0 = scmp.ne.s32.totalorder %s6047_s2, %s3937_s19  ;;  %p3941_p1 = scmp.lt.u32.totalorder %s3937_s19, %s6047_s2 }
   0x8   :  { %p3943_p2 = pnand %p3941_p1, %p3938_p0 }
   0xa   :  { %3946 = shalt.err (!%p3943_p2)
}
   0xb   :  { %s3947_s24 = scalar_lea.vmem %s39_s14, 16384  ;;  %p3952_p4 = scmp.lt.s32.totalorder %s39_s14, %s39_s14 }
   0xc   :  { %p3948_p3 = scmp.ne.s32.totalorder %s39_s14, %s3947_s24  ;;  %p3953_p5 = scmp.lt.s32.totalorder %s3947_s24, %s3947_s24 }
   0xe   :  { %p3954_p6 = por %p3953_p5, %p3952_p4 }
  0x10   :  { %p3955_p7 = pnand %p3954_p6, %p3948_p3 }
  0x12   :  { %3958 = shalt.err (!%p3955_p7)
}
  0x13   :  { %s4057_s25 = smov 512   ;;  %s4058_s26 = smov 32  }
  0x14   :  { %44 = dma.hbm_to_vmem [thread:$0]  %s6047_s2, 16384, %s39_s14, [#allocation6], %s4057_s25, %s4057_s25, %s4058_s26  }
  0x15   :  { %s3959_s11 = scalar_lea.hbm %s6046_s1, 2560 }
  0x16   :  { %p3960_p8 = scmp.ne.s32.totalorder %s6046_s1, %s3959_s11  ;;  %p3963_p9 = scmp.lt.u32.totalorder %s3959_s11, %s6046_s1 }
  0x18   :  { %p3965_p10 = pnand %p3963_p9, %p3960_p8 }
  0x1a   :  { %3968 = shalt.err (!%p3965_p10)
}
  0x1b   :  { %s3969_s18 = scalar_lea.vmem %s4122_s16, 2560  ;;  %p3974_p12 = scmp.lt.s32.totalorder %s4122_s16, %s4122_s16 }
  0x1c   :  { %p3970_p11 = scmp.ne.s32.totalorder %s4122_s16, %s3969_s18  ;;  %p3975_p13 = scmp.lt.s32.totalorder %s3969_s18, %s3969_s18 }
  0x1e   :  { %p3976_p0 = por %p3975_p13, %p3974_p12 }
  0x20   :  { %p3977_p1 = pnand %p3976_p0, %p3970_p11 }
  0x22   :  { %3980 = shalt.err (!%p3977_p1)
}
  0x23   :  { %32 = dma.hbm_to_vmem [thread:$0]  %s6046_s1, 2560, %s4122_s16, [#allocation3], %s4057_s25, %s4057_s25, %s4058_s26  }
  0x24   :  { %s4059_s19 = smov [#allocation7]   ;;  %s4060_s21 = smov [#allocation8]  }
  0x25   :  { %s51_s20 = sshll.u32 %s4059_s19, 4  ;;  %s68_s22 = sshll.u32 %s4060_s21, 4  ;;  %s52_s20 = int_to_ptr.vmem [resolvable:$true] %s51_s20  ;;  %s4153_s22 = int_to_ptr.vmem [resolvable:$true] %s68_s22 }
  0x26   :  { %s3981_s27 = scalar_lea.hbm %s6048_s3, 128 }
  0x27   :  { %p3982_p2 = scmp.ne.s32.totalorder %s6048_s3, %s3981_s27  ;;  %p3985_p3 = scmp.lt.u32.totalorder %s3981_s27, %s6048_s3 }
  0x29   :  { %p3987_p4 = pnand %p3985_p3, %p3982_p2 }
  0x2b   :  { %3990 = shalt.err (!%p3987_p4)
}
  0x2c   :  { %s3991_s1 = scalar_lea.vmem %s52_s20, 128  ;;  %p3996_p6 = scmp.lt.s32.totalorder %s52_s20, %s52_s20 }
  0x2d   :  { %p3992_p5 = scmp.ne.s32.totalorder %s52_s20, %s3991_s1  ;;  %p3997_p7 = scmp.lt.s32.totalorder %s3991_s1, %s3991_s1 }
  0x2f   :  { %p3998_p8 = por %p3997_p7, %p3996_p6 }
  0x31   :  { %p3999_p9 = pnand %p3998_p8, %p3992_p5 }
  0x33   :  { %4002 = shalt.err (!%p3999_p9)
}
  0x34   :  { %54 = dma.hbm_to_vmem [thread:$0]  %s6048_s3, 128, %s52_s20, [#allocation6]  }
  0x35   :  { %s4003_s13 = scalar_lea.hbm %s6053_s8, 512 }
  0x36   :  { %p4004_p10 = scmp.ne.s32.totalorder %s6053_s8, %s4003_s13  ;;  %p4007_p11 = scmp.lt.u32.totalorder %s4003_s13, %s6053_s8 }
  0x38   :  { %p4009_p12 = pnand %p4007_p11, %p4004_p10 }
  0x3a   :  { %4012 = shalt.err (!%p4009_p12)
}
  0x3b   :  { %s4013_s14 = scalar_lea.vmem %s4153_s22, 512  ;;  %p4018_p0 = scmp.lt.s32.totalorder %s4153_s22, %s4153_s22 }
  0x3c   :  { %p4014_p13 = scmp.ne.s32.totalorder %s4153_s22, %s4013_s14  ;;  %p4019_p1 = scmp.lt.s32.totalorder %s4013_s14, %s4013_s14 }
  0x3e   :  { %p4020_p2 = por %p4019_p1, %p4018_p0 }
  0x40   :  { %p4021_p3 = pnand %p4020_p2, %p4014_p13 }
  0x42   :  { %4024 = shalt.err (!%p4021_p3)
}
  0x43   :  { %s4061_s3 = smov 64   ;;  %s4062_s19 = smov 4  }
  0x44   :  { %74 = dma.hbm_to_vmem [thread:$0]  %s6053_s8, 512, %s4153_s22, [#allocation9], %s4061_s3, %s4061_s3, %s4062_s19  }
  0x45   :  { %4047 = dma.done.wait [#allocation3], 2560  }
  0x46   :  { %4048 = vsyncadd [#allocation3], 4294964736 }
  0x47   :  { %4049 = dma.done.wait [#allocation6], 16512  }
  0x48   :  { %4050 = vsyncadd [#allocation6], 4294950784 }
  0x49   :  { %4051 = dma.done.wait [#allocation9], 512  }
  0x4a   :  { %4052 = vsyncadd [#allocation9], 4294966784  ;;  %v6056_v0 = vmov 0   ;;  %v98_v1 = vld [vmem:[#allocation2] sm:$0xff]  ;;  %v99_v3 = vld [vmem:[#allocation2 + $0x8] sm:$0xff]  ;;  %vm293_vm0 = vcmask 1043456  }
  0x4b   :  { %350 = vmatprep.mubr.bf16.mxu0 %v6056_v0  ;;  %423 = vmatprep.mubr.bf16.mxu1 %v6056_v0  ;;  %v102_v2 = vld [vmem:[#allocation2 + $0x20] sm:$0xff]  ;;  %v103_v5 = vld [vmem:[#allocation2 + $0x28] sm:$0xff]  ;;  %v100_v23 = vld [vmem:[#allocation2 + $0x10] sm:$0xff]  ;;  %vm280_vm1 = vcmask 326656   ;;  %vm4065_vm2 = vmmov 0   ;;  %vm3387_vm3 = vcmask 523264  }
  0x4c   :  { %v3454_v4 = vcombine.high %v98_v1, %v102_v2  ;;  %v3453_v6 = vcombine.low %v98_v1, %v102_v2  ;;  %v106_v7 = vld [vmem:[#allocation2 + $0x40] sm:$0xff]  ;;  %v3456_v9 = vcombine.high %v99_v3, %v103_v5  ;;  %v3455_v10 = vcombine.low %v99_v3, %v103_v5  ;;  %v107_v12 = vld [vmem:[#allocation2 + $0x48] sm:$0xff]  ;;  %v104_v24 = vld [vmem:[#allocation2 + $0x30] sm:$0xff]  ;;  %s4066_s11 = smov [#allocation10]  }
  0x4d   :  { %v110_v8 = vld [vmem:[#allocation2 + $0x60] sm:$0xff]  ;;  %v111_v13 = vld [vmem:[#allocation2 + $0x68] sm:$0xff]  ;;  %v101_v25 = vld [vmem:[#allocation2 + $0x18] sm:$0xff]  ;;  %v3458_v28 = vcombine.high %v100_v23, %v104_v24  ;;  %v3457_v34 = vcombine.low %v100_v23, %v104_v24  ;;  %s3438_s1 = sshll.u32 %s4066_s11, 4  ;;  %s3439_s1 = int_to_ptr.vmem [resolvable:$true] %s3438_s1 }
  0x4e   :  { %v3462_v11 = vcombine.high %v106_v7, %v110_v8  ;;  %v114_v14 = vld [vmem:[#allocation2 + $0x80] sm:$0xff]  ;;  %318 = vmatprep.subr.bf16.mxu0 %v3454_v4  ;;  %v3464_v15 = vcombine.high %v107_v12, %v111_v13  ;;  %v115_v16 = vld [vmem:[#allocation2 + $0x88] sm:$0xff]  ;;  %391 = vmatprep.subr.bf16.mxu1 %v3456_v9  ;;  %v3461_v17 = vcombine.low %v106_v7, %v110_v8  ;;  %v105_v26 = vld [vmem:[#allocation2 + $0x38] sm:$0xff]  ;;  %p4030_p5 = scmp.lt.s32.totalorder %s3439_s1, %s3439_s1 }
  0x4f   :  { %319 = vmatpush1.bf16.msra.mxu0 %v3453_v6  ;;  %392 = vmatpush1.bf16.msra.mxu1 %v3455_v10  ;;  %v3463_v18 = vcombine.low %v107_v12, %v111_v13  ;;  %v3470_v19 = vcombine.high %v114_v14, %v114_v14  ;;  %v3469_v20 = vcombine.low %v114_v14, %v114_v14  ;;  %v4193_v31 = vld [vmem:[%s6045_s0] sm:$0xff]   ;;  %v108_v32 = vld [vmem:[#allocation2 + $0x50] sm:$0xff]  ;;  %v109_v35 = vld [vmem:[#allocation2 + $0x58] sm:$0xff] }
  0x50   :  { %320 = vmatprep.subr.bf16.mxu0 %v3462_v11  ;;  %393 = vmatprep.subr.bf16.mxu1 %v3464_v15  ;;  %v3472_v21 = vcombine.high %v115_v16, %v115_v16  ;;  %v3471_v22 = vcombine.low %v115_v16, %v115_v16  ;;  %v3460_v30 = vcombine.high %v101_v25, %v105_v26  ;;  %v112_v33 = vld [vmem:[#allocation2 + $0x70] sm:$0xff]  ;;  %v113_v36 = vld [vmem:[#allocation2 + $0x78] sm:$0xff]  ;;  %v4204_v46 = vld [vmem:[%s6045_s0 + $0x8] sm:$0xff]  }
  0x51   :  { %v295_v27 = vsel %vm293_vm0, %v3469_v20, 0  ;;  %v3459_v37 = vcombine.low %v101_v25, %v105_v26  ;;  %v3466_v38 = vcombine.high %v108_v32, %v112_v33  ;;  %v116_v39 = vld [vmem:[#allocation2 + $0x90] sm:$0xff]  ;;  %v3468_v40 = vcombine.high %v109_v35, %v113_v36  ;;  %v117_v42 = vld [vmem:[#allocation2 + $0x98] sm:$0xff]  ;;  %v610_v49 = vld [vmem:[#allocation5] sm:$0xff] }
  0x52   :  { %v301_v29 = vsel %vm293_vm0, %v3471_v22, 0  ;;  %v3465_v41 = vcombine.low %v108_v32, %v112_v33  ;;  %v3474_v43 = vcombine.high %v116_v39, %v116_v39  ;;  %v3467_v44 = vcombine.low %v109_v35, %v113_v36  ;;  %v614_v50 = vld [vmem:[#allocation5 + $0x20] sm:$0xff]  ;;  %v611_v51 = vld [vmem:[#allocation5 + $0x8] sm:$0xff]  ;;  %v4224_v57 = vld [vmem:[%s6045_s0 + $0x10] sm:$0xff]  }
  0x53   :  { %321 = vmatpush1.bf16.msra.mxu0 %v3461_v17  ;;  %394 = vmatpush1.bf16.msra.mxu1 %v3463_v18  ;;  %v3473_v45 = vcombine.low %v116_v39, %v116_v39  ;;  %v3476_v47 = vcombine.high %v117_v42, %v117_v42  ;;  %v3475_v48 = vcombine.low %v117_v42, %v117_v42  ;;  %v615_v52 = vld [vmem:[#allocation5 + $0x28] sm:$0xff]  ;;  %v4236_v58 = vld [vmem:[%s6045_s0 + $0x18] sm:$0xff]   ;;  %v618_v59 = vld [vmem:[#allocation5 + $0x40] sm:$0xff] }
  0x54   :  { %3477 = vmatprep.subr.msk.bf16.mxu0 %vm293_vm0, %v3470_v19  ;;  %3482 = vmatprep.subr.msk.bf16.mxu1 %vm293_vm0, %v3472_v21  ;;  %v4208_v54 = vcombine.high %v610_v49, %v614_v50  ;;  %v4214_v56 = vcombine.high %v611_v51, %v615_v52  ;;  %v622_v60 = vld [vmem:[#allocation5 + $0x60] sm:$0xff]  ;;  %v619_v61 = vld [vmem:[#allocation5 + $0x48] sm:$0xff]  ;;  %v4244_v63 = vcombine.low %v610_v49, %v614_v50 }
  0x55   :  { %v307_v53 = vsel %vm293_vm0, %v3473_v45, 0  ;;  %v313_v55 = vsel %vm293_vm0, %v3475_v48, 0  ;;  %v623_v62 = vld [vmem:[#allocation5 + $0x68] sm:$0xff]  ;;  %v4246_v1 = vcombine.low %v611_v51, %v615_v52  ;;  %v4248_v2 = vcombine.high %v618_v59, %v622_v60  ;;  %v626_v4 = vld [vmem:[#allocation5 + $0x80] sm:$0xff] }
  0x56   :  { %6323 = vst [vmem:[#allocation15_spill] sm:$0xff] %v4208_v54  ;;  %6324 = vst [vmem:[#allocation16_spill] sm:$0xff] %v4214_v56  ;;  %v4250_v3 = vcombine.high %v619_v61, %v623_v62  ;;  %v630_v5 = vld [vmem:[#allocation5 + $0xa0] sm:$0xff]  ;;  %v627_v6 = vld [vmem:[#allocation5 + $0x88] sm:$0xff]  ;;  %v4257_v8 = vcombine.low %v618_v59, %v622_v60  ;;  %v4261_v9 = vcombine.low %v619_v61, %v623_v62 }
  0x57   :  { %323 = vmatpush1.bf16.msra.mxu0 %v295_v27  ;;  %396 = vmatpush1.bf16.msra.mxu1 %v301_v29  ;;  %6325 = vst [vmem:[#allocation17_spill] sm:$0xff] %v4244_v63  ;;  %6326 = vst [vmem:[#allocation18_spill] sm:$0xff] %v4246_v1  ;;  %v631_v7 = vld [vmem:[#allocation5 + $0xa8] sm:$0xff]  ;;  %v4263_v10 = vcombine.high %v626_v4, %v630_v5  ;;  %v634_v12 = vld [vmem:[#allocation5 + $0xc0] sm:$0xff]  ;;  %v4271_v16 = vcombine.low %v626_v4, %v630_v5 }
  0x58   :  { %464 = vmatprep.subr.bf16.mxu0 %v3458_v28  ;;  %537 = vmatprep.subr.bf16.mxu1 %v3460_v30  ;;  %6327 = vst [vmem:[#allocation19_spill] sm:$0xff] %v4248_v2  ;;  %6328 = vst [vmem:[#allocation20_spill] sm:$0xff] %v4250_v3  ;;  %v4266_v11 = vcombine.high %v627_v6, %v631_v7  ;;  %v638_v13 = vld [vmem:[#allocation5 + $0xe0] sm:$0xff]  ;;  %v635_v14 = vld [vmem:[#allocation5 + $0xc8] sm:$0xff]  ;;  %v4275_v19 = vcombine.low %v627_v6, %v631_v7 }
  0x59   :  { %6329 = vst [vmem:[#allocation21_spill] sm:$0xff] %v4257_v8  ;;  %6330 = vst [vmem:[#allocation22_spill] sm:$0xff] %v4261_v9  ;;  %v639_v15 = vld [vmem:[#allocation5 + $0xe8] sm:$0xff]  ;;  %v642_v17 = vld [vmem:[#allocation5 + $0x100] sm:$0xff]  ;;  %v4277_v20 = vcombine.high %v634_v12, %v638_v13  ;;  %v4285_v24 = vcombine.low %v634_v12, %v638_v13 }
  0x5a   :  { %3478 = vmatmul.mubr.msk.bf16.vlgmr.msra.gmra.mrb[0].mxu0 %vm280_vm1, %v4193_v31  ;;  %3483 = vmatmul.mubr.msk.bf16.vlgmr.msra.gmra.mrb[0].mxu1 %vm280_vm1, %v4193_v31  ;;  %6331 = vst [vmem:[#allocation23_spill] sm:$0xff] %v4263_v10  ;;  %6332 = vst [vmem:[#allocation24_spill] sm:$0xff] %v4266_v11  ;;  %v646_v18 = vld [vmem:[#allocation5 + $0x120] sm:$0xff]  ;;  %v643_v21 = vld [vmem:[#allocation5 + $0x108] sm:$0xff]  ;;  %v4280_v23 = vcombine.high %v635_v14, %v639_v15  ;;  %v4291_v27 = vcombine.low %v635_v14, %v639_v15 }
  0x5b   :  { %465 = vmatpush1.bf16.msra.mxu0 %v3457_v34  ;;  %360 = vmatprep.mubr.bf16.mxu0 %v6056_v0  ;;  %6333 = vst [vmem:[#allocation25_spill] sm:$0xff] %v4271_v16  ;;  %6334 = vst [vmem:[#allocation26_spill] sm:$0xff] %v4275_v19  ;;  %v647_v22 = vld [vmem:[#allocation5 + $0x128] sm:$0xff]  ;;  %v650_v25 = vld [vmem:[#allocation5 + $0x140] sm:$0xff]  ;;  %v4293_v28 = vcombine.high %v642_v17, %v646_v18  ;;  %v4301_v32 = vcombine.low %v642_v17, %v646_v18 }
  0x5c   :  { %433 = vmatprep.mubr.bf16.mxu1 %v6056_v0  ;;  %538 = vmatpush1.bf16.msra.mxu1 %v3459_v37  ;;  %6335 = vst [vmem:[#allocation27_spill] sm:$0xff] %v4277_v20  ;;  %6336 = vst [vmem:[#allocation28_spill] sm:$0xff] %v4280_v23  ;;  %v654_v26 = vld [vmem:[#allocation5 + $0x160] sm:$0xff]  ;;  %v651_v29 = vld [vmem:[#allocation5 + $0x148] sm:$0xff]  ;;  %v4305_v35 = vcombine.low %v643_v21, %v647_v22 }
  0x5d   :  { %466 = vmatprep.subr.bf16.mxu0 %v3466_v38  ;;  %539 = vmatprep.subr.bf16.mxu1 %v3468_v40  ;;  %6337 = vst [vmem:[#allocation29_spill] sm:$0xff] %v4285_v24  ;;  %6338 = vst [vmem:[#allocation30_spill] sm:$0xff] %v4291_v27  ;;  %v655_v30 = vld [vmem:[#allocation5 + $0x168] sm:$0xff]  ;;  %v658_v33 = vld [vmem:[#allocation5 + $0x180] sm:$0xff]  ;;  %v4307_v36 = vcombine.high %v650_v25, %v654_v26  ;;  %v4315_v40 = vcombine.low %v650_v25, %v654_v26 }
  0x5e   :  { %6339 = vst [vmem:[#allocation31_spill] sm:$0xff] %v4293_v28  ;;  %6341 = vst [vmem:[#allocation33_spill] sm:$0xff] %v4301_v32  ;;  %v662_v34 = vld [vmem:[#allocation5 + $0x1a0] sm:$0xff]  ;;  %v659_v37 = vld [vmem:[#allocation5 + $0x188] sm:$0xff]  ;;  %v4310_v39 = vcombine.high %v651_v29, %v655_v30 }
  0x5f   :  { %467 = vmatpush1.bf16.msra.mxu0 %v3465_v41  ;;  %6342 = vst [vmem:[#allocation34_spill] sm:$0xff] %v4305_v35  ;;  %6343 = vst [vmem:[#allocation35_spill] sm:$0xff] %v4307_v36  ;;  %v663_v38 = vld [vmem:[#allocation5 + $0x1a8] sm:$0xff]  ;;  %v666_v41 = vld [vmem:[#allocation5 + $0x1c0] sm:$0xff]  ;;  %v4331_v48 = vcombine.low %v658_v33, %v662_v34 }
  0x60   :  { %3487 = vmatprep.subr.msk.bf16.mxu0 %vm293_vm0, %v3474_v43  ;;  %540 = vmatpush1.bf16.msra.mxu1 %v3467_v44  ;;  %6344 = vst [vmem:[#allocation36_spill] sm:$0xff] %v4310_v39  ;;  %6345 = vst [vmem:[#allocation37_spill] sm:$0xff] %v4315_v40  ;;  %v670_v42 = vld [vmem:[#allocation5 + $0x1e0] sm:$0xff]  ;;  %v4321_v43 = vcombine.low %v651_v29, %v655_v30  ;;  %v4323_v44 = vcombine.high %v658_v33, %v662_v34  ;;  %v667_v45 = vld [vmem:[#allocation5 + $0x1c8] sm:$0xff] }
  0x61   :  { %3492 = vmatprep.subr.msk.bf16.mxu1 %vm293_vm0, %v3476_v47  ;;  %v4326_v47 = vcombine.high %v659_v37, %v663_v38  ;;  %6349 = vst [vmem:[#allocation41_spill] sm:$0xff] %v4331_v48  ;;  %v674_v49 = vld [vmem:[#allocation5 + $0x200] sm:$0xff]  ;;  %v4335_v51 = vcombine.low %v659_v37, %v663_v38  ;;  %v4337_v52 = vcombine.high %v666_v41, %v670_v42  ;;  %v683_v6 = vld [vmem:[#allocation5 + $0x248] sm:$0xff] }
  0x62   :  { %3479 = vmatmul.mubr.msk.bf16.gmra.mrb[4].mxu0 %vm280_vm1, %v4204_v46  ;;  %3484 = vmatmul.mubr.msk.bf16.gmra.mrb[4].mxu1 %vm280_vm1, %v4204_v46  ;;  %6346 = vst [vmem:[#allocation38_spill] sm:$0xff] %v4321_v43  ;;  %6347 = vst [vmem:[#allocation39_spill] sm:$0xff] %v4323_v44  ;;  %v678_v50 = vld [vmem:[#allocation5 + $0x220] sm:$0xff]  ;;  %v4345_v59 = vcombine.low %v666_v41, %v670_v42  ;;  %v687_v7 = vld [vmem:[#allocation5 + $0x268] sm:$0xff] }
  0x63   :  { %370 = vmatprep.mubr.bf16.mxu0 %v6056_v0  ;;  %443 = vmatprep.mubr.bf16.mxu1 %v6056_v0  ;;  %6348 = vst [vmem:[#allocation40_spill] sm:$0xff] %v4326_v47  ;;  %6350 = vst [vmem:[#allocation42_spill] sm:$0xff] %v4335_v51  ;;  %v4353_v61 = vcombine.high %v674_v49, %v678_v50  ;;  %v682_v4 = vld [vmem:[#allocation5 + $0x240] sm:$0xff]  ;;  %v4370_v14 = vcombine.high %v683_v6, %v687_v7  ;;  %v691_v18 = vld [vmem:[#allocation5 + $0x288] sm:$0xff] }
  0x64   :  { %469 = vmatpush1.bf16.msra.mxu0 %v307_v53  ;;  %542 = vmatpush1.bf16.msra.mxu1 %v313_v55  ;;  %6351 = vst [vmem:[#allocation43_spill] sm:$0xff] %v4337_v52  ;;  %v675_v53 = vld [vmem:[#allocation5 + $0x208] sm:$0xff]  ;;  %6353 = vst [vmem:[#allocation45_spill] sm:$0xff] %v4345_v59  ;;  %v686_v5 = vld [vmem:[#allocation5 + $0x260] sm:$0xff]  ;;  %v4377_v25 = vcombine.low %v683_v6, %v687_v7 }
  0x65   :  { %1378 = vmatprep.subr.bf16.mxu0 %v4208_v54  ;;  %1419 = vmatprep.subr.bf16.mxu1 %v4214_v56  ;;  %v679_v55 = vld [vmem:[#allocation5 + $0x228] sm:$0xff]  ;;  %6355 = vst [vmem:[#allocation47_spill] sm:$0xff] %v4353_v61  ;;  %v4367_v13 = vcombine.high %v682_v4, %v686_v5  ;;  %6360 = vst [vmem:[#allocation52_spill] sm:$0xff] %v4370_v14  ;;  %v690_v15 = vld [vmem:[#allocation5 + $0x280] sm:$0xff] }
  0x66   :  { %v4356_v62 = vcombine.high %v675_v53, %v679_v55  ;;  %v4365_v12 = vcombine.low %v675_v53, %v679_v55  ;;  %v694_v17 = vld [vmem:[#allocation5 + $0x2a0] sm:$0xff]  ;;  %6362 = vst [vmem:[#allocation54_spill] sm:$0xff] %v4377_v25  ;;  %v699_v34 = vld [vmem:[#allocation5 + $0x2c8] sm:$0xff] }
  0x67   :  { %6359 = vst [vmem:[#allocation51_spill] sm:$0xff] %v4367_v13  ;;  %v4379_v26 = vcombine.high %v690_v15, %v694_v17  ;;  %v698_v30 = vld [vmem:[#allocation5 + $0x2c0] sm:$0xff]  ;;  %v703_v37 = vld [vmem:[#allocation5 + $0x2e8] sm:$0xff]  ;;  %v4385_v38 = vcombine.low %v690_v15, %v694_v17 }
  0x68   :  { %6356 = vst [vmem:[#allocation48_spill] sm:$0xff] %v4356_v62  ;;  %6358 = vst [vmem:[#allocation50_spill] sm:$0xff] %v4365_v12  ;;  %v702_v33 = vld [vmem:[#allocation5 + $0x2e0] sm:$0xff]  ;;  %v711_v53 = vld [vmem:[#allocation5 + $0x328] sm:$0xff] }
  0x69   :  { %6363 = vst [vmem:[#allocation55_spill] sm:$0xff] %v4379_v26  ;;  %6365 = vst [vmem:[#allocation57_spill] sm:$0xff] %v4385_v38  ;;  %v4391_v42 = vcombine.high %v698_v30, %v702_v33  ;;  %v4397_v55 = vcombine.low %v698_v30, %v702_v33  ;;  %v714_v7 = vld [vmem:[#allocation5 + $0x340] sm:$0xff]  ;;  %v715_v17 = vld [vmem:[#allocation5 + $0x348] sm:$0xff] }
  0x6a   :  { %3480 = vmatmul.mubr.msk.bf16.gmra.mrb[8].mxu0 %vm280_vm1, %v4224_v57  ;;  %3485 = vmatmul.mubr.msk.bf16.gmra.mrb[8].mxu1 %vm280_vm1, %v4224_v57  ;;  %v718_v15 = vld [vmem:[#allocation5 + $0x360] sm:$0xff] }
  0x6b   :  { %380 = vmatprep.mubr.bf16.mxu0 %v6056_v0  ;;  %453 = vmatprep.mubr.bf16.mxu1 %v6056_v0  ;;  %6367 = vst [vmem:[#allocation59_spill] sm:$0xff] %v4391_v42  ;;  %6369 = vst [vmem:[#allocation61_spill] sm:$0xff] %v4397_v55  ;;  %v4415_v33 = vcombine.high %v714_v7, %v718_v15 }
  0x6d   :  { %6375 = vst [vmem:[#allocation67_spill] sm:$0xff] %v4415_v33 }
  0x72   :  { %3481 = vmatmul.mubr.msk.bf16.gmra.mrb[12].mxu0 %vm280_vm1, %v4236_v58  ;;  %3486 = vmatmul.mubr.msk.bf16.gmra.mrb[12].mxu1 %vm280_vm1, %v4236_v58 }
  0x73   :  { %496 = vmatprep.mubr.bf16.mxu0 %v6056_v0  ;;  %569 = vmatprep.mubr.bf16.mxu1 %v6056_v0 }
  0x7a   :  { %3488 = vmatmul.mubr.msk.bf16.vlgmr.msra.gmra.mrb[16].mxu0 %vm280_vm1, %v4193_v31  ;;  %3493 = vmatmul.mubr.msk.bf16.vlgmr.msra.gmra.mrb[16].mxu1 %vm280_vm1, %v4193_v31  ;;  %v4296_v31 = vcombine.high %v643_v21, %v647_v22  ;;  %v695_v21 = vld [vmem:[#allocation5 + $0x2a8] sm:$0xff]  ;;  %v4373_v22 = vcombine.low %v682_v4, %v686_v5  ;;  %v4401_v4 = vcombine.low %v699_v34, %v703_v37 }
  0x7b   :  { %1379 = vmatpush1.bf16.msra.mxu0 %v4244_v63  ;;  %1420 = vmatpush1.bf16.msra.mxu1 %v4246_v1  ;;  %v4382_v29 = vcombine.high %v691_v18, %v695_v21  ;;  %v4389_v41 = vcombine.low %v691_v18, %v695_v21  ;;  %v719_v18 = vld [vmem:[#allocation5 + $0x368] sm:$0xff] }
  0x7c   :  { %1380 = vmatprep.subr.bf16.mxu0 %v4248_v2  ;;  %1421 = vmatprep.subr.bf16.mxu1 %v4250_v3  ;;  %6340 = vst [vmem:[#allocation32_spill] sm:$0xff] %v4296_v31  ;;  %6361 = vst [vmem:[#allocation53_spill] sm:$0xff] %v4373_v22 }
  0x7d   :  { %506 = vmatprep.mubr.bf16.mxu0 %v6056_v0  ;;  %579 = vmatprep.mubr.bf16.mxu1 %v6056_v0  ;;  %6364 = vst [vmem:[#allocation56_spill] sm:$0xff] %v4382_v29  ;;  %6366 = vst [vmem:[#allocation58_spill] sm:$0xff] %v4389_v41 }
  0x7e   :  { %6370 = vst [vmem:[#allocation62_spill] sm:$0xff] %v4401_v4 }
  0x7f   :  { %1381 = vmatpush1.bf16.msra.mxu0 %v4257_v8  ;;  %1422 = vmatpush1.bf16.msra.mxu1 %v4261_v9 }
  0x80   :  { %1382 = vmatprep.subr.bf16.mxu0 %v4263_v10  ;;  %1423 = vmatprep.subr.bf16.mxu1 %v4266_v11 }
  0x82   :  { %3489 = vmatmul.mubr.msk.bf16.gmra.mrb[20].mxu0 %vm280_vm1, %v4204_v46  ;;  %3494 = vmatmul.mubr.msk.bf16.gmra.mrb[20].mxu1 %vm280_vm1, %v4204_v46  ;;  %v671_v46 = vld [vmem:[#allocation5 + $0x1e8] sm:$0xff] }
  0x83   :  { %1383 = vmatpush1.bf16.msra.mxu0 %v4271_v16  ;;  %1424 = vmatpush1.bf16.msra.mxu1 %v4275_v19  ;;  %v4351_v60 = vcombine.low %v667_v45, %v671_v46 }
  0x84   :  { %1384 = vmatprep.subr.bf16.mxu0 %v4277_v20  ;;  %1425 = vmatprep.subr.bf16.mxu1 %v4280_v23 }
  0x85   :  { %516 = vmatprep.mubr.bf16.mxu0 %v6056_v0  ;;  %589 = vmatprep.mubr.bf16.mxu1 %v6056_v0  ;;  %6354 = vst [vmem:[#allocation46_spill] sm:$0xff] %v4351_v60 }
  0x87   :  { %1385 = vmatpush1.bf16.msra.mxu0 %v4285_v24  ;;  %1426 = vmatpush1.bf16.msra.mxu1 %v4291_v27 }
  0x88   :  { %1386 = vmatprep.subr.bf16.mxu0 %v4293_v28  ;;  %1427 = vmatprep.subr.bf16.mxu1 %v4296_v31 }
  0x8a   :  { %3490 = vmatmul.mubr.msk.bf16.gmra.mrb[24].mxu0 %vm280_vm1, %v4224_v57  ;;  %3495 = vmatmul.mubr.msk.bf16.gmra.mrb[24].mxu1 %vm280_vm1, %v4224_v57  ;;  %v4340_v57 = vcombine.high %v667_v45, %v671_v46  ;;  %v4394_v45 = vcombine.high %v699_v34, %v703_v37  ;;  %v706_v46 = vld [vmem:[#allocation5 + $0x300] sm:$0xff]  ;;  %v4418_v34 = vcombine.high %v715_v17, %v719_v18 }
  0x8b   :  { %1387 = vmatpush1.bf16.msra.mxu0 %v4301_v32  ;;  %1428 = vmatpush1.bf16.msra.mxu1 %v4305_v35  ;;  %v722_v37 = vld [vmem:[#allocation5 + $0x380] sm:$0xff] }
  0x8c   :  { %1388 = vmatprep.subr.bf16.mxu0 %v4307_v36  ;;  %1429 = vmatprep.subr.bf16.mxu1 %v4310_v39  ;;  %6352 = vst [vmem:[#allocation44_spill] sm:$0xff] %v4340_v57  ;;  %6368 = vst [vmem:[#allocation60_spill] sm:$0xff] %v4394_v45 }
  0x8d   :  { %526 = vmatprep.mubr.bf16.mxu0 %v6056_v0  ;;  %599 = vmatprep.mubr.bf16.mxu1 %v6056_v0  ;;  %6376 = vst [vmem:[#allocation68_spill] sm:$0xff] %v4418_v34 }
  0x8f   :  { %1389 = vmatpush1.bf16.msra.mxu0 %v4315_v40  ;;  %1430 = vmatpush1.bf16.msra.mxu1 %v4321_v43 }
  0x90   :  { %1390 = vmatprep.subr.bf16.mxu0 %v4323_v44  ;;  %1431 = vmatprep.subr.bf16.mxu1 %v4326_v47 }
  0x92   :  { %3491 = vmatmul.mubr.msk.bf16.gmra.mrb[28].mxu0 %vm280_vm1, %v4236_v58  ;;  %3496 = vmatmul.mubr.msk.bf16.gmra.mrb[28].mxu1 %vm280_vm1, %v4236_v58  ;;  %v4361_v58 = vcombine.low %v674_v49, %v678_v50  ;;  %v710_v49 = vld [vmem:[#allocation5 + $0x320] sm:$0xff]  ;;  %v707_v50 = vld [vmem:[#allocation5 + $0x308] sm:$0xff] }
  0x93   :  { %1391 = vmatpush1.bf16.msra.mxu0 %v4331_v48  ;;  %1432 = vmatpush1.bf16.msra.mxu1 %v4335_v51  ;;  %v4403_v5 = vcombine.high %v706_v46, %v710_v49  ;;  %v4406_v6 = vcombine.high %v707_v50, %v711_v53  ;;  %v4409_v21 = vcombine.low %v706_v46, %v710_v49 }
  0x94   :  { %1392 = vmatprep.subr.bf16.mxu0 %v4337_v52  ;;  %1433 = vmatprep.subr.bf16.mxu1 %v4340_v57  ;;  %6357 = vst [vmem:[#allocation49_spill] sm:$0xff] %v4361_v58  ;;  %v4413_v30 = vcombine.low %v707_v50, %v711_v53  ;;  %v4421_v46 = vcombine.low %v714_v7, %v718_v15 }
  0x95   :  { %1410 = vmatprep.mubr.bf16.mxu0 %v6056_v0  ;;  %1451 = vmatprep.mubr.bf16.mxu1 %v6056_v0  ;;  %6371 = vst [vmem:[#allocation63_spill] sm:$0xff] %v4403_v5  ;;  %6372 = vst [vmem:[#allocation64_spill] sm:$0xff] %v4406_v6  ;;  %v726_v0 = vld [vmem:[#allocation5 + $0x3a0] sm:$0xff]  ;;  %v4425_v49 = vcombine.low %v715_v17, %v719_v18 }
  0x96   :  { %6373 = vst [vmem:[#allocation65_spill] sm:$0xff] %v4409_v21  ;;  %6374 = vst [vmem:[#allocation66_spill] sm:$0xff] %v4413_v30  ;;  %v4427_v50 = vcombine.high %v722_v37, %v726_v0  ;;  %v4433_v7 = vcombine.low %v722_v37, %v726_v0 }
  0x97   :  { %1393 = vmatpush1.bf16.msra.mxu0 %v4345_v59  ;;  %1434 = vmatpush1.bf16.msra.mxu1 %v4351_v60  ;;  %6377 = vst [vmem:[#allocation69_spill] sm:$0xff] %v4421_v46  ;;  %6378 = vst [vmem:[#allocation70_spill] sm:$0xff] %v4425_v49 }
  0x98   :  { %1394 = vmatprep.subr.bf16.mxu0 %v4353_v61  ;;  %1435 = vmatprep.subr.bf16.mxu1 %v4356_v62  ;;  %6379 = vst [vmem:[#allocation71_spill] sm:$0xff] %v4427_v50  ;;  %6381 = vst [vmem:[#allocation73_spill] sm:$0xff] %v4433_v7 }
  0x9b   :  { %1395 = vmatpush1.bf16.msra.mxu0 %v4361_v58  ;;  %1436 = vmatpush1.bf16.msra.mxu1 %v4365_v12 }
  0x9c   :  { %1396 = vmatprep.subr.bf16.mxu0 %v4367_v13  ;;  %1437 = vmatprep.subr.bf16.mxu1 %v4370_v14 }
  0x9f   :  { %1397 = vmatpush1.bf16.msra.mxu0 %v4373_v22  ;;  %1438 = vmatpush1.bf16.msra.mxu1 %v4377_v25 }
  0xa0   :  { %1398 = vmatprep.subr.bf16.mxu0 %v4379_v26  ;;  %1439 = vmatprep.subr.bf16.mxu1 %v4382_v29 }
  0xa3   :  { %1399 = vmatpush1.bf16.msra.mxu0 %v4385_v38  ;;  %1440 = vmatpush1.bf16.msra.mxu1 %v4389_v41  ;;  %v649_v41 = vld [vmem:[#allocation5 + $0x138] sm:$0xff] }
  0xa4   :  { %1400 = vmatprep.subr.bf16.mxu0 %v4391_v42  ;;  %1441 = vmatprep.subr.bf16.mxu1 %v4394_v45  ;;  %v723_v45 = vld [vmem:[#allocation5 + $0x388] sm:$0xff] }
  0xa5   :  { %v727_v42 = vld [vmem:[#allocation5 + $0x3a8] sm:$0xff] }
  0xa6   :  { %v4430_v53 = vcombine.high %v723_v45, %v727_v42  ;;  %v4437_v15 = vcombine.low %v723_v45, %v727_v42 }
  0xa7   :  { %1401 = vmatpush1.bf16.msra.mxu0 %v4397_v55  ;;  %1442 = vmatpush1.bf16.msra.mxu1 %v4401_v4  ;;  %v731_v4 = vld [vmem:[#allocation5 + $0x3c8] sm:$0xff] }
  0xa8   :  { %1402 = vmatprep.subr.bf16.mxu0 %v4403_v5  ;;  %1443 = vmatprep.subr.bf16.mxu1 %v4406_v6  ;;  %6380 = vst [vmem:[#allocation72_spill] sm:$0xff] %v4430_v53  ;;  %v730_v6 = vld [vmem:[#allocation5 + $0x3c0] sm:$0xff]  ;;  %v735_v55 = vld [vmem:[#allocation5 + $0x3e8] sm:$0xff]  ;;  %6382 = vst [vmem:[#allocation74_spill] sm:$0xff] %v4437_v15 }
  0xa9   :  { %v734_v5 = vld [vmem:[#allocation5 + $0x3e0] sm:$0xff]  ;;  %v4442_v18 = vcombine.high %v731_v4, %v735_v55  ;;  %v4449_v42 = vcombine.low %v731_v4, %v735_v55 }
  0xaa   :  { %v4439_v17 = vcombine.high %v730_v6, %v734_v5  ;;  %v4445_v0 = vcombine.low %v730_v6, %v734_v5 }
  0xab   :  { %1403 = vmatpush1.bf16.msra.mxu0 %v4409_v21  ;;  %1444 = vmatpush1.bf16.msra.mxu1 %v4413_v30  ;;  %6384 = vst [vmem:[#allocation76_spill] sm:$0xff] %v4442_v18  ;;  %v613_v30 = vld [vmem:[#allocation5 + $0x18] sm:$0xff]  ;;  %6386 = vst [vmem:[#allocation78_spill] sm:$0xff] %v4449_v42 }
  0xac   :  { %1404 = vmatprep.subr.bf16.mxu0 %v4415_v33  ;;  %1445 = vmatprep.subr.bf16.mxu1 %v4418_v34  ;;  %6383 = vst [vmem:[#allocation75_spill] sm:$0xff] %v4439_v17  ;;  %v612_v34 = vld [vmem:[#allocation5 + $0x10] sm:$0xff]  ;;  %v617_v21 = vld [vmem:[#allocation5 + $0x38] sm:$0xff]  ;;  %6385 = vst [vmem:[#allocation77_spill] sm:$0xff] %v4445_v0 }
  0xad   :  { %v616_v33 = vld [vmem:[#allocation5 + $0x30] sm:$0xff]  ;;  %v4454_v37 = vcombine.high %v613_v30, %v617_v21  ;;  %v4461_v55 = vcombine.low %v613_v30, %v617_v21 }
  0xae   :  { %v4451_v45 = vcombine.high %v612_v34, %v616_v33  ;;  %v4457_v5 = vcombine.low %v612_v34, %v616_v33 }
  0xaf   :  { %1405 = vmatpush1.bf16.msra.mxu0 %v4421_v46  ;;  %1446 = vmatpush1.bf16.msra.mxu1 %v4425_v49  ;;  %6388 = vst [vmem:[#allocation80_spill] sm:$0xff] %v4454_v37  ;;  %v621_v49 = vld [vmem:[#allocation5 + $0x58] sm:$0xff]  ;;  %6390 = vst [vmem:[#allocation82_spill] sm:$0xff] %v4461_v55 }
  0xb0   :  { %1406 = vmatprep.subr.bf16.mxu0 %v4427_v50  ;;  %1447 = vmatprep.subr.bf16.mxu1 %v4430_v53  ;;  %6387 = vst [vmem:[#allocation79_spill] sm:$0xff] %v4451_v45  ;;  %v620_v53 = vld [vmem:[#allocation5 + $0x50] sm:$0xff]  ;;  %v625_v46 = vld [vmem:[#allocation5 + $0x78] sm:$0xff]  ;;  %6389 = vst [vmem:[#allocation81_spill] sm:$0xff] %v4457_v5 }
  0xb1   :  { %v624_v50 = vld [vmem:[#allocation5 + $0x70] sm:$0xff]  ;;  %v4466_v6 = vcombine.high %v621_v49, %v625_v46  ;;  %v4475_v21 = vcombine.low %v621_v49, %v625_v46 }
  0xb2   :  { %v4463_v4 = vcombine.high %v620_v53, %v624_v50  ;;  %v4471_v33 = vcombine.low %v620_v53, %v624_v50 }
  0xb3   :  { %1407 = vmatpush1.bf16.msra.mxu0 %v4433_v7  ;;  %1448 = vmatpush1.bf16.msra.mxu1 %v4437_v15  ;;  %6392 = vst [vmem:[#allocation84_spill] sm:$0xff] %v4466_v6  ;;  %v6393_v15 = vmov 0   ;;  %v629_v7 = vld [vmem:[#allocation5 + $0x98] sm:$0xff]  ;;  %6395 = vst [vmem:[#allocation86_spill] sm:$0xff] %v4475_v21 }
  0xb4   :  { %1408 = vmatprep.subr.bf16.mxu0 %v4439_v17  ;;  %1449 = vmatprep.subr.bf16.mxu1 %v4442_v18  ;;  %6391 = vst [vmem:[#allocation83_spill] sm:$0xff] %v4463_v4  ;;  %v628_v18 = vld [vmem:[#allocation5 + $0x90] sm:$0xff]  ;;  %6394 = vst [vmem:[#allocation85_spill] sm:$0xff] %v4471_v33 }
  0xb5   :  { %v632_v17 = vld [vmem:[#allocation5 + $0xb0] sm:$0xff] }
  0xb6   :  { %v4477_v30 = vcombine.high %v628_v18, %v632_v17  ;;  %v4485_v50 = vcombine.low %v628_v18, %v632_v17 }
  0xb7   :  { %1409 = vmatpush1.bf16.msra.mxu0 %v4445_v0  ;;  %1450 = vmatpush1.bf16.msra.mxu1 %v4449_v42  ;;  %v633_v0 = vld [vmem:[#allocation5 + $0xb8] sm:$0xff] }
  0xb8   :  { %1460 = vmatprep.subr.bf16.mxu0 %v4451_v45  ;;  %1501 = vmatprep.subr.bf16.mxu1 %v4454_v37  ;;  %6396 = vst [vmem:[#allocation87_spill] sm:$0xff] %v4477_v30  ;;  %v4480_v34 = vcombine.high %v629_v7, %v633_v0  ;;  %v636_v37 = vld [vmem:[#allocation5 + $0xd0] sm:$0xff]  ;;  %v637_v42 = vld [vmem:[#allocation5 + $0xd8] sm:$0xff]  ;;  %6398 = vst [vmem:[#allocation89_spill] sm:$0xff] %v4485_v50  ;;  %v4489_v46 = vcombine.low %v629_v7, %v633_v0 }
  0xb9   :  { %v640_v45 = vld [vmem:[#allocation5 + $0xf0] sm:$0xff] }
  0xba   :  { %1411 = vmatmul.mubr.bf16.vlgmr.msra.gmra.mrb[32].mxu0 %v6393_v15  ;;  %1452 = vmatmul.mubr.bf16.vlgmr.msra.gmra.mrb[32].mxu1 %v6393_v15  ;;  %6397 = vst [vmem:[#allocation88_spill] sm:$0xff] %v4480_v34  ;;  %6399 = vst [vmem:[#allocation90_spill] sm:$0xff] %v4489_v46  ;;  %v4491_v49 = vcombine.high %v636_v37, %v640_v45  ;;  %v4497_v17 = vcombine.low %v636_v37, %v640_v45 }
  0xbb   :  { %1461 = vmatpush1.bf16.msra.mxu0 %v4457_v5  ;;  %1502 = vmatpush1.bf16.msra.mxu1 %v4461_v55  ;;  %v641_v5 = vld [vmem:[#allocation5 + $0xf8] sm:$0xff] }
  0xbc   :  { %1462 = vmatprep.subr.bf16.mxu0 %v4463_v4  ;;  %1503 = vmatprep.subr.bf16.mxu1 %v4466_v6  ;;  %6400 = vst [vmem:[#allocation91_spill] sm:$0xff] %v4491_v49  ;;  %v4494_v53 = vcombine.high %v637_v42, %v641_v5  ;;  %v644_v6 = vld [vmem:[#allocation5 + $0x110] sm:$0xff]  ;;  %v645_v55 = vld [vmem:[#allocation5 + $0x118] sm:$0xff]  ;;  %6402 = vst [vmem:[#allocation93_spill] sm:$0xff] %v4497_v17  ;;  %v4501_v7 = vcombine.low %v637_v42, %v641_v5 }
  0xbd   :  { %1492 = vmatprep.mubr.bf16.mxu0 %v6393_v15  ;;  %1533 = vmatprep.mubr.bf16.mxu1 %v6393_v15  ;;  %v648_v4 = vld [vmem:[#allocation5 + $0x130] sm:$0xff]  ;;  %v4506_v0 = vcombine.high %v645_v55, %v649_v41  ;;  %v4513_v42 = vcombine.low %v645_v55, %v649_v41 }
  0xbe   :  { %6401 = vst [vmem:[#allocation92_spill] sm:$0xff] %v4494_v53  ;;  %6403 = vst [vmem:[#allocation94_spill] sm:$0xff] %v4501_v7  ;;  %v4503_v18 = vcombine.high %v644_v6, %v648_v4  ;;  %v4509_v45 = vcombine.low %v644_v6, %v648_v4 }
  0xbf   :  { %1463 = vmatpush1.bf16.msra.mxu0 %v4471_v33  ;;  %1504 = vmatpush1.bf16.msra.mxu1 %v4475_v21  ;;  %6405 = vst [vmem:[#allocation96_spill] sm:$0xff] %v4506_v0  ;;  %v653_v21 = vld [vmem:[#allocation5 + $0x158] sm:$0xff]  ;;  %6407 = vst [vmem:[#allocation98_spill] sm:$0xff] %v4513_v42 }
  0xc0   :  { %1464 = vmatprep.subr.bf16.mxu0 %v4477_v30  ;;  %1505 = vmatprep.subr.bf16.mxu1 %v4480_v34  ;;  %6404 = vst [vmem:[#allocation95_spill] sm:$0xff] %v4503_v18  ;;  %v652_v34 = vld [vmem:[#allocation5 + $0x150] sm:$0xff]  ;;  %v657_v33 = vld [vmem:[#allocation5 + $0x178] sm:$0xff]  ;;  %6406 = vst [vmem:[#allocation97_spill] sm:$0xff] %v4509_v45 }
  0xc1   :  { %v656_v30 = vld [vmem:[#allocation5 + $0x170] sm:$0xff]  ;;  %v4518_v5 = vcombine.high %v653_v21, %v657_v33  ;;  %v4525_v41 = vcombine.low %v653_v21, %v657_v33 }
  0xc2   :  { %v4515_v37 = vcombine.high %v652_v34, %v656_v30  ;;  %v4521_v4 = vcombine.low %v652_v34, %v656_v30 }
  0xc3   :  { %1465 = vmatpush1.bf16.msra.mxu0 %v4485_v50  ;;  %1506 = vmatpush1.bf16.msra.mxu1 %v4489_v46  ;;  %6409 = vst [vmem:[#allocation100_spill] sm:$0xff] %v4518_v5  ;;  %v661_v46 = vld [vmem:[#allocation5 + $0x198] sm:$0xff]  ;;  %6411 = vst [vmem:[#allocation102_spill] sm:$0xff] %v4525_v41 }
  0xc4   :  { %1466 = vmatprep.subr.bf16.mxu0 %v4491_v49  ;;  %1507 = vmatprep.subr.bf16.mxu1 %v4494_v53  ;;  %6408 = vst [vmem:[#allocation99_spill] sm:$0xff] %v4515_v37  ;;  %v660_v53 = vld [vmem:[#allocation5 + $0x190] sm:$0xff]  ;;  %v665_v50 = vld [vmem:[#allocation5 + $0x1b8] sm:$0xff]  ;;  %6410 = vst [vmem:[#allocation101_spill] sm:$0xff] %v4521_v4 }
  0xc5   :  { %v664_v49 = vld [vmem:[#allocation5 + $0x1b0] sm:$0xff]  ;;  %v4530_v6 = vcombine.high %v661_v46, %v665_v50  ;;  %v4537_v33 = vcombine.low %v661_v46, %v665_v50 }
  0xc6   :  { %v4527_v55 = vcombine.high %v660_v53, %v664_v49  ;;  %v4533_v30 = vcombine.low %v660_v53, %v664_v49 }
  0xc7   :  { %1467 = vmatpush1.bf16.msra.mxu0 %v4497_v17  ;;  %1508 = vmatpush1.bf16.msra.mxu1 %v4501_v7  ;;  %6413 = vst [vmem:[#allocation104_spill] sm:$0xff] %v4530_v6  ;;  %v669_v7 = vld [vmem:[#allocation5 + $0x1d8] sm:$0xff]  ;;  %6415 = vst [vmem:[#allocation106_spill] sm:$0xff] %v4537_v33 }
  0xc8   :  { %1468 = vmatprep.subr.bf16.mxu0 %v4503_v18  ;;  %1509 = vmatprep.subr.bf16.mxu1 %v4506_v0  ;;  %6412 = vst [vmem:[#allocation103_spill] sm:$0xff] %v4527_v55  ;;  %v668_v0 = vld [vmem:[#allocation5 + $0x1d0] sm:$0xff]  ;;  %v673_v17 = vld [vmem:[#allocation5 + $0x1f8] sm:$0xff]  ;;  %6414 = vst [vmem:[#allocation105_spill] sm:$0xff] %v4533_v30 }
  0xc9   :  { %v672_v18 = vld [vmem:[#allocation5 + $0x1f0] sm:$0xff]  ;;  %v4542_v34 = vcombine.high %v669_v7, %v673_v17  ;;  %v4549_v50 = vcombine.low %v669_v7, %v673_v17 }
  0xca   :  { %v4539_v21 = vcombine.high %v668_v0, %v672_v18  ;;  %v4545_v49 = vcombine.low %v668_v0, %v672_v18 }
  0xcb   :  { %1469 = vmatpush1.bf16.msra.mxu0 %v4509_v45  ;;  %1510 = vmatpush1.bf16.msra.mxu1 %v4513_v42  ;;  %6417 = vst [vmem:[#allocation108_spill] sm:$0xff] %v4542_v34  ;;  %v677_v42 = vld [vmem:[#allocation5 + $0x218] sm:$0xff]  ;;  %6419 = vst [vmem:[#allocation110_spill] sm:$0xff] %v4549_v50 }
  0xcc   :  { %1470 = vmatprep.subr.bf16.mxu0 %v4515_v37  ;;  %1511 = vmatprep.subr.bf16.mxu1 %v4518_v5  ;;  %6416 = vst [vmem:[#allocation107_spill] sm:$0xff] %v4539_v21  ;;  %v676_v5 = vld [vmem:[#allocation5 + $0x210] sm:$0xff]  ;;  %v681_v45 = vld [vmem:[#allocation5 + $0x238] sm:$0xff]  ;;  %6418 = vst [vmem:[#allocation109_spill] sm:$0xff] %v4545_v49 }
  0xcd   :  { %v680_v37 = vld [vmem:[#allocation5 + $0x230] sm:$0xff]  ;;  %v4554_v53 = vcombine.high %v677_v42, %v681_v45  ;;  %v4561_v17 = vcombine.low %v677_v42, %v681_v45 }
  0xce   :  { %v4551_v46 = vcombine.high %v676_v5, %v680_v37  ;;  %v4557_v18 = vcombine.low %v676_v5, %v680_v37 }
  0xcf   :  { %1471 = vmatpush1.bf16.msra.mxu0 %v4521_v4  ;;  %1512 = vmatpush1.bf16.msra.mxu1 %v4525_v41  ;;  %6421 = vst [vmem:[#allocation112_spill] sm:$0xff] %v4554_v53  ;;  %v685_v41 = vld [vmem:[#allocation5 + $0x258] sm:$0xff]  ;;  %6423 = vst [vmem:[#allocation114_spill] sm:$0xff] %v4561_v17 }
  0xd0   :  { %1472 = vmatprep.subr.bf16.mxu0 %v4527_v55  ;;  %1513 = vmatprep.subr.bf16.mxu1 %v4530_v6  ;;  %6420 = vst [vmem:[#allocation111_spill] sm:$0xff] %v4551_v46  ;;  %v684_v6 = vld [vmem:[#allocation5 + $0x250] sm:$0xff]  ;;  %v689_v4 = vld [vmem:[#allocation5 + $0x278] sm:$0xff]  ;;  %6422 = vst [vmem:[#allocation113_spill] sm:$0xff] %v4557_v18 }
  0xd1   :  { %v688_v55 = vld [vmem:[#allocation5 + $0x270] sm:$0xff]  ;;  %v4566_v0 = vcombine.high %v685_v41, %v689_v4  ;;  %v4573_v45 = vcombine.low %v685_v41, %v689_v4 }
  0xd2   :  { %v4563_v7 = vcombine.high %v684_v6, %v688_v55  ;;  %v4569_v37 = vcombine.low %v684_v6, %v688_v55 }
  0xd3   :  { %1473 = vmatpush1.bf16.msra.mxu0 %v4533_v30  ;;  %1514 = vmatpush1.bf16.msra.mxu1 %v4537_v33  ;;  %6425 = vst [vmem:[#allocation116_spill] sm:$0xff] %v4566_v0  ;;  %v693_v33 = vld [vmem:[#allocation5 + $0x298] sm:$0xff]  ;;  %6427 = vst [vmem:[#allocation118_spill] sm:$0xff] %v4573_v45 }
  0xd4   :  { %1474 = vmatprep.subr.bf16.mxu0 %v4539_v21  ;;  %1515 = vmatprep.subr.bf16.mxu1 %v4542_v34  ;;  %6424 = vst [vmem:[#allocation115_spill] sm:$0xff] %v4563_v7  ;;  %v692_v34 = vld [vmem:[#allocation5 + $0x290] sm:$0xff]  ;;  %v697_v30 = vld [vmem:[#allocation5 + $0x2b8] sm:$0xff]  ;;  %6426 = vst [vmem:[#allocation117_spill] sm:$0xff] %v4569_v37 }
  0xd5   :  { %v696_v21 = vld [vmem:[#allocation5 + $0x2b0] sm:$0xff]  ;;  %v4578_v5 = vcombine.high %v693_v33, %v697_v30  ;;  %v4585_v4 = vcombine.low %v693_v33, %v697_v30 }
  0xd6   :  { %v4575_v42 = vcombine.high %v692_v34, %v696_v21  ;;  %v4581_v55 = vcombine.low %v692_v34, %v696_v21 }
  0xd7   :  { %1475 = vmatpush1.bf16.msra.mxu0 %v4545_v49  ;;  %1516 = vmatpush1.bf16.msra.mxu1 %v4549_v50  ;;  %6429 = vst [vmem:[#allocation120_spill] sm:$0xff] %v4578_v5  ;;  %v701_v50 = vld [vmem:[#allocation5 + $0x2d8] sm:$0xff]  ;;  %6431 = vst [vmem:[#allocation122_spill] sm:$0xff] %v4585_v4 }
  0xd8   :  { %1476 = vmatprep.subr.bf16.mxu0 %v4551_v46  ;;  %1517 = vmatprep.subr.bf16.mxu1 %v4554_v53  ;;  %6428 = vst [vmem:[#allocation119_spill] sm:$0xff] %v4575_v42  ;;  %v700_v53 = vld [vmem:[#allocation5 + $0x2d0] sm:$0xff]  ;;  %v705_v49 = vld [vmem:[#allocation5 + $0x2f8] sm:$0xff]  ;;  %6430 = vst [vmem:[#allocation121_spill] sm:$0xff] %v4581_v55 }
  0xd9   :  { %v704_v46 = vld [vmem:[#allocation5 + $0x2f0] sm:$0xff]  ;;  %v4590_v6 = vcombine.high %v701_v50, %v705_v49  ;;  %v4597_v30 = vcombine.low %v701_v50, %v705_v49 }
  0xda   :  { %v4587_v41 = vcombine.high %v700_v53, %v704_v46  ;;  %v4593_v21 = vcombine.low %v700_v53, %v704_v46 }
  0xdb   :  { %1477 = vmatpush1.bf16.msra.mxu0 %v4557_v18  ;;  %1518 = vmatpush1.bf16.msra.mxu1 %v4561_v17  ;;  %6433 = vst [vmem:[#allocation124_spill] sm:$0xff] %v4590_v6  ;;  %v709_v17 = vld [vmem:[#allocation5 + $0x318] sm:$0xff]  ;;  %6435 = vst [vmem:[#allocation126_spill] sm:$0xff] %v4597_v30 }
  0xdc   :  { %1478 = vmatprep.subr.bf16.mxu0 %v4563_v7  ;;  %1519 = vmatprep.subr.bf16.mxu1 %v4566_v0  ;;  %6432 = vst [vmem:[#allocation123_spill] sm:$0xff] %v4587_v41  ;;  %v708_v0 = vld [vmem:[#allocation5 + $0x310] sm:$0xff]  ;;  %v713_v18 = vld [vmem:[#allocation5 + $0x338] sm:$0xff]  ;;  %6434 = vst [vmem:[#allocation125_spill] sm:$0xff] %v4593_v21 }
  0xdd   :  { %v712_v7 = vld [vmem:[#allocation5 + $0x330] sm:$0xff]  ;;  %v4602_v34 = vcombine.high %v709_v17, %v713_v18  ;;  %v4609_v49 = vcombine.low %v709_v17, %v713_v18 }
  0xde   :  { %v4599_v33 = vcombine.high %v708_v0, %v712_v7  ;;  %v4605_v46 = vcombine.low %v708_v0, %v712_v7 }
  0xdf   :  { %1479 = vmatpush1.bf16.msra.mxu0 %v4569_v37  ;;  %1520 = vmatpush1.bf16.msra.mxu1 %v4573_v45  ;;  %6437 = vst [vmem:[#allocation128_spill] sm:$0xff] %v4602_v34  ;;  %v717_v45 = vld [vmem:[#allocation5 + $0x358] sm:$0xff]  ;;  %6439 = vst [vmem:[#allocation130_spill] sm:$0xff] %v4609_v49 }
  0xe0   :  { %1480 = vmatprep.subr.bf16.mxu0 %v4575_v42  ;;  %1521 = vmatprep.subr.bf16.mxu1 %v4578_v5  ;;  %6436 = vst [vmem:[#allocation127_spill] sm:$0xff] %v4599_v33  ;;  %v716_v5 = vld [vmem:[#allocation5 + $0x350] sm:$0xff]  ;;  %v721_v37 = vld [vmem:[#allocation5 + $0x378] sm:$0xff]  ;;  %6438 = vst [vmem:[#allocation129_spill] sm:$0xff] %v4605_v46 }
  0xe1   :  { %v720_v42 = vld [vmem:[#allocation5 + $0x370] sm:$0xff]  ;;  %v4614_v53 = vcombine.high %v717_v45, %v721_v37  ;;  %v4621_v18 = vcombine.low %v717_v45, %v721_v37 }
  0xe2   :  { %v4611_v50 = vcombine.high %v716_v5, %v720_v42  ;;  %v4617_v7 = vcombine.low %v716_v5, %v720_v42 }
  0xe3   :  { %1481 = vmatpush1.bf16.msra.mxu0 %v4581_v55  ;;  %1522 = vmatpush1.bf16.msra.mxu1 %v4585_v4  ;;  %6441 = vst [vmem:[#allocation132_spill] sm:$0xff] %v4614_v53  ;;  %v725_v4 = vld [vmem:[#allocation5 + $0x398] sm:$0xff]  ;;  %6443 = vst [vmem:[#allocation134_spill] sm:$0xff] %v4621_v18 }
  0xe4   :  { %1482 = vmatprep.subr.bf16.mxu0 %v4587_v41  ;;  %1523 = vmatprep.subr.bf16.mxu1 %v4590_v6  ;;  %6440 = vst [vmem:[#allocation131_spill] sm:$0xff] %v4611_v50  ;;  %v724_v6 = vld [vmem:[#allocation5 + $0x390] sm:$0xff]  ;;  %v729_v55 = vld [vmem:[#allocation5 + $0x3b8] sm:$0xff]  ;;  %6442 = vst [vmem:[#allocation133_spill] sm:$0xff] %v4617_v7 }
  0xe5   :  { %v728_v41 = vld [vmem:[#allocation5 + $0x3b0] sm:$0xff]  ;;  %v4626_v0 = vcombine.high %v725_v4, %v729_v55  ;;  %v4633_v37 = vcombine.low %v725_v4, %v729_v55  ;;  %v6452_v55 = vld [vmem:[#allocation58_spill] sm:$0xff] }
  0xe6   :  { %v4623_v17 = vcombine.high %v724_v6, %v728_v41  ;;  %v4629_v42 = vcombine.low %v724_v6, %v728_v41  ;;  %v6453_v4 = vld [vmem:[#allocation59_spill] sm:$0xff]  ;;  %v6454_v6 = vld [vmem:[#allocation60_spill] sm:$0xff] }
  0xe7   :  { %1483 = vmatpush1.bf16.msra.mxu0 %v4593_v21  ;;  %1524 = vmatpush1.bf16.msra.mxu1 %v4597_v30  ;;  %6445 = vst [vmem:[#allocation136_spill] sm:$0xff] %v4626_v0  ;;  %v733_v30 = vld [vmem:[#allocation5 + $0x3d8] sm:$0xff]  ;;  %6447 = vst [vmem:[#allocation138_spill] sm:$0xff] %v4633_v37 }
  0xe8   :  { %1484 = vmatprep.subr.bf16.mxu0 %v4599_v33  ;;  %1525 = vmatprep.subr.bf16.mxu1 %v4602_v34  ;;  %6444 = vst [vmem:[#allocation135_spill] sm:$0xff] %v4623_v17  ;;  %v732_v34 = vld [vmem:[#allocation5 + $0x3d0] sm:$0xff]  ;;  %v737_v21 = vld [vmem:[#allocation5 + $0x3f8] sm:$0xff]  ;;  %6446 = vst [vmem:[#allocation137_spill] sm:$0xff] %v4629_v42 }
  0xe9   :  { %v736_v33 = vld [vmem:[#allocation5 + $0x3f0] sm:$0xff]  ;;  %v4638_v5 = vcombine.high %v733_v30, %v737_v21  ;;  %v4645_v41 = vcombine.low %v733_v30, %v737_v21  ;;  %v6455_v30 = vld [vmem:[#allocation61_spill] sm:$0xff] }
  0xea   :  { %v4635_v45 = vcombine.high %v732_v34, %v736_v33 }
  0xeb   :  { %1485 = vmatpush1.bf16.msra.mxu0 %v4605_v46  ;;  %1526 = vmatpush1.bf16.msra.mxu1 %v4609_v49  ;;  %6449 = vst [vmem:[#allocation140_spill] sm:$0xff] %v4638_v5  ;;  %6451 = vst [vmem:[#allocation142_spill] sm:$0xff] %v4645_v41 }
  0xec   :  { %1486 = vmatprep.subr.bf16.mxu0 %v4611_v50  ;;  %1527 = vmatprep.subr.bf16.mxu1 %v4614_v53  ;;  %6448 = vst [vmem:[#allocation139_spill] sm:$0xff] %v4635_v45  ;;  %v4641_v53 = vcombine.low %v732_v34, %v736_v33  ;;  %v6456_v33 = vld [vmem:[#allocation62_spill] sm:$0xff]  ;;  %v6457_v34 = vld [vmem:[#allocation63_spill] sm:$0xff] }
  0xee   :  { %6450 = vst [vmem:[#allocation141_spill] sm:$0xff] %v4641_v53 }
  0xef   :  { %1487 = vmatpush1.bf16.msra.mxu0 %v4617_v7  ;;  %1528 = vmatpush1.bf16.msra.mxu1 %v4621_v18 }
  0xf0   :  { %1488 = vmatprep.subr.bf16.mxu0 %v4623_v17  ;;  %1529 = vmatprep.subr.bf16.mxu1 %v4626_v0 }
  0xf3   :  { %1489 = vmatpush1.bf16.msra.mxu0 %v4629_v42  ;;  %1530 = vmatpush1.bf16.msra.mxu1 %v4633_v37 }
  0xf4   :  { %1490 = vmatprep.subr.bf16.mxu0 %v4635_v45  ;;  %1531 = vmatprep.subr.bf16.mxu1 %v4638_v5 }
  0xf7   :  { %1491 = vmatpush1.bf16.msra.mxu0 %v4641_v53  ;;  %1532 = vmatpush1.bf16.msra.mxu1 %v4645_v41 }
  0xf8   :  { %1588 = vmatprep.subr.bf16.mxu0 %v4208_v54  ;;  %1629 = vmatprep.subr.bf16.mxu1 %v4214_v56 }
  0xfa   :  { %1493 = vmatmul.mubr.bf16.vlgmr.msra.gmra.mrb[36].mxu0 %v6393_v15  ;;  %1534 = vmatmul.mubr.bf16.vlgmr.msra.gmra.mrb[36].mxu1 %v6393_v15  ;;  %v120_v15 = vlaneseq }
  0xfb   :  { %1589 = vmatpush1.bf16.msra.mxu0 %v4244_v63  ;;  %1630 = vmatpush1.bf16.msra.mxu1 %v4246_v1 }
  0xfc   :  { %1590 = vmatprep.subr.bf16.mxu0 %v4248_v2  ;;  %1631 = vmatprep.subr.bf16.mxu1 %v4250_v3  ;;  %v4698_v21 = vshrl.u32 %v120_v15, 7  ;;  %v6459_v15 = vld [vmem:[#allocation65_spill] sm:$0xff] }
  0xff   :  { %1591 = vmatpush1.bf16.msra.mxu0 %v4257_v8  ;;  %1632 = vmatpush1.bf16.msra.mxu1 %v4261_v9 }
 0x100   :  { %1592 = vmatprep.subr.bf16.mxu0 %v4263_v10  ;;  %1633 = vmatprep.subr.bf16.mxu1 %v4266_v11 }
 0x103   :  { %1593 = vmatpush1.bf16.msra.mxu0 %v4271_v16  ;;  %1634 = vmatpush1.bf16.msra.mxu1 %v4275_v19 }
 0x104   :  { %1594 = vmatprep.subr.bf16.mxu0 %v4277_v20  ;;  %1635 = vmatprep.subr.bf16.mxu1 %v4280_v23 }
 0x107   :  { %1595 = vmatpush1.bf16.msra.mxu0 %v4285_v24  ;;  %1636 = vmatpush1.bf16.msra.mxu1 %v4291_v27 }
 0x108   :  { %1596 = vmatprep.subr.bf16.mxu0 %v4293_v28  ;;  %1637 = vmatprep.subr.bf16.mxu1 %v4296_v31 }
 0x10b   :  { %1597 = vmatpush1.bf16.msra.mxu0 %v4301_v32  ;;  %1638 = vmatpush1.bf16.msra.mxu1 %v4305_v35 }
 0x10c   :  { %1598 = vmatprep.subr.bf16.mxu0 %v4307_v36  ;;  %1639 = vmatprep.subr.bf16.mxu1 %v4310_v39 }
 0x10f   :  { %1599 = vmatpush1.bf16.msra.mxu0 %v4315_v40  ;;  %1640 = vmatpush1.bf16.msra.mxu1 %v4321_v43 }
 0x110   :  { %1600 = vmatprep.subr.bf16.mxu0 %v4323_v44  ;;  %1641 = vmatprep.subr.bf16.mxu1 %v4326_v47 }
 0x113   :  { %1601 = vmatpush1.bf16.msra.mxu0 %v4331_v48  ;;  %1642 = vmatpush1.bf16.msra.mxu1 %v4335_v51 }
 0x114   :  { %1602 = vmatprep.subr.bf16.mxu0 %v4337_v52  ;;  %1643 = vmatprep.subr.bf16.mxu1 %v4340_v57  ;;  %v6473_v57 = vld [vmem:[#allocation75_spill] sm:$0xff] }
 0x115   :  { %v6482_v52 = vld [vmem:[#allocation79_spill] sm:$0xff] }
 0x117   :  { %1603 = vmatpush1.bf16.msra.mxu0 %v4345_v59  ;;  %1644 = vmatpush1.bf16.msra.mxu1 %v4351_v60  ;;  %v6469_v59 = vld [vmem:[#allocation72_spill] sm:$0xff] }
 0x118   :  { %1604 = vmatprep.subr.bf16.mxu0 %v4353_v61  ;;  %1645 = vmatprep.subr.bf16.mxu1 %v4356_v62  ;;  %v6465_v62 = vld [vmem:[#allocation70_spill] sm:$0xff]  ;;  %v6466_v61 = vld [vmem:[#allocation71_spill] sm:$0xff] }
 0x11b   :  { %1605 = vmatpush1.bf16.msra.mxu0 %v4361_v58  ;;  %1646 = vmatpush1.bf16.msra.mxu1 %v4365_v12 }
 0x11c   :  { %1606 = vmatprep.subr.bf16.mxu0 %v4367_v13  ;;  %1647 = vmatprep.subr.bf16.mxu1 %v4370_v14 }
 0x11f   :  { %1607 = vmatpush1.bf16.msra.mxu0 %v4373_v22  ;;  %1648 = vmatpush1.bf16.msra.mxu1 %v4377_v25  ;;  %v4707_v25 = vld [vmem:[#allocation7] sm:$0xff] }
 0x120   :  { %1608 = vmatprep.subr.bf16.mxu0 %v4379_v26  ;;  %1649 = vmatprep.subr.bf16.mxu1 %v4382_v29  ;;  %v130_v26 = vsub.s32 2, %v4698_v21  ;;  %v6458_v29 = vld [vmem:[#allocation64_spill] sm:$0xff] }
 0x123   :  { %1609 = vmatpush1.bf16.msra.mxu0 %v4385_v38  ;;  %1650 = vmatpush1.bf16.msra.mxu1 %v6452_v55  ;;  %v122_v38 = vsub.s32 0, %v4698_v21  ;;  %v134_v55 = vsub.s32 3, %v4698_v21 }
 0x124   :  { %1610 = vmatprep.subr.bf16.mxu0 %v6453_v4  ;;  %1651 = vmatprep.subr.bf16.mxu1 %v6454_v6  ;;  %v126_v6 = vsub.s32 1, %v4698_v21  ;;  %v6460_v4 = vld [vmem:[#allocation66_spill] sm:$0xff] }
 0x125   :  { %v4720_v22 = vrot.slane %v4707_v25, %v122_v38 }
 0x127   :  { %1611 = vmatpush1.bf16.msra.mxu0 %v6455_v30  ;;  %1652 = vmatpush1.bf16.msra.mxu1 %v6456_v33  ;;  %v6461_v30 = vld [vmem:[#allocation67_spill] sm:$0xff] }
 0x128   :  { %1612 = vmatprep.subr.bf16.mxu0 %v6457_v34  ;;  %1653 = vmatprep.subr.bf16.mxu1 %v6458_v29  ;;  %v4716_v34 = vrot.slane %v4707_v25, %v130_v26  ;;  %v6462_v29 = vld [vmem:[#allocation68_spill] sm:$0xff]  ;;  %v6463_v26 = vld [vmem:[#allocation69_spill] sm:$0xff] }
 0x12b   :  { %1613 = vmatpush1.bf16.msra.mxu0 %v6459_v15  ;;  %1654 = vmatpush1.bf16.msra.mxu1 %v6460_v4  ;;  %v4727_v15 = vrot.slane %v4707_v25, %v134_v55  ;;  %v4730_v4 = vrot.slane %v4707_v25, %v126_v6 }
 0x12c   :  { %1614 = vmatprep.subr.bf16.mxu0 %v6461_v30  ;;  %1655 = vmatprep.subr.bf16.mxu1 %v6462_v29 }
 0x12d   :  { %v4713_v33 = vpop.f32.mrb[0].mxu0  ;;  %v4724_v13 = vpop.f32.mrb[0].mxu1 }
 0x12e   :  { %v4722_v14 = vpop.f32.mrb[1].mxu0  ;;  %v4732_v12 = vpop.f32.mrb[1].mxu1 }
 0x12f   :  { %v356_v30 = vpop.f32.mrb[2].mxu0  ;;  %1615 = vmatpush1.bf16.msra.mxu0 %v6463_v26  ;;  %v429_v58 = vpop.f32.mrb[2].mxu1  ;;  %1656 = vmatpush1.bf16.msra.mxu1 %v6465_v62 }
 0x130   :  { %v4736_v29 = vadd.f32 %v356_v30, %v4720_v22  ;;  %v358_v38 = vpop.f32.mrb[3].mxu0  ;;  %1616 = vmatprep.subr.bf16.mxu0 %v6466_v61  ;;  %v4744_v6 = vadd.f32 %v429_v58, %v4716_v34  ;;  %v431_v60 = vpop.f32.mrb[3].mxu1  ;;  %1657 = vmatprep.subr.bf16.mxu1 %v6469_v59  ;;  %v6471_v30 = vld [vmem:[#allocation73_spill] sm:$0xff]  ;;  %v6474_v61 = vld [vmem:[#allocation76_spill] sm:$0xff] }
 0x131   :  { %v4741_v55 = vadd.f32 %v358_v38, %v4730_v4  ;;  %v4748_v26 = vadd.f32 %v431_v60, %v4727_v15 }
 0x132   :  { %6464 = vst [vmem:[#allocation143_spill] sm:$0xff] %v4736_v29  ;;  %6468 = vst [vmem:[#allocation145_spill] sm:$0xff] %v4744_v6  ;;  %v6472_v29 = vld [vmem:[#allocation74_spill] sm:$0xff] }
 0x133   :  { %6467 = vst [vmem:[#allocation144_spill] sm:$0xff] %v4741_v55  ;;  %6470 = vst [vmem:[#allocation146_spill] sm:$0xff] %v4748_v26  ;;  %1617 = vmatpush1.bf16.msra.mxu0 %v6471_v30  ;;  %1658 = vmatpush1.bf16.msra.mxu1 %v6472_v29  ;;  %v6478_v30 = vld [vmem:[#allocation77_spill] sm:$0xff] }
 0x134   :  { %1618 = vmatprep.subr.bf16.mxu0 %v6473_v57  ;;  %1659 = vmatprep.subr.bf16.mxu1 %v6474_v61 }
 0x135   :  { %v362_v62 = vpop.f32.mrb[4].mxu0  ;;  %v435_v55 = vpop.f32.mrb[4].mxu1 }
 0x136   :  { %v4755_v38 = vadd.f32 %v362_v62, %v4720_v22  ;;  %v364_v58 = vpop.f32.mrb[5].mxu0  ;;  %v4761_v60 = vadd.f32 %v435_v55, %v4716_v34  ;;  %v437_v26 = vpop.f32.mrb[5].mxu1 }
 0x137   :  { %v4758_v6 = vadd.f32 %v364_v58, %v4730_v4  ;;  %v366_v59 = vpop.f32.mrb[6].mxu0  ;;  %1619 = vmatpush1.bf16.msra.mxu0 %v6478_v30  ;;  %v4768_v61 = vadd.f32 %v437_v26, %v4727_v15  ;;  %v439_v62 = vpop.f32.mrb[6].mxu1 }
 0x138   :  { %6475 = vst [vmem:[#allocation147_spill] sm:$0xff] %v4755_v38  ;;  %6477 = vst [vmem:[#allocation149_spill] sm:$0xff] %v4761_v60  ;;  %v4765_v57 = vadd.f32 %v366_v59, %v4720_v22  ;;  %v368_v29 = vpop.f32.mrb[7].mxu0  ;;  %v6481_v38 = vld [vmem:[#allocation78_spill] sm:$0xff]  ;;  %1670 = vmatprep.subr.bf16.mxu0 %v6482_v52  ;;  %v4776_v55 = vadd.f32 %v439_v62, %v4716_v34  ;;  %v6485_v60 = vld [vmem:[#allocation80_spill] sm:$0xff] }
 0x139   :  { %6476 = vst [vmem:[#allocation148_spill] sm:$0xff] %v4758_v6  ;;  %6480 = vst [vmem:[#allocation151_spill] sm:$0xff] %v4768_v61  ;;  %1660 = vmatpush1.bf16.msra.mxu1 %v6481_v38  ;;  %v4773_v58 = vadd.f32 %v368_v29, %v4730_v4  ;;  %v441_v6 = vpop.f32.mrb[7].mxu1 }
 0x13a   :  { %6479 = vst [vmem:[#allocation150_spill] sm:$0xff] %v4765_v57  ;;  %6484 = vst [vmem:[#allocation153_spill] sm:$0xff] %v4776_v55  ;;  %1711 = vmatprep.subr.bf16.mxu1 %v6485_v60  ;;  %v4780_v59 = vadd.f32 %v441_v6, %v4727_v15 }
 0x13b   :  { %6483 = vst [vmem:[#allocation152_spill] sm:$0xff] %v4773_v58 }
 0x13c   :  { %6486 = vst [vmem:[#allocation154_spill] sm:$0xff] %v4780_v59 }
 0x13d   :  { %v372_v57 = vpop.f32.mrb[8].mxu0  ;;  %v445_v38 = vpop.f32.mrb[8].mxu1 }
 0x13e   :  { %v4783_v26 = vadd.f32 %v372_v57, %v4720_v22  ;;  %v374_v61 = vpop.f32.mrb[9].mxu0  ;;  %v4789_v58 = vadd.f32 %v445_v38, %v4716_v34  ;;  %v447_v62 = vpop.f32.mrb[9].mxu1 }
 0x13f   :  { %v4786_v52 = vadd.f32 %v374_v61, %v4730_v4  ;;  %v376_v29 = vpop.f32.mrb[10].mxu0  ;;  %v4795_v6 = vadd.f32 %v447_v62, %v4727_v15  ;;  %v449_v59 = vpop.f32.mrb[10].mxu1 }
 0x140   :  { %6487 = vst [vmem:[#allocation155_spill] sm:$0xff] %v4783_v26  ;;  %6489 = vst [vmem:[#allocation157_spill] sm:$0xff] %v4789_v58  ;;  %v4792_v55 = vadd.f32 %v376_v29, %v4720_v22  ;;  %v378_v60 = vpop.f32.mrb[11].mxu0  ;;  %v4801_v26 = vadd.f32 %v449_v59, %v4716_v34  ;;  %v451_v61 = vpop.f32.mrb[11].mxu1 }
 0x141   :  { %6488 = vst [vmem:[#allocation156_spill] sm:$0xff] %v4786_v52  ;;  %6491 = vst [vmem:[#allocation159_spill] sm:$0xff] %v4795_v6  ;;  %v4798_v57 = vadd.f32 %v378_v60, %v4730_v4  ;;  %v4804_v52 = vadd.f32 %v451_v61, %v4727_v15 }
 0x142   :  { %6490 = vst [vmem:[#allocation158_spill] sm:$0xff] %v4792_v55  ;;  %6493 = vst [vmem:[#allocation161_spill] sm:$0xff] %v4801_v26 }
 0x143   :  { %6492 = vst [vmem:[#allocation160_spill] sm:$0xff] %v4798_v57  ;;  %6494 = vst [vmem:[#allocation162_spill] sm:$0xff] %v4804_v52 }
 0x145   :  { %v382_v38 = vpop.f32.mrb[12].mxu0  ;;  %v455_v55 = vpop.f32.mrb[12].mxu1 }
 0x146   :  { %v4807_v58 = vadd.f32 %v382_v38, %v4720_v22  ;;  %v384_v29 = vpop.f32.mrb[13].mxu0  ;;  %v4813_v60 = vadd.f32 %v455_v55, %v4716_v34  ;;  %v457_v57 = vpop.f32.mrb[13].mxu1  ;;  %v138_v55 = vsub.s32 4, %v4698_v21 }
 0x147   :  { %v4810_v62 = vadd.f32 %v384_v29, %v4730_v4  ;;  %v386_v6 = vpop.f32.mrb[14].mxu0  ;;  %v4819_v61 = vadd.f32 %v457_v57, %v4727_v15  ;;  %v459_v52 = vpop.f32.mrb[14].mxu1  ;;  %v142_v57 = vsub.s32 5, %v4698_v21 }
 0x148   :  { %6495 = vst [vmem:[#allocation163_spill] sm:$0xff] %v4807_v58  ;;  %6497 = vst [vmem:[#allocation165_spill] sm:$0xff] %v4813_v60  ;;  %v4816_v59 = vadd.f32 %v386_v6, %v4720_v22  ;;  %v388_v26 = vpop.f32.mrb[15].mxu0  ;;  %v4825_v58 = vadd.f32 %v459_v52, %v4716_v34  ;;  %v461_v29 = vpop.f32.mrb[15].mxu1  ;;  %v150_v6 = vsub.s32 7, %v4698_v21  ;;  %v4840_v52 = vrot.slane %v4707_v25, %v138_v55 }
 0x149   :  { %6496 = vst [vmem:[#allocation164_spill] sm:$0xff] %v4810_v62  ;;  %6499 = vst [vmem:[#allocation167_spill] sm:$0xff] %v4819_v61  ;;  %v4822_v38 = vadd.f32 %v388_v26, %v4730_v4  ;;  %v146_v62 = vsub.s32 6, %v4698_v21  ;;  %v4830_v60 = vadd.f32 %v461_v29, %v4727_v15  ;;  %v4850_v29 = vrot.slane %v4707_v25, %v142_v57 }
 0x14a   :  { %6498 = vst [vmem:[#allocation166_spill] sm:$0xff] %v4816_v59  ;;  %6501 = vst [vmem:[#allocation169_spill] sm:$0xff] %v4825_v58  ;;  %v4847_v61 = vrot.slane %v4707_v25, %v150_v6 }
 0x14b   :  { %6500 = vst [vmem:[#allocation168_spill] sm:$0xff] %v4822_v38  ;;  %6502 = vst [vmem:[#allocation170_spill] sm:$0xff] %v4830_v60  ;;  %v4837_v26 = vrot.slane %v4707_v25, %v146_v62 }
 0x14d   :  { %v4834_v59 = vpop.f32.mrb[16].mxu0  ;;  %v4844_v58 = vpop.f32.mrb[16].mxu1 }
 0x14e   :  { %v4842_v38 = vpop.f32.mrb[17].mxu0  ;;  %v4852_v21 = vpop.f32.mrb[17].mxu1 }
 0x14f   :  { %v502_v60 = vpop.f32.mrb[18].mxu0  ;;  %v575_v51 = vpop.f32.mrb[18].mxu1 }
 0x150   :  { %v4855_v30 = vadd.f32 %v502_v60, %v4840_v52  ;;  %v504_v62 = vpop.f32.mrb[19].mxu0  ;;  %v4861_v48 = vadd.f32 %v575_v51, %v4837_v26  ;;  %v577_v47 = vpop.f32.mrb[19].mxu1 }
 0x151   :  { %v4858_v55 = vadd.f32 %v504_v62, %v4850_v29  ;;  %v4864_v6 = vadd.f32 %v577_v47, %v4847_v61 }
 0x152   :  { %6503 = vst [vmem:[#allocation171_spill] sm:$0xff] %v4855_v30  ;;  %6505 = vst [vmem:[#allocation173_spill] sm:$0xff] %v4861_v48 }
 0x153   :  { %6504 = vst [vmem:[#allocation172_spill] sm:$0xff] %v4858_v55  ;;  %6506 = vst [vmem:[#allocation174_spill] sm:$0xff] %v4864_v6 }
 0x155   :  { %v508_v25 = vpop.f32.mrb[20].mxu0  ;;  %v581_v43 = vpop.f32.mrb[20].mxu1 }
 0x156   :  { %v4867_v57 = vadd.f32 %v508_v25, %v4840_v52  ;;  %v510_v44 = vpop.f32.mrb[21].mxu0  ;;  %v4873_v62 = vadd.f32 %v581_v43, %v4837_v26  ;;  %v583_v55 = vpop.f32.mrb[21].mxu1 }
 0x157   :  { %v4870_v60 = vadd.f32 %v510_v44, %v4850_v29  ;;  %v512_v30 = vpop.f32.mrb[22].mxu0  ;;  %v4879_v47 = vadd.f32 %v583_v55, %v4847_v61  ;;  %v585_v6 = vpop.f32.mrb[22].mxu1 }
 0x158   :  { %6507 = vst [vmem:[#allocation175_spill] sm:$0xff] %v4867_v57  ;;  %6509 = vst [vmem:[#allocation177_spill] sm:$0xff] %v4873_v62  ;;  %v4876_v51 = vadd.f32 %v512_v30, %v4840_v52  ;;  %v514_v48 = vpop.f32.mrb[23].mxu0  ;;  %v4885_v57 = vadd.f32 %v585_v6, %v4837_v26  ;;  %v587_v44 = vpop.f32.mrb[23].mxu1 }
 0x159   :  { %6508 = vst [vmem:[#allocation176_spill] sm:$0xff] %v4870_v60  ;;  %6511 = vst [vmem:[#allocation179_spill] sm:$0xff] %v4879_v47  ;;  %v4882_v25 = vadd.f32 %v514_v48, %v4850_v29  ;;  %v4888_v60 = vadd.f32 %v587_v44, %v4847_v61 }
 0x15a   :  { %6510 = vst [vmem:[#allocation178_spill] sm:$0xff] %v4876_v51  ;;  %6513 = vst [vmem:[#allocation181_spill] sm:$0xff] %v4885_v57 }
 0x15b   :  { %6512 = vst [vmem:[#allocation180_spill] sm:$0xff] %v4882_v25  ;;  %6514 = vst [vmem:[#allocation182_spill] sm:$0xff] %v4888_v60 }
 0x15d   :  { %v518_v43 = vpop.f32.mrb[24].mxu0  ;;  %v591_v51 = vpop.f32.mrb[24].mxu1 }
 0x15e   :  { %v4891_v62 = vadd.f32 %v518_v43, %v4840_v52  ;;  %v520_v30 = vpop.f32.mrb[25].mxu0  ;;  %v4897_v48 = vadd.f32 %v591_v51, %v4837_v26  ;;  %v593_v25 = vpop.f32.mrb[25].mxu1 }
 0x15f   :  { %v4894_v55 = vadd.f32 %v520_v30, %v4850_v29  ;;  %v522_v47 = vpop.f32.mrb[26].mxu0  ;;  %v4903_v44 = vadd.f32 %v593_v25, %v4847_v61  ;;  %v595_v60 = vpop.f32.mrb[26].mxu1 }
 0x160   :  { %6515 = vst [vmem:[#allocation183_spill] sm:$0xff] %v4891_v62  ;;  %6517 = vst [vmem:[#allocation185_spill] sm:$0xff] %v4897_v48  ;;  %v4900_v6 = vadd.f32 %v522_v47, %v4840_v52  ;;  %v524_v57 = vpop.f32.mrb[27].mxu0  ;;  %v4909_v62 = vadd.f32 %v595_v60, %v4837_v26  ;;  %v597_v30 = vpop.f32.mrb[27].mxu1 }
 0x161   :  { %6516 = vst [vmem:[#allocation184_spill] sm:$0xff] %v4894_v55  ;;  %6519 = vst [vmem:[#allocation187_spill] sm:$0xff] %v4903_v44  ;;  %v4906_v43 = vadd.f32 %v524_v57, %v4850_v29  ;;  %v4912_v55 = vadd.f32 %v597_v30, %v4847_v61 }
 0x162   :  { %6518 = vst [vmem:[#allocation186_spill] sm:$0xff] %v4900_v6  ;;  %6521 = vst [vmem:[#allocation189_spill] sm:$0xff] %v4909_v62 }
 0x163   :  { %6520 = vst [vmem:[#allocation188_spill] sm:$0xff] %v4906_v43  ;;  %6522 = vst [vmem:[#allocation190_spill] sm:$0xff] %v4912_v55 }
 0x165   :  { %v528_v51 = vpop.f32.mrb[28].mxu0  ;;  %v601_v6 = vpop.f32.mrb[28].mxu1 }
 0x166   :  { %v4915_v48 = vadd.f32 %v528_v51, %v4840_v52  ;;  %v530_v47 = vpop.f32.mrb[29].mxu0  ;;  %v4921_v57 = vadd.f32 %v601_v6, %v4837_v26  ;;  %v603_v43 = vpop.f32.mrb[29].mxu1  ;;  %v353_v6 = vadd.f32 %v4713_v33, %v4720_v22 }
 0x167   :  { %v4918_v25 = vadd.f32 %v530_v47, %v4850_v29  ;;  %v532_v44 = vpop.f32.mrb[30].mxu0  ;;  %v4927_v30 = vadd.f32 %v603_v43, %v4847_v61  ;;  %v605_v55 = vpop.f32.mrb[30].mxu1  ;;  %v426_v43 = vadd.f32 %v4724_v13, %v4716_v34  ;;  %v501_v13 = vadd.f32 %v4842_v38, %v4850_v29 }
 0x168   :  { %6523 = vst [vmem:[#allocation191_spill] sm:$0xff] %v4915_v48  ;;  %6525 = vst [vmem:[#allocation193_spill] sm:$0xff] %v4921_v57  ;;  %v4924_v60 = vadd.f32 %v532_v44, %v4840_v52  ;;  %v534_v62 = vpop.f32.mrb[31].mxu0  ;;  %v4933_v48 = vadd.f32 %v605_v55, %v4837_v26  ;;  %v607_v47 = vpop.f32.mrb[31].mxu1  ;;  %v355_v44 = vadd.f32 %v4722_v14, %v4730_v4 }
 0x169   :  { %6524 = vst [vmem:[#allocation192_spill] sm:$0xff] %v4918_v25  ;;  %6527 = vst [vmem:[#allocation195_spill] sm:$0xff] %v4927_v30  ;;  %v4930_v51 = vadd.f32 %v534_v62, %v4850_v29  ;;  %v4936_v25 = vadd.f32 %v607_v47, %v4847_v61  ;;  %v428_v62 = vadd.f32 %v4732_v12, %v4727_v15 }
 0x16a   :  { %6526 = vst [vmem:[#allocation194_spill] sm:$0xff] %v4924_v60  ;;  %6529 = vst [vmem:[#allocation197_spill] sm:$0xff] %v4933_v48  ;;  %v499_v12 = vadd.f32 %v4834_v59, %v4840_v52  ;;  %v572_v34 = vadd.f32 %v4844_v58, %v4837_v26  ;;  %v574_v15 = vadd.f32 %v4852_v21, %v4847_v61 }
 0x16b   :  { %6528 = vst [vmem:[#allocation196_spill] sm:$0xff] %v4930_v51  ;;  %6530 = vst [vmem:[#allocation198_spill] sm:$0xff] %v4936_v25 }
 0x18d   :  { %v1412_v60 = vpop.f32.mrb[32].mxu0  ;;  %v1453_v55 = vpop.f32.mrb[32].mxu1 }
 0x18e   :  { %v1542_v51 = vadd.f32 %v1412_v60, %v353_v6  ;;  %v1414_v48 = vpop.f32.mrb[33].mxu0  ;;  %v1544_v30 = vadd.f32 %v1453_v55, %v426_v43  ;;  %v1455_v47 = vpop.f32.mrb[33].mxu1 }
 0x18f   :  { %v1543_v57 = vadd.f32 %v1414_v48, %v355_v44  ;;  %v1416_v25 = vpop.f32.mrb[34].mxu0  ;;  %v1545_v40 = vadd.f32 %v1455_v47, %v428_v62  ;;  %v1457_v22 = vpop.f32.mrb[34].mxu1 }
 0x190   :  { %v1417_v39 = vpop.f32.mrb[35].mxu0  ;;  %v1458_v33 = vpop.f32.mrb[35].mxu1  ;;  %v1558_v36 = vmul.f32 0.5, %v1544_v30  ;;  %v1550_v4 = vmul.f32 0.5, %v1542_v51 }
 0x191   :  { %v1559_v14 = vmul.f32 0.5, %v1545_v40  ;;  %v1551_v35 = vmul.f32 0.5, %v1543_v57 }
 0x192   :  { %3777 = vtanh.f32 %v1558_v36 }
 0x193   :  { %3779 = vtanh.f32 %v1559_v14 }
 0x194   :  { %3781 = vtanh.f32 %v1550_v4 }
 0x195   :  { %3783 = vtanh.f32 %v1551_v35 }
 0x19c   :  { %v3778_v30 = vpop.eup %3777 }
 0x19d   :  { %v3780_v38 = vpop.eup %3779  ;;  %v1562_v6 = vmul.f32 0.5, %v3778_v30 }
 0x19e   :  { %v3782_v58 = vpop.eup %3781  ;;  %v1563_v61 = vmul.f32 0.5, %v3780_v38 }
 0x19f   :  { %v3784_v26 = vpop.eup %3783  ;;  %v1554_v43 = vmul.f32 0.5, %v3782_v58  ;;  %v1564_v55 = vadd.f32 0.5, %v1562_v6  ;;  %v6531_v58 = vld [vmem:[#allocation81_spill] sm:$0xff]  ;;  %v6533_v6 = vld [vmem:[#allocation83_spill] sm:$0xff] }
 0x1a0   :  { %v1555_v62 = vmul.f32 0.5, %v3784_v26  ;;  %v1565_v47 = vadd.f32 0.5, %v1563_v61  ;;  %v6532_v26 = vld [vmem:[#allocation82_spill] sm:$0xff]  ;;  %v6535_v61 = vld [vmem:[#allocation85_spill] sm:$0xff] }
 0x1a1   :  { %v1556_v22 = vadd.f32 0.5, %v1554_v43  ;;  %v6537_v43 = vld [vmem:[#allocation87_spill] sm:$0xff] }
 0x1a2   :  { %v1557_v14 = vadd.f32 0.5, %v1555_v62  ;;  %v6538_v62 = vld [vmem:[#allocation88_spill] sm:$0xff] }
 0x1cd   :  { %v1494_v39 = vpop.f32.mrb[36].mxu0  ;;  %v1535_v48 = vpop.f32.mrb[36].mxu1 }
 0x1ce   :  { %v1546_v40 = vadd.f32 %v1494_v39, %v499_v12  ;;  %v1496_v25 = vpop.f32.mrb[37].mxu0  ;;  %v1548_v36 = vadd.f32 %v1535_v48, %v572_v34  ;;  %v1537_v60 = vpop.f32.mrb[37].mxu1  ;;  %v1576_v12 = vmul.f32 0.0, %v1564_v55  ;;  %v1577_v34 = vmul.f32 0.0, %v1565_v47  ;;  %v6539_v55 = vld [vmem:[#allocation89_spill] sm:$0xff]  ;;  %v6540_v47 = vld [vmem:[#allocation90_spill] sm:$0xff] }
 0x1cf   :  { %v1547_v57 = vadd.f32 %v1496_v25, %v501_v13  ;;  %v1498_v35 = vpop.f32.mrb[38].mxu0  ;;  %v1549_v59 = vadd.f32 %v1537_v60, %v574_v15  ;;  %v1539_v51 = vpop.f32.mrb[38].mxu1 }
 0x1d0   :  { %3785 = vtanh.f32 %v1546_v40  ;;  %v1499_v52 = vpop.f32.mrb[39].mxu0  ;;  %v1540_v29 = vpop.f32.mrb[39].mxu1  ;;  %v1568_v44 = vmul.f32 0.5, %v1548_v36 }
 0x1d1   :  { %3787 = vtanh.f32 %v1547_v57  ;;  %v1569_v21 = vmul.f32 0.5, %v1549_v59 }
 0x1d2   :  { %3789 = vtanh.f32 %v1568_v44  ;;  %v6534_v44 = vld [vmem:[#allocation84_spill] sm:$0xff] }
 0x1d3   :  { %3791 = vtanh.f32 %v1569_v21  ;;  %v6536_v21 = vld [vmem:[#allocation86_spill] sm:$0xff] }
 0x1da   :  { %v3786_v33 = vpop.eup %3785 }
 0x1db   :  { %v3788_v4 = vpop.eup %3787  ;;  %v1578_v13 = vmul.f32 %v3786_v33, %v1556_v22  ;;  %v6541_v22 = vld [vmem:[#allocation91_spill] sm:$0xff]  ;;  %v6542_v33 = vld [vmem:[#allocation92_spill] sm:$0xff] }
 0x1dc   :  { %v1579_v39 = vmul.f32 %v3788_v4, %v1557_v14  ;;  %v3790_v48 = vpop.eup %3789  ;;  %v6543_v14 = vld [vmem:[#allocation93_spill] sm:$0xff]  ;;  %v6544_v4 = vld [vmem:[#allocation94_spill] sm:$0xff] }
 0x1dd   :  { %v4954_v15 = vadd.f32 %v1578_v13, %v1576_v12  ;;  %v3792_v25 = vpop.eup %3791  ;;  %v1572_v36 = vmul.f32 0.5, %v3790_v48  ;;  %v6545_v12 = vld [vmem:[#allocation95_spill] sm:$0xff]  ;;  %v6546_v13 = vld [vmem:[#allocation96_spill] sm:$0xff] }
 0x1de   :  { %v4956_v40 = vadd.f32 %v1579_v39, %v1577_v34  ;;  %v1573_v57 = vmul.f32 0.5, %v3792_v25  ;;  %v6547_v34 = vld [vmem:[#allocation97_spill] sm:$0xff]  ;;  %v6548_v39 = vld [vmem:[#allocation98_spill] sm:$0xff]  ;;  %v6549_v48 = vld [vmem:[#allocation99_spill] sm:$0xff] }
 0x1df   :  { %3793 = vtanh.f32 %v4954_v15  ;;  %v1574_v60 = vadd.f32 0.5, %v1572_v36  ;;  %v6550_v25 = vld [vmem:[#allocation100_spill] sm:$0xff]  ;;  %v6551_v36 = vld [vmem:[#allocation101_spill] sm:$0xff] }
 0x1e0   :  { %3795 = vtanh.f32 %v4956_v40  ;;  %v1575_v30 = vadd.f32 0.5, %v1573_v57  ;;  %v6552_v57 = vld [vmem:[#allocation102_spill] sm:$0xff] }
 0x1e9   :  { %v3794_v35 = vpop.eup %3793 }
 0x1ea   :  { %v3796_v59 = vpop.eup %3795  ;;  %v1584_v52 = vmul.f32 %v3794_v35, %v1574_v60  ;;  %v6553_v60 = vld [vmem:[#allocation103_spill] sm:$0xff]  ;;  %v6554_v35 = vld [vmem:[#allocation104_spill] sm:$0xff] }
 0x1eb   :  { %v1585_v51 = vmul.f32 %v3796_v59, %v1575_v30  ;;  %v6555_v30 = vld [vmem:[#allocation105_spill] sm:$0xff]  ;;  %v6556_v59 = vld [vmem:[#allocation106_spill] sm:$0xff] }
 0x1ec   :  { %v4960_v29 = vpack.c.bf16 %v1584_v52, %v1584_v52  ;;  %v6557_v52 = vld [vmem:[#allocation107_spill] sm:$0xff] }
 0x1ed   :  { %v1587_v38 = vpack.c.bf16 %v1585_v51, %v1585_v51  ;;  %v6558_v51 = vld [vmem:[#allocation108_spill] sm:$0xff] }
 0x1ef   :  { %1620 = vmatprep.mubr.bf16.mxu0 %v1587_v38  ;;  %1661 = vmatprep.mubr.bf16.mxu1 %v1587_v38 }
 0x1f0   :  { %1621 = vmatmul.mubr.bf16.vlgmr.msra.gmra.mrb[40].mxu0 %v4960_v29  ;;  %1662 = vmatmul.mubr.bf16.vlgmr.msra.gmra.mrb[40].mxu1 %v4960_v29 }
 0x1f1   :  { %1671 = vmatpush1.bf16.msra.mxu0 %v6531_v58  ;;  %1712 = vmatpush1.bf16.msra.mxu1 %v6532_v26 }
 0x1f2   :  { %1702 = vmatprep.mubr.bf16.mxu0 %v1587_v38  ;;  %1743 = vmatprep.mubr.bf16.mxu1 %v1587_v38  ;;  %v6559_v38 = vld [vmem:[#allocation109_spill] sm:$0xff] }
 0x1f3   :  { %1672 = vmatprep.subr.bf16.mxu0 %v6533_v6  ;;  %1713 = vmatprep.subr.bf16.mxu1 %v6534_v44 }
 0x1f5   :  { %1673 = vmatpush1.bf16.msra.mxu0 %v6535_v61  ;;  %1714 = vmatpush1.bf16.msra.mxu1 %v6536_v21 }
 0x1f6   :  { %1674 = vmatprep.subr.bf16.mxu0 %v6537_v43  ;;  %1715 = vmatprep.subr.bf16.mxu1 %v6538_v62 }
 0x1f9   :  { %1675 = vmatpush1.bf16.msra.mxu0 %v6539_v55  ;;  %1716 = vmatpush1.bf16.msra.mxu1 %v6540_v47 }
 0x1fa   :  { %1676 = vmatprep.subr.bf16.mxu0 %v6541_v22  ;;  %1717 = vmatprep.subr.bf16.mxu1 %v6542_v33 }
 0x1fd   :  { %1677 = vmatpush1.bf16.msra.mxu0 %v6543_v14  ;;  %1718 = vmatpush1.bf16.msra.mxu1 %v6544_v4 }
 0x1fe   :  { %1678 = vmatprep.subr.bf16.mxu0 %v6545_v12  ;;  %1719 = vmatprep.subr.bf16.mxu1 %v6546_v13 }
 0x201   :  { %1679 = vmatpush1.bf16.msra.mxu0 %v6547_v34  ;;  %1720 = vmatpush1.bf16.msra.mxu1 %v6548_v39 }
 0x202   :  { %1680 = vmatprep.subr.bf16.mxu0 %v6549_v48  ;;  %1721 = vmatprep.subr.bf16.mxu1 %v6550_v25  ;;  %v6560_v48 = vld [vmem:[#allocation110_spill] sm:$0xff]  ;;  %v6561_v25 = vld [vmem:[#allocation111_spill] sm:$0xff] }
 0x205   :  { %1681 = vmatpush1.bf16.msra.mxu0 %v6551_v36  ;;  %1722 = vmatpush1.bf16.msra.mxu1 %v6552_v57  ;;  %v6562_v36 = vld [vmem:[#allocation112_spill] sm:$0xff]  ;;  %v6563_v57 = vld [vmem:[#allocation113_spill] sm:$0xff] }
 0x206   :  { %1682 = vmatprep.subr.bf16.mxu0 %v6553_v60  ;;  %1723 = vmatprep.subr.bf16.mxu1 %v6554_v35  ;;  %v6564_v60 = vld [vmem:[#allocation114_spill] sm:$0xff]  ;;  %v6565_v35 = vld [vmem:[#allocation115_spill] sm:$0xff] }
 0x209   :  { %1683 = vmatpush1.bf16.msra.mxu0 %v6555_v30  ;;  %1724 = vmatpush1.bf16.msra.mxu1 %v6556_v59  ;;  %v6566_v30 = vld [vmem:[#allocation116_spill] sm:$0xff]  ;;  %v6567_v59 = vld [vmem:[#allocation117_spill] sm:$0xff] }
 0x20a   :  { %1684 = vmatprep.subr.bf16.mxu0 %v6557_v52  ;;  %1725 = vmatprep.subr.bf16.mxu1 %v6558_v51  ;;  %v6568_v52 = vld [vmem:[#allocation118_spill] sm:$0xff]  ;;  %v6569_v51 = vld [vmem:[#allocation119_spill] sm:$0xff] }
 0x20d   :  { %1685 = vmatpush1.bf16.msra.mxu0 %v6559_v38  ;;  %1726 = vmatpush1.bf16.msra.mxu1 %v6560_v48  ;;  %v6570_v38 = vld [vmem:[#allocation120_spill] sm:$0xff]  ;;  %v6571_v48 = vld [vmem:[#allocation121_spill] sm:$0xff] }
 0x20e   :  { %1686 = vmatprep.subr.bf16.mxu0 %v6561_v25  ;;  %1727 = vmatprep.subr.bf16.mxu1 %v6562_v36  ;;  %v6572_v25 = vld [vmem:[#allocation122_spill] sm:$0xff]  ;;  %v6573_v36 = vld [vmem:[#allocation123_spill] sm:$0xff] }
 0x211   :  { %1687 = vmatpush1.bf16.msra.mxu0 %v6563_v57  ;;  %1728 = vmatpush1.bf16.msra.mxu1 %v6564_v60  ;;  %v6574_v57 = vld [vmem:[#allocation124_spill] sm:$0xff]  ;;  %v6575_v60 = vld [vmem:[#allocation125_spill] sm:$0xff] }
 0x212   :  { %1688 = vmatprep.subr.bf16.mxu0 %v6565_v35  ;;  %1729 = vmatprep.subr.bf16.mxu1 %v6566_v30  ;;  %v6576_v35 = vld [vmem:[#allocation126_spill] sm:$0xff]  ;;  %v6577_v30 = vld [vmem:[#allocation127_spill] sm:$0xff] }
 0x215   :  { %1689 = vmatpush1.bf16.msra.mxu0 %v6567_v59  ;;  %1730 = vmatpush1.bf16.msra.mxu1 %v6568_v52  ;;  %v6578_v59 = vld [vmem:[#allocation128_spill] sm:$0xff] }
 0x216   :  { %1690 = vmatprep.subr.bf16.mxu0 %v6569_v51  ;;  %1731 = vmatprep.subr.bf16.mxu1 %v6570_v38 }
 0x219   :  { %1691 = vmatpush1.bf16.msra.mxu0 %v6571_v48  ;;  %1732 = vmatpush1.bf16.msra.mxu1 %v6572_v25  ;;  %v6579_v48 = vld [vmem:[#allocation132_spill] sm:$0xff] }
 0x21a   :  { %1692 = vmatprep.subr.bf16.mxu0 %v6573_v36  ;;  %1733 = vmatprep.subr.bf16.mxu1 %v6574_v57 }
 0x21d   :  { %1693 = vmatpush1.bf16.msra.mxu0 %v6575_v60  ;;  %1734 = vmatpush1.bf16.msra.mxu1 %v6576_v35 }
 0x21e   :  { %1694 = vmatprep.subr.bf16.mxu0 %v6577_v30  ;;  %1735 = vmatprep.subr.bf16.mxu1 %v6578_v59 }
 0x221   :  { %1695 = vmatpush1.bf16.msra.mxu0 %v4605_v46  ;;  %1736 = vmatpush1.bf16.msra.mxu1 %v4609_v49 }
 0x222   :  { %1696 = vmatprep.subr.bf16.mxu0 %v4611_v50  ;;  %1737 = vmatprep.subr.bf16.mxu1 %v6579_v48 }
 0x225   :  { %1697 = vmatpush1.bf16.msra.mxu0 %v4617_v7  ;;  %1738 = vmatpush1.bf16.msra.mxu1 %v4621_v18 }
 0x226   :  { %1698 = vmatprep.subr.bf16.mxu0 %v4623_v17  ;;  %1739 = vmatprep.subr.bf16.mxu1 %v4626_v0 }
 0x229   :  { %1699 = vmatpush1.bf16.msra.mxu0 %v4629_v42  ;;  %1740 = vmatpush1.bf16.msra.mxu1 %v4633_v37 }
 0x22a   :  { %1700 = vmatprep.subr.bf16.mxu0 %v4635_v45  ;;  %1741 = vmatprep.subr.bf16.mxu1 %v4638_v5 }
 0x22d   :  { %1701 = vmatpush1.bf16.msra.mxu0 %v4641_v53  ;;  %1742 = vmatpush1.bf16.msra.mxu1 %v4645_v41  ;;  %v6632_v41 = vld [vmem:[#allocation173_spill] sm:$0xff] }
 0x22e   :  { %1798 = vmatprep.subr.bf16.mxu0 %v4208_v54  ;;  %1839 = vmatprep.subr.bf16.mxu1 %v4214_v56 }
 0x230   :  { %1703 = vmatmul.mubr.bf16.vlgmr.msra.gmra.mrb[44].mxu0 %v4960_v29  ;;  %1744 = vmatmul.mubr.bf16.vlgmr.msra.gmra.mrb[44].mxu1 %v4960_v29  ;;  %v6580_v29 = vld [vmem:[#allocation34_spill] sm:$0xff] }
 0x231   :  { %1799 = vmatpush1.bf16.msra.mxu0 %v4244_v63  ;;  %1840 = vmatpush1.bf16.msra.mxu1 %v4246_v1 }
 0x232   :  { %1800 = vmatprep.subr.bf16.mxu0 %v4248_v2  ;;  %1841 = vmatprep.subr.bf16.mxu1 %v4250_v3  ;;  %v6629_v3 = vld [vmem:[#allocation144_spill] sm:$0xff]  ;;  %v6630_v2 = vld [vmem:[#allocation146_spill] sm:$0xff] }
 0x235   :  { %1801 = vmatpush1.bf16.msra.mxu0 %v4257_v8  ;;  %1842 = vmatpush1.bf16.msra.mxu1 %v4261_v9  ;;  %v6628_v9 = vld [vmem:[#allocation145_spill] sm:$0xff] }
 0x236   :  { %1802 = vmatprep.subr.bf16.mxu0 %v4263_v10  ;;  %1843 = vmatprep.subr.bf16.mxu1 %v4266_v11  ;;  %v6581_v11 = vld [vmem:[#allocation35_spill] sm:$0xff] }
 0x237   :  { %v6627_v10 = vld [vmem:[#allocation143_spill] sm:$0xff] }
 0x239   :  { %1803 = vmatpush1.bf16.msra.mxu0 %v4271_v16  ;;  %1844 = vmatpush1.bf16.msra.mxu1 %v4275_v19  ;;  %v6582_v16 = vld [vmem:[#allocation36_spill] sm:$0xff]  ;;  %v6583_v19 = vld [vmem:[#allocation37_spill] sm:$0xff] }
 0x23a   :  { %1804 = vmatprep.subr.bf16.mxu0 %v4277_v20  ;;  %1845 = vmatprep.subr.bf16.mxu1 %v4280_v23  ;;  %v6584_v20 = vld [vmem:[#allocation38_spill] sm:$0xff]  ;;  %v6585_v23 = vld [vmem:[#allocation39_spill] sm:$0xff] }
 0x23d   :  { %1805 = vmatpush1.bf16.msra.mxu0 %v4285_v24  ;;  %1846 = vmatpush1.bf16.msra.mxu1 %v4291_v27  ;;  %v6586_v24 = vld [vmem:[#allocation40_spill] sm:$0xff]  ;;  %v6587_v27 = vld [vmem:[#allocation41_spill] sm:$0xff] }
 0x23e   :  { %1806 = vmatprep.subr.bf16.mxu0 %v4293_v28  ;;  %1847 = vmatprep.subr.bf16.mxu1 %v4296_v31  ;;  %v6588_v28 = vld [vmem:[#allocation42_spill] sm:$0xff]  ;;  %v6589_v31 = vld [vmem:[#allocation43_spill] sm:$0xff] }
 0x241   :  { %1807 = vmatpush1.bf16.msra.mxu0 %v4301_v32  ;;  %1848 = vmatpush1.bf16.msra.mxu1 %v6580_v29  ;;  %v6590_v32 = vld [vmem:[#allocation44_spill] sm:$0xff]  ;;  %v6591_v29 = vld [vmem:[#allocation45_spill] sm:$0xff] }
 0x242   :  { %1808 = vmatprep.subr.bf16.mxu0 %v6581_v11  ;;  %1849 = vmatprep.subr.bf16.mxu1 %v6582_v16  ;;  %v6592_v11 = vld [vmem:[#allocation46_spill] sm:$0xff]  ;;  %v6593_v16 = vld [vmem:[#allocation47_spill] sm:$0xff] }
 0x245   :  { %1809 = vmatpush1.bf16.msra.mxu0 %v6583_v19  ;;  %1850 = vmatpush1.bf16.msra.mxu1 %v6584_v20  ;;  %v6594_v19 = vld [vmem:[#allocation48_spill] sm:$0xff]  ;;  %v6595_v20 = vld [vmem:[#allocation49_spill] sm:$0xff] }
 0x246   :  { %1810 = vmatprep.subr.bf16.mxu0 %v6585_v23  ;;  %1851 = vmatprep.subr.bf16.mxu1 %v6586_v24  ;;  %v6596_v23 = vld [vmem:[#allocation50_spill] sm:$0xff]  ;;  %v6597_v24 = vld [vmem:[#allocation51_spill] sm:$0xff] }
 0x249   :  { %1811 = vmatpush1.bf16.msra.mxu0 %v6587_v27  ;;  %1852 = vmatpush1.bf16.msra.mxu1 %v6588_v28  ;;  %v6598_v27 = vld [vmem:[#allocation52_spill] sm:$0xff]  ;;  %v6599_v28 = vld [vmem:[#allocation53_spill] sm:$0xff] }
 0x24a   :  { %1812 = vmatprep.subr.bf16.mxu0 %v6589_v31  ;;  %1853 = vmatprep.subr.bf16.mxu1 %v6590_v32  ;;  %v6600_v31 = vld [vmem:[#allocation54_spill] sm:$0xff]  ;;  %v6601_v32 = vld [vmem:[#allocation55_spill] sm:$0xff] }
 0x24d   :  { %1813 = vmatpush1.bf16.msra.mxu0 %v6591_v29  ;;  %1854 = vmatpush1.bf16.msra.mxu1 %v6592_v11  ;;  %v6602_v29 = vld [vmem:[#allocation56_spill] sm:$0xff]  ;;  %v6603_v11 = vld [vmem:[#allocation57_spill] sm:$0xff] }
 0x24e   :  { %1814 = vmatprep.subr.bf16.mxu0 %v6593_v16  ;;  %1855 = vmatprep.subr.bf16.mxu1 %v6594_v19  ;;  %v6604_v16 = vld [vmem:[#allocation58_spill] sm:$0xff]  ;;  %v6605_v19 = vld [vmem:[#allocation59_spill] sm:$0xff] }
 0x251   :  { %1815 = vmatpush1.bf16.msra.mxu0 %v6595_v20  ;;  %1856 = vmatpush1.bf16.msra.mxu1 %v6596_v23  ;;  %v6606_v20 = vld [vmem:[#allocation60_spill] sm:$0xff]  ;;  %v6607_v23 = vld [vmem:[#allocation61_spill] sm:$0xff] }
 0x252   :  { %1816 = vmatprep.subr.bf16.mxu0 %v6597_v24  ;;  %1857 = vmatprep.subr.bf16.mxu1 %v6598_v27  ;;  %v6608_v24 = vld [vmem:[#allocation62_spill] sm:$0xff]  ;;  %v6609_v27 = vld [vmem:[#allocation63_spill] sm:$0xff] }
 0x255   :  { %1817 = vmatpush1.bf16.msra.mxu0 %v6599_v28  ;;  %1858 = vmatpush1.bf16.msra.mxu1 %v6600_v31  ;;  %v6610_v28 = vld [vmem:[#allocation64_spill] sm:$0xff]  ;;  %v6611_v31 = vld [vmem:[#allocation65_spill] sm:$0xff] }
 0x256   :  { %1818 = vmatprep.subr.bf16.mxu0 %v6601_v32  ;;  %1859 = vmatprep.subr.bf16.mxu1 %v6602_v29  ;;  %v6612_v32 = vld [vmem:[#allocation66_spill] sm:$0xff]  ;;  %v6613_v29 = vld [vmem:[#allocation67_spill] sm:$0xff] }
 0x259   :  { %1819 = vmatpush1.bf16.msra.mxu0 %v6603_v11  ;;  %1860 = vmatpush1.bf16.msra.mxu1 %v6604_v16  ;;  %v6614_v11 = vld [vmem:[#allocation68_spill] sm:$0xff]  ;;  %v6615_v16 = vld [vmem:[#allocation69_spill] sm:$0xff] }
 0x25a   :  { %1820 = vmatprep.subr.bf16.mxu0 %v6605_v19  ;;  %1861 = vmatprep.subr.bf16.mxu1 %v6606_v20  ;;  %v6616_v19 = vld [vmem:[#allocation70_spill] sm:$0xff]  ;;  %v6617_v20 = vld [vmem:[#allocation71_spill] sm:$0xff] }
 0x25d   :  { %1821 = vmatpush1.bf16.msra.mxu0 %v6607_v23  ;;  %1862 = vmatpush1.bf16.msra.mxu1 %v6608_v24  ;;  %v6618_v23 = vld [vmem:[#allocation72_spill] sm:$0xff]  ;;  %v6619_v24 = vld [vmem:[#allocation73_spill] sm:$0xff] }
 0x25e   :  { %1822 = vmatprep.subr.bf16.mxu0 %v6609_v27  ;;  %1863 = vmatprep.subr.bf16.mxu1 %v6610_v28  ;;  %v6620_v27 = vld [vmem:[#allocation74_spill] sm:$0xff]  ;;  %v6621_v28 = vld [vmem:[#allocation75_spill] sm:$0xff] }
 0x261   :  { %1823 = vmatpush1.bf16.msra.mxu0 %v6611_v31  ;;  %1864 = vmatpush1.bf16.msra.mxu1 %v6612_v32  ;;  %v6622_v31 = vld [vmem:[#allocation76_spill] sm:$0xff]  ;;  %v6623_v32 = vld [vmem:[#allocation77_spill] sm:$0xff] }
 0x262   :  { %1824 = vmatprep.subr.bf16.mxu0 %v6613_v29  ;;  %1865 = vmatprep.subr.bf16.mxu1 %v6614_v11  ;;  %v6624_v29 = vld [vmem:[#allocation78_spill] sm:$0xff]  ;;  %v6625_v11 = vld [vmem:[#allocation79_spill] sm:$0xff] }
 0x265   :  { %1825 = vmatpush1.bf16.msra.mxu0 %v6615_v16  ;;  %1866 = vmatpush1.bf16.msra.mxu1 %v6616_v19  ;;  %v6626_v16 = vld [vmem:[#allocation80_spill] sm:$0xff] }
 0x266   :  { %1826 = vmatprep.subr.bf16.mxu0 %v6617_v20  ;;  %1867 = vmatprep.subr.bf16.mxu1 %v6618_v23 }
 0x269   :  { %1827 = vmatpush1.bf16.msra.mxu0 %v6619_v24  ;;  %1868 = vmatpush1.bf16.msra.mxu1 %v6620_v27 }
 0x26a   :  { %1828 = vmatprep.subr.bf16.mxu0 %v6621_v28  ;;  %1869 = vmatprep.subr.bf16.mxu1 %v6622_v31 }
 0x26d   :  { %1829 = vmatpush1.bf16.msra.mxu0 %v6623_v32  ;;  %1870 = vmatpush1.bf16.msra.mxu1 %v6624_v29 }
 0x26e   :  { %1880 = vmatprep.subr.bf16.mxu0 %v6625_v11  ;;  %1921 = vmatprep.subr.bf16.mxu1 %v6626_v16 }
 0x2c3   :  { %v1622_v19 = vpop.f32.mrb[40].mxu0  ;;  %v1663_v20 = vpop.f32.mrb[40].mxu1 }
 0x2c4   :  { %v1752_v23 = vadd.f32 %v1622_v19, %v6627_v10  ;;  %v1754_v24 = vadd.f32 %v1663_v20, %v6628_v9  ;;  %v1624_v8 = vpop.f32.mrb[41].mxu0  ;;  %v1665_v27 = vpop.f32.mrb[41].mxu1  ;;  %v6631_v19 = vld [vmem:[#allocation171_spill] sm:$0xff] }
 0x2c5   :  { %v1753_v28 = vadd.f32 %v1624_v8, %v6629_v3  ;;  %v1755_v31 = vadd.f32 %v1665_v27, %v6630_v2  ;;  %v1626_v1 = vpop.f32.mrb[42].mxu0  ;;  %v1667_v32 = vpop.f32.mrb[42].mxu1 }
 0x2c6   :  { %v1627_v63 = vpop.f32.mrb[43].mxu0  ;;  %v1668_v29 = vpop.f32.mrb[43].mxu1  ;;  %v1768_v56 = vmul.f32 0.5, %v1754_v24  ;;  %v1760_v54 = vmul.f32 0.5, %v1752_v23  ;;  %v6633_v1 = vld [vmem:[#allocation172_spill] sm:$0xff] }
 0x2c7   :  { %v1769_v11 = vmul.f32 0.5, %v1755_v31  ;;  %v1761_v16 = vmul.f32 0.5, %v1753_v28  ;;  %v6634_v63 = vld [vmem:[#allocation174_spill] sm:$0xff] }
 0x2c8   :  { %3797 = vtanh.f32 %v1768_v56 }
 0x2c9   :  { %3799 = vtanh.f32 %v1769_v11 }
 0x2ca   :  { %3801 = vtanh.f32 %v1760_v54 }
 0x2cb   :  { %3803 = vtanh.f32 %v1761_v16 }
 0x2d2   :  { %v3798_v23 = vpop.eup %3797 }
 0x2d3   :  { %v3800_v54 = vpop.eup %3799  ;;  %v1772_v29 = vmul.f32 0.5, %v3798_v23 }
 0x2d4   :  { %v3802_v16 = vpop.eup %3801 }
 0x2d5   :  { %v3804_v28 = vpop.eup %3803  ;;  %v1774_v5 = vadd.f32 0.5, %v1772_v29 }
 0x2d6   :  { %v1765_v53 = vmul.f32 0.5, %v3804_v28 }
 0x303   :  { %v1704_v10 = vpop.f32.mrb[44].mxu0  ;;  %v1745_v9 = vpop.f32.mrb[44].mxu1 }
 0x304   :  { %v1756_v20 = vadd.f32 %v1704_v10, %v6631_v19  ;;  %v1758_v3 = vadd.f32 %v1745_v9, %v6632_v41  ;;  %v1706_v8 = vpop.f32.mrb[45].mxu0  ;;  %v1747_v2 = vpop.f32.mrb[45].mxu1  ;;  %v1773_v19 = vmul.f32 0.5, %v3800_v54  ;;  %v1764_v9 = vmul.f32 0.5, %v3802_v16 }
 0x305   :  { %v1757_v27 = vadd.f32 %v1706_v8, %v6633_v1  ;;  %v1759_v32 = vadd.f32 %v1747_v2, %v6634_v63  ;;  %v1708_v24 = vpop.f32.mrb[46].mxu0  ;;  %v1749_v31 = vpop.f32.mrb[46].mxu1  ;;  %v1767_v63 = vadd.f32 0.5, %v1765_v53 }
 0x306   :  { %3805 = vtanh.f32 %v1756_v20  ;;  %v1709_v56 = vpop.f32.mrb[47].mxu0  ;;  %v1750_v11 = vpop.f32.mrb[47].mxu1  ;;  %v1778_v10 = vmul.f32 0.5, %v1758_v3  ;;  %v1775_v8 = vadd.f32 0.5, %v1773_v19  ;;  %v1766_v2 = vadd.f32 0.5, %v1764_v9  ;;  %v6636_v9 = vld [vmem:[#allocation100_spill] sm:$0xff] }
 0x307   :  { %3807 = vtanh.f32 %v1757_v27  ;;  %v1779_v41 = vmul.f32 0.5, %v1759_v32  ;;  %v1786_v24 = vmul.f32 %v1774_v5, %v4954_v15 }
 0x308   :  { %3809 = vtanh.f32 %v1778_v10  ;;  %v1787_v27 = vmul.f32 %v1775_v8, %v4956_v40  ;;  %v6637_v8 = vld [vmem:[#allocation101_spill] sm:$0xff] }
 0x309   :  { %3811 = vtanh.f32 %v1779_v41  ;;  %v6635_v41 = vld [vmem:[#allocation99_spill] sm:$0xff] }
 0x310   :  { %v3806_v1 = vpop.eup %3805 }
 0x311   :  { %v3808_v20 = vpop.eup %3807  ;;  %v1788_v31 = vmul.f32 %v3806_v1, %v1766_v2  ;;  %v6638_v2 = vld [vmem:[#allocation102_spill] sm:$0xff]  ;;  %v6639_v1 = vld [vmem:[#allocation103_spill] sm:$0xff] }
 0x312   :  { %v1789_v56 = vmul.f32 %v3808_v20, %v1767_v63  ;;  %v3810_v32 = vpop.eup %3809  ;;  %v6640_v63 = vld [vmem:[#allocation104_spill] sm:$0xff]  ;;  %v6641_v20 = vld [vmem:[#allocation105_spill] sm:$0xff] }
 0x313   :  { %v5104_v23 = vadd.f32 %v1788_v31, %v1786_v24  ;;  %v3812_v11 = vpop.eup %3811  ;;  %v1782_v54 = vmul.f32 0.5, %v3810_v32  ;;  %v6642_v24 = vld [vmem:[#allocation106_spill] sm:$0xff]  ;;  %v6643_v31 = vld [vmem:[#allocation107_spill] sm:$0xff] }
 0x314   :  { %v5106_v3 = vadd.f32 %v1789_v56, %v1787_v27  ;;  %v1783_v16 = vmul.f32 0.5, %v3812_v11  ;;  %v6644_v27 = vld [vmem:[#allocation108_spill] sm:$0xff]  ;;  %v6645_v56 = vld [vmem:[#allocation109_spill] sm:$0xff]  ;;  %v6646_v32 = vld [vmem:[#allocation110_spill] sm:$0xff] }
 0x315   :  { %3813 = vtanh.f32 %v5104_v23  ;;  %v1784_v53 = vadd.f32 0.5, %v1782_v54  ;;  %v6647_v11 = vld [vmem:[#allocation111_spill] sm:$0xff]  ;;  %v6648_v54 = vld [vmem:[#allocation112_spill] sm:$0xff] }
 0x316   :  { %3815 = vtanh.f32 %v5106_v3  ;;  %v1785_v29 = vadd.f32 0.5, %v1783_v16  ;;  %v6649_v16 = vld [vmem:[#allocation113_spill] sm:$0xff] }
 0x31f   :  { %v3814_v28 = vpop.eup %3813 }
 0x320   :  { %v3816_v5 = vpop.eup %3815  ;;  %v1794_v15 = vmul.f32 %v3814_v28, %v1784_v53  ;;  %v6650_v53 = vld [vmem:[#allocation114_spill] sm:$0xff]  ;;  %v6651_v28 = vld [vmem:[#allocation115_spill] sm:$0xff] }
 0x321   :  { %v1795_v10 = vmul.f32 %v3816_v5, %v1785_v29  ;;  %v6652_v29 = vld [vmem:[#allocation116_spill] sm:$0xff]  ;;  %v6653_v5 = vld [vmem:[#allocation117_spill] sm:$0xff] }
 0x322   :  { %v5110_v19 = vpack.c.bf16 %v1794_v15, %v1794_v15  ;;  %v6654_v15 = vld [vmem:[#allocation121_spill] sm:$0xff] }
 0x323   :  { %v1797_v40 = vpack.c.bf16 %v1795_v10, %v1795_v10  ;;  %v6655_v10 = vld [vmem:[#allocation140_spill] sm:$0xff] }
 0x325   :  { %1830 = vmatprep.mubr.bf16.mxu0 %v1797_v40  ;;  %1871 = vmatprep.mubr.bf16.mxu1 %v1797_v40 }
 0x326   :  { %1831 = vmatmul.mubr.bf16.vlgmr.msra.gmra.mrb[48].mxu0 %v5110_v19  ;;  %1872 = vmatmul.mubr.bf16.vlgmr.msra.gmra.mrb[48].mxu1 %v5110_v19 }
 0x327   :  { %1881 = vmatpush1.bf16.msra.mxu0 %v6531_v58  ;;  %1922 = vmatpush1.bf16.msra.mxu1 %v6532_v26 }
 0x328   :  { %1912 = vmatprep.mubr.bf16.mxu0 %v1797_v40  ;;  %1953 = vmatprep.mubr.bf16.mxu1 %v1797_v40  ;;  %v6656_v40 = vld [vmem:[#allocation141_spill] sm:$0xff] }
 0x329   :  { %1882 = vmatprep.subr.bf16.mxu0 %v6533_v6  ;;  %1923 = vmatprep.subr.bf16.mxu1 %v6534_v44 }
 0x32b   :  { %1883 = vmatpush1.bf16.msra.mxu0 %v6535_v61  ;;  %1924 = vmatpush1.bf16.msra.mxu1 %v6536_v21 }
 0x32c   :  { %1884 = vmatprep.subr.bf16.mxu0 %v6537_v43  ;;  %1925 = vmatprep.subr.bf16.mxu1 %v6538_v62 }
 0x32f   :  { %1885 = vmatpush1.bf16.msra.mxu0 %v6539_v55  ;;  %1926 = vmatpush1.bf16.msra.mxu1 %v6540_v47 }
 0x330   :  { %1886 = vmatprep.subr.bf16.mxu0 %v6541_v22  ;;  %1927 = vmatprep.subr.bf16.mxu1 %v6542_v33 }
 0x333   :  { %1887 = vmatpush1.bf16.msra.mxu0 %v6543_v14  ;;  %1928 = vmatpush1.bf16.msra.mxu1 %v6544_v4 }
 0x334   :  { %1888 = vmatprep.subr.bf16.mxu0 %v6545_v12  ;;  %1929 = vmatprep.subr.bf16.mxu1 %v6546_v13 }
 0x337   :  { %1889 = vmatpush1.bf16.msra.mxu0 %v6547_v34  ;;  %1930 = vmatpush1.bf16.msra.mxu1 %v6548_v39 }
 0x338   :  { %1890 = vmatprep.subr.bf16.mxu0 %v6635_v41  ;;  %1931 = vmatprep.subr.bf16.mxu1 %v6636_v9 }
 0x33b   :  { %1891 = vmatpush1.bf16.msra.mxu0 %v6637_v8  ;;  %1932 = vmatpush1.bf16.msra.mxu1 %v6638_v2 }
 0x33c   :  { %1892 = vmatprep.subr.bf16.mxu0 %v6639_v1  ;;  %1933 = vmatprep.subr.bf16.mxu1 %v6640_v63 }
 0x33f   :  { %1893 = vmatpush1.bf16.msra.mxu0 %v6641_v20  ;;  %1934 = vmatpush1.bf16.msra.mxu1 %v6642_v24 }
 0x340   :  { %1894 = vmatprep.subr.bf16.mxu0 %v6643_v31  ;;  %1935 = vmatprep.subr.bf16.mxu1 %v6644_v27 }
 0x343   :  { %1895 = vmatpush1.bf16.msra.mxu0 %v6645_v56  ;;  %1936 = vmatpush1.bf16.msra.mxu1 %v6646_v32 }
 0x344   :  { %1896 = vmatprep.subr.bf16.mxu0 %v6647_v11  ;;  %1937 = vmatprep.subr.bf16.mxu1 %v6648_v54 }
 0x347   :  { %1897 = vmatpush1.bf16.msra.mxu0 %v6649_v16  ;;  %1938 = vmatpush1.bf16.msra.mxu1 %v6650_v53 }
 0x348   :  { %1898 = vmatprep.subr.bf16.mxu0 %v6651_v28  ;;  %1939 = vmatprep.subr.bf16.mxu1 %v6652_v29 }
 0x34b   :  { %1899 = vmatpush1.bf16.msra.mxu0 %v6653_v5  ;;  %1940 = vmatpush1.bf16.msra.mxu1 %v6568_v52 }
 0x34c   :  { %1900 = vmatprep.subr.bf16.mxu0 %v6569_v51  ;;  %1941 = vmatprep.subr.bf16.mxu1 %v6570_v38 }
 0x34f   :  { %1901 = vmatpush1.bf16.msra.mxu0 %v6654_v15  ;;  %1942 = vmatpush1.bf16.msra.mxu1 %v6572_v25  ;;  %v6729_v25 = vld [vmem:[#allocation177_spill] sm:$0xff] }
 0x350   :  { %1902 = vmatprep.subr.bf16.mxu0 %v6573_v36  ;;  %1943 = vmatprep.subr.bf16.mxu1 %v6574_v57 }
 0x353   :  { %1903 = vmatpush1.bf16.msra.mxu0 %v6575_v60  ;;  %1944 = vmatpush1.bf16.msra.mxu1 %v6576_v35 }
 0x354   :  { %1904 = vmatprep.subr.bf16.mxu0 %v6577_v30  ;;  %1945 = vmatprep.subr.bf16.mxu1 %v6578_v59  ;;  %v6726_v59 = vld [vmem:[#allocation148_spill] sm:$0xff]  ;;  %v6727_v30 = vld [vmem:[#allocation151_spill] sm:$0xff] }
 0x357   :  { %1905 = vmatpush1.bf16.msra.mxu0 %v4605_v46  ;;  %1946 = vmatpush1.bf16.msra.mxu1 %v4609_v49  ;;  %v6725_v49 = vld [vmem:[#allocation149_spill] sm:$0xff] }
 0x358   :  { %1906 = vmatprep.subr.bf16.mxu0 %v4611_v50  ;;  %1947 = vmatprep.subr.bf16.mxu1 %v6579_v48  ;;  %v6657_v50 = vld [vmem:[#allocation142_spill] sm:$0xff]  ;;  %v6658_v48 = vld [vmem:[#allocation15_spill] sm:$0xff] }
 0x35b   :  { %1907 = vmatpush1.bf16.msra.mxu0 %v4617_v7  ;;  %1948 = vmatpush1.bf16.msra.mxu1 %v4621_v18  ;;  %v6659_v7 = vld [vmem:[#allocation16_spill] sm:$0xff]  ;;  %v6724_v18 = vld [vmem:[#allocation147_spill] sm:$0xff] }
 0x35c   :  { %1908 = vmatprep.subr.bf16.mxu0 %v4623_v17  ;;  %1949 = vmatprep.subr.bf16.mxu1 %v4626_v0  ;;  %v6660_v0 = vld [vmem:[#allocation17_spill] sm:$0xff]  ;;  %v6669_v17 = vld [vmem:[#allocation26_spill] sm:$0xff] }
 0x35f   :  { %1909 = vmatpush1.bf16.msra.mxu0 %v4629_v42  ;;  %1950 = vmatpush1.bf16.msra.mxu1 %v4633_v37  ;;  %v6661_v42 = vld [vmem:[#allocation18_spill] sm:$0xff]  ;;  %v6662_v37 = vld [vmem:[#allocation19_spill] sm:$0xff] }
 0x360   :  { %1910 = vmatprep.subr.bf16.mxu0 %v4635_v45  ;;  %1951 = vmatprep.subr.bf16.mxu1 %v6655_v10  ;;  %v6663_v45 = vld [vmem:[#allocation20_spill] sm:$0xff]  ;;  %v6664_v10 = vld [vmem:[#allocation21_spill] sm:$0xff] }
 0x363   :  { %1911 = vmatpush1.bf16.msra.mxu0 %v6656_v40  ;;  %1952 = vmatpush1.bf16.msra.mxu1 %v6657_v50  ;;  %v6665_v40 = vld [vmem:[#allocation22_spill] sm:$0xff]  ;;  %v6666_v50 = vld [vmem:[#allocation23_spill] sm:$0xff] }
 0x364   :  { %2008 = vmatprep.subr.bf16.mxu0 %v6658_v48  ;;  %2049 = vmatprep.subr.bf16.mxu1 %v6659_v7  ;;  %v6667_v48 = vld [vmem:[#allocation24_spill] sm:$0xff]  ;;  %v6668_v7 = vld [vmem:[#allocation25_spill] sm:$0xff] }
 0x366   :  { %1913 = vmatmul.mubr.bf16.vlgmr.msra.gmra.mrb[52].mxu0 %v5110_v19  ;;  %1954 = vmatmul.mubr.bf16.vlgmr.msra.gmra.mrb[52].mxu1 %v5110_v19  ;;  %v6670_v19 = vld [vmem:[#allocation27_spill] sm:$0xff] }
 0x367   :  { %2009 = vmatpush1.bf16.msra.mxu0 %v6660_v0  ;;  %2050 = vmatpush1.bf16.msra.mxu1 %v6661_v42  ;;  %v6671_v0 = vld [vmem:[#allocation28_spill] sm:$0xff]  ;;  %v6672_v42 = vld [vmem:[#allocation29_spill] sm:$0xff] }
 0x368   :  { %2010 = vmatprep.subr.bf16.mxu0 %v6662_v37  ;;  %2051 = vmatprep.subr.bf16.mxu1 %v6663_v45  ;;  %v6673_v37 = vld [vmem:[#allocation30_spill] sm:$0xff]  ;;  %v6674_v45 = vld [vmem:[#allocation31_spill] sm:$0xff] }
 0x36b   :  { %2011 = vmatpush1.bf16.msra.mxu0 %v6664_v10  ;;  %2052 = vmatpush1.bf16.msra.mxu1 %v6665_v40  ;;  %v6675_v10 = vld [vmem:[#allocation32_spill] sm:$0xff]  ;;  %v6676_v40 = vld [vmem:[#allocation33_spill] sm:$0xff] }
 0x36c   :  { %2012 = vmatprep.subr.bf16.mxu0 %v6666_v50  ;;  %2053 = vmatprep.subr.bf16.mxu1 %v6667_v48  ;;  %v6677_v50 = vld [vmem:[#allocation34_spill] sm:$0xff]  ;;  %v6678_v48 = vld [vmem:[#allocation35_spill] sm:$0xff] }
 0x36f   :  { %2013 = vmatpush1.bf16.msra.mxu0 %v6668_v7  ;;  %2054 = vmatpush1.bf16.msra.mxu1 %v6669_v17  ;;  %v6679_v7 = vld [vmem:[#allocation36_spill] sm:$0xff]  ;;  %v6680_v17 = vld [vmem:[#allocation37_spill] sm:$0xff] }
 0x370   :  { %2014 = vmatprep.subr.bf16.mxu0 %v6670_v19  ;;  %2055 = vmatprep.subr.bf16.mxu1 %v6671_v0  ;;  %v6681_v19 = vld [vmem:[#allocation38_spill] sm:$0xff]  ;;  %v6682_v0 = vld [vmem:[#allocation39_spill] sm:$0xff] }
 0x373   :  { %2015 = vmatpush1.bf16.msra.mxu0 %v6672_v42  ;;  %2056 = vmatpush1.bf16.msra.mxu1 %v6673_v37  ;;  %v6683_v42 = vld [vmem:[#allocation40_spill] sm:$0xff]  ;;  %v6684_v37 = vld [vmem:[#allocation41_spill] sm:$0xff] }
 0x374   :  { %2016 = vmatprep.subr.bf16.mxu0 %v6674_v45  ;;  %2057 = vmatprep.subr.bf16.mxu1 %v6675_v10  ;;  %v6685_v45 = vld [vmem:[#allocation42_spill] sm:$0xff]  ;;  %v6686_v10 = vld [vmem:[#allocation43_spill] sm:$0xff] }
 0x377   :  { %2017 = vmatpush1.bf16.msra.mxu0 %v6676_v40  ;;  %2058 = vmatpush1.bf16.msra.mxu1 %v6677_v50  ;;  %v6687_v40 = vld [vmem:[#allocation44_spill] sm:$0xff]  ;;  %v6688_v50 = vld [vmem:[#allocation45_spill] sm:$0xff] }
 0x378   :  { %2018 = vmatprep.subr.bf16.mxu0 %v6678_v48  ;;  %2059 = vmatprep.subr.bf16.mxu1 %v6679_v7  ;;  %v6689_v48 = vld [vmem:[#allocation46_spill] sm:$0xff]  ;;  %v6690_v7 = vld [vmem:[#allocation47_spill] sm:$0xff] }
 0x37b   :  { %2019 = vmatpush1.bf16.msra.mxu0 %v6680_v17  ;;  %2060 = vmatpush1.bf16.msra.mxu1 %v6681_v19  ;;  %v6691_v17 = vld [vmem:[#allocation48_spill] sm:$0xff]  ;;  %v6692_v19 = vld [vmem:[#allocation49_spill] sm:$0xff] }
 0x37c   :  { %2020 = vmatprep.subr.bf16.mxu0 %v6682_v0  ;;  %2061 = vmatprep.subr.bf16.mxu1 %v6683_v42  ;;  %v6693_v0 = vld [vmem:[#allocation50_spill] sm:$0xff]  ;;  %v6694_v42 = vld [vmem:[#allocation51_spill] sm:$0xff] }
 0x37f   :  { %2021 = vmatpush1.bf16.msra.mxu0 %v6684_v37  ;;  %2062 = vmatpush1.bf16.msra.mxu1 %v6685_v45  ;;  %v6695_v37 = vld [vmem:[#allocation52_spill] sm:$0xff]  ;;  %v6696_v45 = vld [vmem:[#allocation53_spill] sm:$0xff] }
 0x380   :  { %2022 = vmatprep.subr.bf16.mxu0 %v6686_v10  ;;  %2063 = vmatprep.subr.bf16.mxu1 %v6687_v40  ;;  %v6697_v10 = vld [vmem:[#allocation54_spill] sm:$0xff]  ;;  %v6698_v40 = vld [vmem:[#allocation55_spill] sm:$0xff] }
 0x383   :  { %2023 = vmatpush1.bf16.msra.mxu0 %v6688_v50  ;;  %2064 = vmatpush1.bf16.msra.mxu1 %v6689_v48  ;;  %v6699_v50 = vld [vmem:[#allocation56_spill] sm:$0xff]  ;;  %v6700_v48 = vld [vmem:[#allocation57_spill] sm:$0xff] }
 0x384   :  { %2024 = vmatprep.subr.bf16.mxu0 %v6690_v7  ;;  %2065 = vmatprep.subr.bf16.mxu1 %v6691_v17  ;;  %v6701_v7 = vld [vmem:[#allocation58_spill] sm:$0xff]  ;;  %v6702_v17 = vld [vmem:[#allocation59_spill] sm:$0xff] }
 0x387   :  { %2025 = vmatpush1.bf16.msra.mxu0 %v6692_v19  ;;  %2066 = vmatpush1.bf16.msra.mxu1 %v6693_v0  ;;  %v6703_v19 = vld [vmem:[#allocation60_spill] sm:$0xff]  ;;  %v6704_v0 = vld [vmem:[#allocation61_spill] sm:$0xff] }
 0x388   :  { %2026 = vmatprep.subr.bf16.mxu0 %v6694_v42  ;;  %2067 = vmatprep.subr.bf16.mxu1 %v6695_v37  ;;  %v6705_v42 = vld [vmem:[#allocation62_spill] sm:$0xff]  ;;  %v6706_v37 = vld [vmem:[#allocation63_spill] sm:$0xff] }
 0x38b   :  { %2027 = vmatpush1.bf16.msra.mxu0 %v6696_v45  ;;  %2068 = vmatpush1.bf16.msra.mxu1 %v6697_v10  ;;  %v6707_v45 = vld [vmem:[#allocation64_spill] sm:$0xff]  ;;  %v6708_v10 = vld [vmem:[#allocation65_spill] sm:$0xff] }
 0x38c   :  { %2028 = vmatprep.subr.bf16.mxu0 %v6698_v40  ;;  %2069 = vmatprep.subr.bf16.mxu1 %v6699_v50  ;;  %v6709_v40 = vld [vmem:[#allocation66_spill] sm:$0xff]  ;;  %v6710_v50 = vld [vmem:[#allocation67_spill] sm:$0xff] }
 0x38f   :  { %2029 = vmatpush1.bf16.msra.mxu0 %v6700_v48  ;;  %2070 = vmatpush1.bf16.msra.mxu1 %v6701_v7  ;;  %v6711_v48 = vld [vmem:[#allocation68_spill] sm:$0xff]  ;;  %v6712_v7 = vld [vmem:[#allocation69_spill] sm:$0xff] }
 0x390   :  { %2030 = vmatprep.subr.bf16.mxu0 %v6702_v17  ;;  %2071 = vmatprep.subr.bf16.mxu1 %v6703_v19  ;;  %v6713_v17 = vld [vmem:[#allocation70_spill] sm:$0xff]  ;;  %v6714_v19 = vld [vmem:[#allocation71_spill] sm:$0xff] }
 0x393   :  { %2031 = vmatpush1.bf16.msra.mxu0 %v6704_v0  ;;  %2072 = vmatpush1.bf16.msra.mxu1 %v6705_v42  ;;  %v6715_v0 = vld [vmem:[#allocation72_spill] sm:$0xff]  ;;  %v6716_v42 = vld [vmem:[#allocation73_spill] sm:$0xff] }
 0x394   :  { %2032 = vmatprep.subr.bf16.mxu0 %v6706_v37  ;;  %2073 = vmatprep.subr.bf16.mxu1 %v6707_v45  ;;  %v6717_v37 = vld [vmem:[#allocation74_spill] sm:$0xff]  ;;  %v6718_v45 = vld [vmem:[#allocation75_spill] sm:$0xff] }
 0x397   :  { %2033 = vmatpush1.bf16.msra.mxu0 %v6708_v10  ;;  %2074 = vmatpush1.bf16.msra.mxu1 %v6709_v40  ;;  %v6719_v10 = vld [vmem:[#allocation76_spill] sm:$0xff]  ;;  %v6720_v40 = vld [vmem:[#allocation77_spill] sm:$0xff] }
 0x398   :  { %2034 = vmatprep.subr.bf16.mxu0 %v6710_v50  ;;  %2075 = vmatprep.subr.bf16.mxu1 %v6711_v48  ;;  %v6721_v50 = vld [vmem:[#allocation78_spill] sm:$0xff]  ;;  %v6722_v48 = vld [vmem:[#allocation79_spill] sm:$0xff] }
 0x39b   :  { %2035 = vmatpush1.bf16.msra.mxu0 %v6712_v7  ;;  %2076 = vmatpush1.bf16.msra.mxu1 %v6713_v17  ;;  %v6723_v7 = vld [vmem:[#allocation80_spill] sm:$0xff] }
 0x39c   :  { %2036 = vmatprep.subr.bf16.mxu0 %v6714_v19  ;;  %2077 = vmatprep.subr.bf16.mxu1 %v6715_v0 }
 0x39f   :  { %2037 = vmatpush1.bf16.msra.mxu0 %v6716_v42  ;;  %2078 = vmatpush1.bf16.msra.mxu1 %v6717_v37 }
 0x3a0   :  { %2038 = vmatprep.subr.bf16.mxu0 %v6718_v45  ;;  %2079 = vmatprep.subr.bf16.mxu1 %v6719_v10 }
 0x3a3   :  { %2039 = vmatpush1.bf16.msra.mxu0 %v6720_v40  ;;  %2080 = vmatpush1.bf16.msra.mxu1 %v6721_v50 }
 0x3a4   :  { %2090 = vmatprep.subr.bf16.mxu0 %v6722_v48  ;;  %2131 = vmatprep.subr.bf16.mxu1 %v6723_v7 }
 0x3f9   :  { %v1832_v17 = vpop.f32.mrb[48].mxu0  ;;  %v1873_v19 = vpop.f32.mrb[48].mxu1 }
 0x3fa   :  { %v1962_v0 = vadd.f32 %v1832_v17, %v6724_v18  ;;  %v1964_v42 = vadd.f32 %v1873_v19, %v6725_v49  ;;  %v1834_v46 = vpop.f32.mrb[49].mxu0  ;;  %v1875_v37 = vpop.f32.mrb[49].mxu1  ;;  %v6728_v17 = vld [vmem:[#allocation175_spill] sm:$0xff] }
 0x3fb   :  { %v1963_v45 = vadd.f32 %v1834_v46, %v6726_v59  ;;  %v1965_v10 = vadd.f32 %v1875_v37, %v6727_v30  ;;  %v1836_v35 = vpop.f32.mrb[50].mxu0  ;;  %v1877_v40 = vpop.f32.mrb[50].mxu1 }
 0x3fc   :  { %v1837_v60 = vpop.f32.mrb[51].mxu0  ;;  %v1878_v50 = vpop.f32.mrb[51].mxu1  ;;  %v1978_v57 = vmul.f32 0.5, %v1964_v42  ;;  %v1970_v36 = vmul.f32 0.5, %v1962_v0  ;;  %v6730_v35 = vld [vmem:[#allocation176_spill] sm:$0xff] }
 0x3fd   :  { %v1979_v48 = vmul.f32 0.5, %v1965_v10  ;;  %v1971_v7 = vmul.f32 0.5, %v1963_v45  ;;  %v6731_v60 = vld [vmem:[#allocation179_spill] sm:$0xff] }
 0x3fe   :  { %3817 = vtanh.f32 %v1978_v57 }
 0x3ff   :  { %3819 = vtanh.f32 %v1979_v48 }
 0x400   :  { %3821 = vtanh.f32 %v1970_v36 }
 0x401   :  { %3823 = vtanh.f32 %v1971_v7 }
 0x408   :  { %v3818_v0 = vpop.eup %3817 }
 0x409   :  { %v3820_v36 = vpop.eup %3819  ;;  %v1982_v40 = vmul.f32 0.5, %v3818_v0 }
 0x40a   :  { %v3822_v7 = vpop.eup %3821 }
 0x40b   :  { %v3824_v57 = vpop.eup %3823  ;;  %v1984_v38 = vadd.f32 0.5, %v1982_v40 }
 0x40c   :  { %v1975_v15 = vmul.f32 0.5, %v3824_v57 }
 0x439   :  { %v1914_v18 = vpop.f32.mrb[52].mxu0  ;;  %v1955_v49 = vpop.f32.mrb[52].mxu1 }
 0x43a   :  { %v1966_v19 = vadd.f32 %v1914_v18, %v6728_v17  ;;  %v1968_v46 = vadd.f32 %v1955_v49, %v6729_v25  ;;  %v1916_v59 = vpop.f32.mrb[53].mxu0  ;;  %v1957_v37 = vpop.f32.mrb[53].mxu1  ;;  %v1983_v17 = vmul.f32 0.5, %v3820_v36  ;;  %v1974_v49 = vmul.f32 0.5, %v3822_v7 }
 0x43b   :  { %v1967_v30 = vadd.f32 %v1916_v59, %v6730_v35  ;;  %v1969_v50 = vadd.f32 %v1957_v37, %v6731_v60  ;;  %v1918_v42 = vpop.f32.mrb[54].mxu0  ;;  %v1959_v10 = vpop.f32.mrb[54].mxu1  ;;  %v1977_v60 = vadd.f32 0.5, %v1975_v15 }
 0x43c   :  { %3825 = vtanh.f32 %v1966_v19  ;;  %v1919_v45 = vpop.f32.mrb[55].mxu0  ;;  %v1960_v48 = vpop.f32.mrb[55].mxu1  ;;  %v1988_v18 = vmul.f32 0.5, %v1968_v46  ;;  %v1985_v59 = vadd.f32 0.5, %v1983_v17  ;;  %v1976_v37 = vadd.f32 0.5, %v1974_v49  ;;  %v6733_v49 = vld [vmem:[#allocation121_spill] sm:$0xff] }
 0x43d   :  { %3827 = vtanh.f32 %v1967_v30  ;;  %v1989_v25 = vmul.f32 0.5, %v1969_v50  ;;  %v1996_v42 = vmul.f32 %v1984_v38, %v5104_v23 }
 0x43e   :  { %3829 = vtanh.f32 %v1988_v18  ;;  %v1997_v30 = vmul.f32 %v1985_v59, %v5106_v3  ;;  %v6734_v59 = vld [vmem:[#allocation122_spill] sm:$0xff] }
 0x43f   :  { %3831 = vtanh.f32 %v1989_v25  ;;  %v6732_v25 = vld [vmem:[#allocation120_spill] sm:$0xff] }
 0x446   :  { %v3826_v35 = vpop.eup %3825 }
 0x447   :  { %v3828_v19 = vpop.eup %3827  ;;  %v1998_v10 = vmul.f32 %v3826_v35, %v1976_v37  ;;  %v6735_v37 = vld [vmem:[#allocation123_spill] sm:$0xff]  ;;  %v6736_v35 = vld [vmem:[#allocation124_spill] sm:$0xff] }
 0x448   :  { %v1999_v45 = vmul.f32 %v3828_v19, %v1977_v60  ;;  %v3830_v50 = vpop.eup %3829  ;;  %v6737_v60 = vld [vmem:[#allocation125_spill] sm:$0xff]  ;;  %v6738_v19 = vld [vmem:[#allocation126_spill] sm:$0xff] }
 0x449   :  { %v5254_v0 = vadd.f32 %v1998_v10, %v1996_v42  ;;  %v3832_v48 = vpop.eup %3831  ;;  %v1992_v36 = vmul.f32 0.5, %v3830_v50  ;;  %v6739_v42 = vld [vmem:[#allocation127_spill] sm:$0xff]  ;;  %v6740_v10 = vld [vmem:[#allocation128_spill] sm:$0xff] }
 0x44a   :  { %v5256_v46 = vadd.f32 %v1999_v45, %v1997_v30  ;;  %v1993_v7 = vmul.f32 0.5, %v3832_v48  ;;  %v6741_v30 = vld [vmem:[#allocation129_spill] sm:$0xff]  ;;  %v6742_v45 = vld [vmem:[#allocation130_spill] sm:$0xff]  ;;  %v6743_v50 = vld [vmem:[#allocation131_spill] sm:$0xff] }
 0x44b   :  { %3833 = vtanh.f32 %v5254_v0  ;;  %v1994_v15 = vadd.f32 0.5, %v1992_v36  ;;  %v6744_v48 = vld [vmem:[#allocation132_spill] sm:$0xff]  ;;  %v6745_v36 = vld [vmem:[#allocation133_spill] sm:$0xff] }
 0x44c   :  { %3835 = vtanh.f32 %v5256_v46  ;;  %v1995_v40 = vadd.f32 0.5, %v1993_v7  ;;  %v6746_v7 = vld [vmem:[#allocation134_spill] sm:$0xff] }
 0x455   :  { %v3834_v57 = vpop.eup %3833 }
 0x456   :  { %v3836_v38 = vpop.eup %3835  ;;  %v2004_v23 = vmul.f32 %v3834_v57, %v1994_v15  ;;  %v6747_v15 = vld [vmem:[#allocation135_spill] sm:$0xff]  ;;  %v6748_v57 = vld [vmem:[#allocation136_spill] sm:$0xff] }
 0x457   :  { %v2005_v18 = vmul.f32 %v3836_v38, %v1995_v40  ;;  %v6749_v40 = vld [vmem:[#allocation137_spill] sm:$0xff]  ;;  %v6750_v38 = vld [vmem:[#allocation138_spill] sm:$0xff] }
 0x458   :  { %v5260_v17 = vpack.c.bf16 %v2004_v23, %v2004_v23  ;;  %v6751_v23 = vld [vmem:[#allocation139_spill] sm:$0xff] }
 0x459   :  { %v2007_v3 = vpack.c.bf16 %v2005_v18, %v2005_v18  ;;  %v6752_v18 = vld [vmem:[#allocation140_spill] sm:$0xff] }
 0x45b   :  { %2040 = vmatprep.mubr.bf16.mxu0 %v2007_v3  ;;  %2081 = vmatprep.mubr.bf16.mxu1 %v2007_v3 }
 0x45c   :  { %2041 = vmatmul.mubr.bf16.vlgmr.msra.gmra.mrb[56].mxu0 %v5260_v17  ;;  %2082 = vmatmul.mubr.bf16.vlgmr.msra.gmra.mrb[56].mxu1 %v5260_v17 }
 0x45d   :  { %2091 = vmatpush1.bf16.msra.mxu0 %v6531_v58  ;;  %2132 = vmatpush1.bf16.msra.mxu1 %v6532_v26 }
 0x45e   :  { %2122 = vmatprep.mubr.bf16.mxu0 %v2007_v3  ;;  %2163 = vmatprep.mubr.bf16.mxu1 %v2007_v3  ;;  %v6753_v3 = vld [vmem:[#allocation141_spill] sm:$0xff] }
 0x45f   :  { %2092 = vmatprep.subr.bf16.mxu0 %v6533_v6  ;;  %2133 = vmatprep.subr.bf16.mxu1 %v6534_v44 }
 0x461   :  { %2093 = vmatpush1.bf16.msra.mxu0 %v6535_v61  ;;  %2134 = vmatpush1.bf16.msra.mxu1 %v6536_v21 }
 0x462   :  { %2094 = vmatprep.subr.bf16.mxu0 %v6537_v43  ;;  %2135 = vmatprep.subr.bf16.mxu1 %v6538_v62 }
 0x465   :  { %2095 = vmatpush1.bf16.msra.mxu0 %v6539_v55  ;;  %2136 = vmatpush1.bf16.msra.mxu1 %v6540_v47 }
 0x466   :  { %2096 = vmatprep.subr.bf16.mxu0 %v6541_v22  ;;  %2137 = vmatprep.subr.bf16.mxu1 %v6542_v33 }
 0x469   :  { %2097 = vmatpush1.bf16.msra.mxu0 %v6543_v14  ;;  %2138 = vmatpush1.bf16.msra.mxu1 %v6544_v4 }
 0x46a   :  { %2098 = vmatprep.subr.bf16.mxu0 %v6545_v12  ;;  %2139 = vmatprep.subr.bf16.mxu1 %v6546_v13 }
 0x46d   :  { %2099 = vmatpush1.bf16.msra.mxu0 %v6547_v34  ;;  %2140 = vmatpush1.bf16.msra.mxu1 %v6548_v39 }
 0x46e   :  { %2100 = vmatprep.subr.bf16.mxu0 %v6635_v41  ;;  %2141 = vmatprep.subr.bf16.mxu1 %v6636_v9 }
 0x471   :  { %2101 = vmatpush1.bf16.msra.mxu0 %v6637_v8  ;;  %2142 = vmatpush1.bf16.msra.mxu1 %v6638_v2 }
 0x472   :  { %2102 = vmatprep.subr.bf16.mxu0 %v6639_v1  ;;  %2143 = vmatprep.subr.bf16.mxu1 %v6640_v63 }
 0x475   :  { %2103 = vmatpush1.bf16.msra.mxu0 %v6641_v20  ;;  %2144 = vmatpush1.bf16.msra.mxu1 %v6642_v24 }
 0x476   :  { %2104 = vmatprep.subr.bf16.mxu0 %v6643_v31  ;;  %2145 = vmatprep.subr.bf16.mxu1 %v6644_v27 }
 0x479   :  { %2105 = vmatpush1.bf16.msra.mxu0 %v6645_v56  ;;  %2146 = vmatpush1.bf16.msra.mxu1 %v6646_v32 }
 0x47a   :  { %2106 = vmatprep.subr.bf16.mxu0 %v6647_v11  ;;  %2147 = vmatprep.subr.bf16.mxu1 %v6648_v54 }
 0x47d   :  { %2107 = vmatpush1.bf16.msra.mxu0 %v6649_v16  ;;  %2148 = vmatpush1.bf16.msra.mxu1 %v6650_v53 }
 0x47e   :  { %2108 = vmatprep.subr.bf16.mxu0 %v6651_v28  ;;  %2149 = vmatprep.subr.bf16.mxu1 %v6652_v29 }
 0x481   :  { %2109 = vmatpush1.bf16.msra.mxu0 %v6653_v5  ;;  %2150 = vmatpush1.bf16.msra.mxu1 %v6568_v52 }
 0x482   :  { %2110 = vmatprep.subr.bf16.mxu0 %v6569_v51  ;;  %2151 = vmatprep.subr.bf16.mxu1 %v6732_v25 }
 0x485   :  { %2111 = vmatpush1.bf16.msra.mxu0 %v6733_v49  ;;  %2152 = vmatpush1.bf16.msra.mxu1 %v6734_v59  ;;  %v6826_v59 = vld [vmem:[#allocation181_spill] sm:$0xff] }
 0x486   :  { %2112 = vmatprep.subr.bf16.mxu0 %v6735_v37  ;;  %2153 = vmatprep.subr.bf16.mxu1 %v6736_v35 }
 0x489   :  { %2113 = vmatpush1.bf16.msra.mxu0 %v6737_v60  ;;  %2154 = vmatpush1.bf16.msra.mxu1 %v6738_v19 }
 0x48a   :  { %2114 = vmatprep.subr.bf16.mxu0 %v6739_v42  ;;  %2155 = vmatprep.subr.bf16.mxu1 %v6740_v10  ;;  %v6823_v10 = vld [vmem:[#allocation152_spill] sm:$0xff]  ;;  %v6824_v42 = vld [vmem:[#allocation154_spill] sm:$0xff] }
 0x48d   :  { %2115 = vmatpush1.bf16.msra.mxu0 %v6741_v30  ;;  %2156 = vmatpush1.bf16.msra.mxu1 %v6742_v45  ;;  %v6822_v45 = vld [vmem:[#allocation153_spill] sm:$0xff] }
 0x48e   :  { %2116 = vmatprep.subr.bf16.mxu0 %v6743_v50  ;;  %2157 = vmatprep.subr.bf16.mxu1 %v6744_v48  ;;  %v6754_v50 = vld [vmem:[#allocation142_spill] sm:$0xff]  ;;  %v6755_v48 = vld [vmem:[#allocation15_spill] sm:$0xff] }
 0x491   :  { %2117 = vmatpush1.bf16.msra.mxu0 %v6745_v36  ;;  %2158 = vmatpush1.bf16.msra.mxu1 %v6746_v7  ;;  %v6756_v36 = vld [vmem:[#allocation16_spill] sm:$0xff]  ;;  %v6821_v7 = vld [vmem:[#allocation150_spill] sm:$0xff] }
 0x492   :  { %2118 = vmatprep.subr.bf16.mxu0 %v6747_v15  ;;  %2159 = vmatprep.subr.bf16.mxu1 %v6748_v57  ;;  %v6757_v57 = vld [vmem:[#allocation17_spill] sm:$0xff]  ;;  %v6766_v15 = vld [vmem:[#allocation26_spill] sm:$0xff] }
 0x495   :  { %2119 = vmatpush1.bf16.msra.mxu0 %v6749_v40  ;;  %2160 = vmatpush1.bf16.msra.mxu1 %v6750_v38  ;;  %v6758_v40 = vld [vmem:[#allocation18_spill] sm:$0xff]  ;;  %v6759_v38 = vld [vmem:[#allocation19_spill] sm:$0xff] }
 0x496   :  { %2120 = vmatprep.subr.bf16.mxu0 %v6751_v23  ;;  %2161 = vmatprep.subr.bf16.mxu1 %v6752_v18  ;;  %v6760_v23 = vld [vmem:[#allocation20_spill] sm:$0xff]  ;;  %v6761_v18 = vld [vmem:[#allocation21_spill] sm:$0xff] }
 0x499   :  { %2121 = vmatpush1.bf16.msra.mxu0 %v6753_v3  ;;  %2162 = vmatpush1.bf16.msra.mxu1 %v6754_v50  ;;  %v6762_v3 = vld [vmem:[#allocation22_spill] sm:$0xff]  ;;  %v6763_v50 = vld [vmem:[#allocation23_spill] sm:$0xff] }
 0x49a   :  { %2218 = vmatprep.subr.bf16.mxu0 %v6755_v48  ;;  %2259 = vmatprep.subr.bf16.mxu1 %v6756_v36  ;;  %v6764_v48 = vld [vmem:[#allocation24_spill] sm:$0xff]  ;;  %v6765_v36 = vld [vmem:[#allocation25_spill] sm:$0xff] }
 0x49c   :  { %2123 = vmatmul.mubr.bf16.vlgmr.msra.gmra.mrb[60].mxu0 %v5260_v17  ;;  %2164 = vmatmul.mubr.bf16.vlgmr.msra.gmra.mrb[60].mxu1 %v5260_v17  ;;  %v6767_v17 = vld [vmem:[#allocation27_spill] sm:$0xff] }
 0x49d   :  { %2219 = vmatpush1.bf16.msra.mxu0 %v6757_v57  ;;  %2260 = vmatpush1.bf16.msra.mxu1 %v6758_v40  ;;  %v6768_v57 = vld [vmem:[#allocation28_spill] sm:$0xff]  ;;  %v6769_v40 = vld [vmem:[#allocation29_spill] sm:$0xff] }
 0x49e   :  { %2220 = vmatprep.subr.bf16.mxu0 %v6759_v38  ;;  %2261 = vmatprep.subr.bf16.mxu1 %v6760_v23  ;;  %v6770_v38 = vld [vmem:[#allocation30_spill] sm:$0xff]  ;;  %v6771_v23 = vld [vmem:[#allocation31_spill] sm:$0xff] }
 0x4a1   :  { %2221 = vmatpush1.bf16.msra.mxu0 %v6761_v18  ;;  %2262 = vmatpush1.bf16.msra.mxu1 %v6762_v3  ;;  %v6772_v18 = vld [vmem:[#allocation32_spill] sm:$0xff]  ;;  %v6773_v3 = vld [vmem:[#allocation33_spill] sm:$0xff] }
 0x4a2   :  { %2222 = vmatprep.subr.bf16.mxu0 %v6763_v50  ;;  %2263 = vmatprep.subr.bf16.mxu1 %v6764_v48  ;;  %v6774_v50 = vld [vmem:[#allocation34_spill] sm:$0xff]  ;;  %v6775_v48 = vld [vmem:[#allocation35_spill] sm:$0xff] }
 0x4a5   :  { %2223 = vmatpush1.bf16.msra.mxu0 %v6765_v36  ;;  %2264 = vmatpush1.bf16.msra.mxu1 %v6766_v15  ;;  %v6776_v36 = vld [vmem:[#allocation36_spill] sm:$0xff]  ;;  %v6777_v15 = vld [vmem:[#allocation37_spill] sm:$0xff] }
 0x4a6   :  { %2224 = vmatprep.subr.bf16.mxu0 %v6767_v17  ;;  %2265 = vmatprep.subr.bf16.mxu1 %v6768_v57  ;;  %v6778_v17 = vld [vmem:[#allocation38_spill] sm:$0xff]  ;;  %v6779_v57 = vld [vmem:[#allocation39_spill] sm:$0xff] }
 0x4a9   :  { %2225 = vmatpush1.bf16.msra.mxu0 %v6769_v40  ;;  %2266 = vmatpush1.bf16.msra.mxu1 %v6770_v38  ;;  %v6780_v40 = vld [vmem:[#allocation40_spill] sm:$0xff]  ;;  %v6781_v38 = vld [vmem:[#allocation41_spill] sm:$0xff] }
 0x4aa   :  { %2226 = vmatprep.subr.bf16.mxu0 %v6771_v23  ;;  %2267 = vmatprep.subr.bf16.mxu1 %v6772_v18  ;;  %v6782_v23 = vld [vmem:[#allocation42_spill] sm:$0xff]  ;;  %v6783_v18 = vld [vmem:[#allocation43_spill] sm:$0xff] }
 0x4ad   :  { %2227 = vmatpush1.bf16.msra.mxu0 %v6773_v3  ;;  %2268 = vmatpush1.bf16.msra.mxu1 %v6774_v50  ;;  %v6784_v3 = vld [vmem:[#allocation44_spill] sm:$0xff]  ;;  %v6785_v50 = vld [vmem:[#allocation45_spill] sm:$0xff] }
 0x4ae   :  { %2228 = vmatprep.subr.bf16.mxu0 %v6775_v48  ;;  %2269 = vmatprep.subr.bf16.mxu1 %v6776_v36  ;;  %v6786_v48 = vld [vmem:[#allocation46_spill] sm:$0xff]  ;;  %v6787_v36 = vld [vmem:[#allocation47_spill] sm:$0xff] }
 0x4b1   :  { %2229 = vmatpush1.bf16.msra.mxu0 %v6777_v15  ;;  %2270 = vmatpush1.bf16.msra.mxu1 %v6778_v17  ;;  %v6788_v15 = vld [vmem:[#allocation48_spill] sm:$0xff]  ;;  %v6789_v17 = vld [vmem:[#allocation49_spill] sm:$0xff] }
 0x4b2   :  { %2230 = vmatprep.subr.bf16.mxu0 %v6779_v57  ;;  %2271 = vmatprep.subr.bf16.mxu1 %v6780_v40  ;;  %v6790_v57 = vld [vmem:[#allocation50_spill] sm:$0xff]  ;;  %v6791_v40 = vld [vmem:[#allocation51_spill] sm:$0xff] }
 0x4b5   :  { %2231 = vmatpush1.bf16.msra.mxu0 %v6781_v38  ;;  %2272 = vmatpush1.bf16.msra.mxu1 %v6782_v23  ;;  %v6792_v38 = vld [vmem:[#allocation52_spill] sm:$0xff]  ;;  %v6793_v23 = vld [vmem:[#allocation53_spill] sm:$0xff] }
 0x4b6   :  { %2232 = vmatprep.subr.bf16.mxu0 %v6783_v18  ;;  %2273 = vmatprep.subr.bf16.mxu1 %v6784_v3  ;;  %v6794_v18 = vld [vmem:[#allocation54_spill] sm:$0xff]  ;;  %v6795_v3 = vld [vmem:[#allocation55_spill] sm:$0xff] }
 0x4b9   :  { %2233 = vmatpush1.bf16.msra.mxu0 %v6785_v50  ;;  %2274 = vmatpush1.bf16.msra.mxu1 %v6786_v48  ;;  %v6796_v50 = vld [vmem:[#allocation56_spill] sm:$0xff]  ;;  %v6797_v48 = vld [vmem:[#allocation57_spill] sm:$0xff] }
 0x4ba   :  { %2234 = vmatprep.subr.bf16.mxu0 %v6787_v36  ;;  %2275 = vmatprep.subr.bf16.mxu1 %v6788_v15  ;;  %v6798_v36 = vld [vmem:[#allocation58_spill] sm:$0xff]  ;;  %v6799_v15 = vld [vmem:[#allocation59_spill] sm:$0xff] }
 0x4bd   :  { %2235 = vmatpush1.bf16.msra.mxu0 %v6789_v17  ;;  %2276 = vmatpush1.bf16.msra.mxu1 %v6790_v57  ;;  %v6800_v17 = vld [vmem:[#allocation60_spill] sm:$0xff]  ;;  %v6801_v57 = vld [vmem:[#allocation61_spill] sm:$0xff] }
 0x4be   :  { %2236 = vmatprep.subr.bf16.mxu0 %v6791_v40  ;;  %2277 = vmatprep.subr.bf16.mxu1 %v6792_v38  ;;  %v6802_v40 = vld [vmem:[#allocation62_spill] sm:$0xff]  ;;  %v6803_v38 = vld [vmem:[#allocation63_spill] sm:$0xff] }
 0x4c1   :  { %2237 = vmatpush1.bf16.msra.mxu0 %v6793_v23  ;;  %2278 = vmatpush1.bf16.msra.mxu1 %v6794_v18  ;;  %v6804_v23 = vld [vmem:[#allocation64_spill] sm:$0xff]  ;;  %v6805_v18 = vld [vmem:[#allocation65_spill] sm:$0xff] }
 0x4c2   :  { %2238 = vmatprep.subr.bf16.mxu0 %v6795_v3  ;;  %2279 = vmatprep.subr.bf16.mxu1 %v6796_v50  ;;  %v6806_v3 = vld [vmem:[#allocation66_spill] sm:$0xff]  ;;  %v6807_v50 = vld [vmem:[#allocation67_spill] sm:$0xff] }
 0x4c5   :  { %2239 = vmatpush1.bf16.msra.mxu0 %v6797_v48  ;;  %2280 = vmatpush1.bf16.msra.mxu1 %v6798_v36  ;;  %v6808_v48 = vld [vmem:[#allocation68_spill] sm:$0xff]  ;;  %v6809_v36 = vld [vmem:[#allocation69_spill] sm:$0xff] }
 0x4c6   :  { %2240 = vmatprep.subr.bf16.mxu0 %v6799_v15  ;;  %2281 = vmatprep.subr.bf16.mxu1 %v6800_v17  ;;  %v6810_v15 = vld [vmem:[#allocation70_spill] sm:$0xff]  ;;  %v6811_v17 = vld [vmem:[#allocation71_spill] sm:$0xff] }
 0x4c9   :  { %2241 = vmatpush1.bf16.msra.mxu0 %v6801_v57  ;;  %2282 = vmatpush1.bf16.msra.mxu1 %v6802_v40  ;;  %v6812_v57 = vld [vmem:[#allocation72_spill] sm:$0xff]  ;;  %v6813_v40 = vld [vmem:[#allocation73_spill] sm:$0xff] }
 0x4ca   :  { %2242 = vmatprep.subr.bf16.mxu0 %v6803_v38  ;;  %2283 = vmatprep.subr.bf16.mxu1 %v6804_v23  ;;  %v6814_v38 = vld [vmem:[#allocation74_spill] sm:$0xff]  ;;  %v6815_v23 = vld [vmem:[#allocation75_spill] sm:$0xff] }
 0x4cd   :  { %2243 = vmatpush1.bf16.msra.mxu0 %v6805_v18  ;;  %2284 = vmatpush1.bf16.msra.mxu1 %v6806_v3  ;;  %v6816_v18 = vld [vmem:[#allocation76_spill] sm:$0xff]  ;;  %v6817_v3 = vld [vmem:[#allocation77_spill] sm:$0xff] }
 0x4ce   :  { %2244 = vmatprep.subr.bf16.mxu0 %v6807_v50  ;;  %2285 = vmatprep.subr.bf16.mxu1 %v6808_v48  ;;  %v6818_v50 = vld [vmem:[#allocation78_spill] sm:$0xff]  ;;  %v6819_v48 = vld [vmem:[#allocation79_spill] sm:$0xff] }
 0x4d1   :  { %2245 = vmatpush1.bf16.msra.mxu0 %v6809_v36  ;;  %2286 = vmatpush1.bf16.msra.mxu1 %v6810_v15  ;;  %v6820_v36 = vld [vmem:[#allocation80_spill] sm:$0xff] }
 0x4d2   :  { %2246 = vmatprep.subr.bf16.mxu0 %v6811_v17  ;;  %2287 = vmatprep.subr.bf16.mxu1 %v6812_v57 }
 0x4d5   :  { %2247 = vmatpush1.bf16.msra.mxu0 %v6813_v40  ;;  %2288 = vmatpush1.bf16.msra.mxu1 %v6814_v38 }
 0x4d6   :  { %2248 = vmatprep.subr.bf16.mxu0 %v6815_v23  ;;  %2289 = vmatprep.subr.bf16.mxu1 %v6816_v18 }
 0x4d9   :  { %2249 = vmatpush1.bf16.msra.mxu0 %v6817_v3  ;;  %2290 = vmatpush1.bf16.msra.mxu1 %v6818_v50 }
 0x4da   :  { %2300 = vmatprep.subr.bf16.mxu0 %v6819_v48  ;;  %2341 = vmatprep.subr.bf16.mxu1 %v6820_v36 }
 0x52f   :  { %v2042_v15 = vpop.f32.mrb[56].mxu0  ;;  %v2083_v17 = vpop.f32.mrb[56].mxu1 }
 0x530   :  { %v2172_v57 = vadd.f32 %v2042_v15, %v6821_v7  ;;  %v2174_v40 = vadd.f32 %v2083_v17, %v6822_v45  ;;  %v2044_v30 = vpop.f32.mrb[57].mxu0  ;;  %v2085_v38 = vpop.f32.mrb[57].mxu1  ;;  %v6825_v15 = vld [vmem:[#allocation178_spill] sm:$0xff] }
 0x531   :  { %v2173_v23 = vadd.f32 %v2044_v30, %v6823_v10  ;;  %v2175_v18 = vadd.f32 %v2085_v38, %v6824_v42  ;;  %v2046_v19 = vpop.f32.mrb[58].mxu0  ;;  %v2087_v3 = vpop.f32.mrb[58].mxu1 }
 0x532   :  { %v2047_v60 = vpop.f32.mrb[59].mxu0  ;;  %v2088_v50 = vpop.f32.mrb[59].mxu1  ;;  %v2188_v35 = vmul.f32 0.5, %v2174_v40  ;;  %v2180_v37 = vmul.f32 0.5, %v2172_v57  ;;  %v6827_v19 = vld [vmem:[#allocation180_spill] sm:$0xff] }
 0x533   :  { %v2189_v48 = vmul.f32 0.5, %v2175_v18  ;;  %v2181_v36 = vmul.f32 0.5, %v2173_v23  ;;  %v6828_v60 = vld [vmem:[#allocation182_spill] sm:$0xff] }
 0x534   :  { %3837 = vtanh.f32 %v2188_v35 }
 0x535   :  { %3839 = vtanh.f32 %v2189_v48 }
 0x536   :  { %3841 = vtanh.f32 %v2180_v37 }
 0x537   :  { %3843 = vtanh.f32 %v2181_v36 }
 0x53e   :  { %v3838_v57 = vpop.eup %3837 }
 0x53f   :  { %v3840_v37 = vpop.eup %3839  ;;  %v2192_v3 = vmul.f32 0.5, %v3838_v57 }
 0x540   :  { %v3842_v36 = vpop.eup %3841 }
 0x541   :  { %v3844_v23 = vpop.eup %3843  ;;  %v2194_v25 = vadd.f32 0.5, %v2192_v3 }
 0x542   :  { %v2185_v49 = vmul.f32 0.5, %v3844_v23 }
 0x56f   :  { %v2124_v7 = vpop.f32.mrb[60].mxu0  ;;  %v2165_v45 = vpop.f32.mrb[60].mxu1 }
 0x570   :  { %v2176_v17 = vadd.f32 %v2124_v7, %v6825_v15  ;;  %v2178_v10 = vadd.f32 %v2165_v45, %v6826_v59  ;;  %v2126_v30 = vpop.f32.mrb[61].mxu0  ;;  %v2167_v42 = vpop.f32.mrb[61].mxu1  ;;  %v2193_v15 = vmul.f32 0.5, %v3840_v37  ;;  %v2184_v45 = vmul.f32 0.5, %v3842_v36 }
 0x571   :  { %v2177_v38 = vadd.f32 %v2126_v30, %v6827_v19  ;;  %v2179_v50 = vadd.f32 %v2167_v42, %v6828_v60  ;;  %v2128_v40 = vpop.f32.mrb[62].mxu0  ;;  %v2169_v18 = vpop.f32.mrb[62].mxu1  ;;  %v2187_v60 = vadd.f32 0.5, %v2185_v49 }
 0x572   :  { %3845 = vtanh.f32 %v2176_v17  ;;  %v2129_v35 = vpop.f32.mrb[63].mxu0  ;;  %v2170_v48 = vpop.f32.mrb[63].mxu1  ;;  %v2198_v7 = vmul.f32 0.5, %v2178_v10  ;;  %v2195_v30 = vadd.f32 0.5, %v2193_v15  ;;  %v2186_v42 = vadd.f32 0.5, %v2184_v45  ;;  %v6830_v45 = vld [vmem:[#allocation121_spill] sm:$0xff] }
 0x573   :  { %3847 = vtanh.f32 %v2177_v38  ;;  %v2199_v59 = vmul.f32 0.5, %v2179_v50  ;;  %v2206_v40 = vmul.f32 %v2194_v25, %v5254_v0 }
 0x574   :  { %3849 = vtanh.f32 %v2198_v7  ;;  %v2207_v38 = vmul.f32 %v2195_v30, %v5256_v46  ;;  %v6831_v30 = vld [vmem:[#allocation122_spill] sm:$0xff] }
 0x575   :  { %3851 = vtanh.f32 %v2199_v59  ;;  %v6829_v59 = vld [vmem:[#allocation120_spill] sm:$0xff] }
 0x57c   :  { %v3846_v19 = vpop.eup %3845 }
 0x57d   :  { %v3848_v17 = vpop.eup %3847  ;;  %v2208_v18 = vmul.f32 %v3846_v19, %v2186_v42  ;;  %v6832_v42 = vld [vmem:[#allocation123_spill] sm:$0xff]  ;;  %v6833_v19 = vld [vmem:[#allocation124_spill] sm:$0xff] }
 0x57e   :  { %v2209_v35 = vmul.f32 %v3848_v17, %v2187_v60  ;;  %v3850_v50 = vpop.eup %3849  ;;  %v6834_v60 = vld [vmem:[#allocation125_spill] sm:$0xff]  ;;  %v6835_v17 = vld [vmem:[#allocation126_spill] sm:$0xff] }
 0x57f   :  { %v5404_v57 = vadd.f32 %v2208_v18, %v2206_v40  ;;  %v3852_v48 = vpop.eup %3851  ;;  %v2202_v37 = vmul.f32 0.5, %v3850_v50  ;;  %v6836_v40 = vld [vmem:[#allocation127_spill] sm:$0xff]  ;;  %v6837_v18 = vld [vmem:[#allocation128_spill] sm:$0xff] }
 0x580   :  { %v5406_v10 = vadd.f32 %v2209_v35, %v2207_v38  ;;  %v2203_v36 = vmul.f32 0.5, %v3852_v48  ;;  %v6838_v38 = vld [vmem:[#allocation129_spill] sm:$0xff]  ;;  %v6839_v35 = vld [vmem:[#allocation130_spill] sm:$0xff]  ;;  %v6840_v50 = vld [vmem:[#allocation131_spill] sm:$0xff] }
 0x581   :  { %3853 = vtanh.f32 %v5404_v57  ;;  %v2204_v49 = vadd.f32 0.5, %v2202_v37  ;;  %v6841_v48 = vld [vmem:[#allocation132_spill] sm:$0xff]  ;;  %v6842_v37 = vld [vmem:[#allocation133_spill] sm:$0xff] }
 0x582   :  { %3855 = vtanh.f32 %v5406_v10  ;;  %v2205_v3 = vadd.f32 0.5, %v2203_v36  ;;  %v6843_v36 = vld [vmem:[#allocation134_spill] sm:$0xff] }
 0x58b   :  { %v3854_v23 = vpop.eup %3853 }
 0x58c   :  { %v3856_v0 = vpop.eup %3855  ;;  %v2214_v25 = vmul.f32 %v3854_v23, %v2204_v49  ;;  %v6844_v49 = vld [vmem:[#allocation135_spill] sm:$0xff]  ;;  %v6845_v23 = vld [vmem:[#allocation136_spill] sm:$0xff] }
 0x58d   :  { %v2215_v7 = vmul.f32 %v3856_v0, %v2205_v3  ;;  %v6846_v3 = vld [vmem:[#allocation137_spill] sm:$0xff]  ;;  %v6847_v0 = vld [vmem:[#allocation138_spill] sm:$0xff] }
 0x58e   :  { %v5410_v15 = vpack.c.bf16 %v2214_v25, %v2214_v25  ;;  %v6848_v25 = vld [vmem:[#allocation139_spill] sm:$0xff] }
 0x58f   :  { %v2217_v46 = vpack.c.bf16 %v2215_v7, %v2215_v7  ;;  %v6849_v7 = vld [vmem:[#allocation140_spill] sm:$0xff] }
 0x591   :  { %2250 = vmatprep.mubr.bf16.mxu0 %v2217_v46  ;;  %2291 = vmatprep.mubr.bf16.mxu1 %v2217_v46 }
 0x592   :  { %2251 = vmatmul.mubr.bf16.vlgmr.msra.gmra.mrb[64].mxu0 %v5410_v15  ;;  %2292 = vmatmul.mubr.bf16.vlgmr.msra.gmra.mrb[64].mxu1 %v5410_v15 }
 0x593   :  { %2301 = vmatpush1.bf16.msra.mxu0 %v6531_v58  ;;  %2342 = vmatpush1.bf16.msra.mxu1 %v6532_v26 }
 0x594   :  { %2332 = vmatprep.mubr.bf16.mxu0 %v2217_v46  ;;  %2373 = vmatprep.mubr.bf16.mxu1 %v2217_v46  ;;  %v6850_v46 = vld [vmem:[#allocation141_spill] sm:$0xff] }
 0x595   :  { %2302 = vmatprep.subr.bf16.mxu0 %v6533_v6  ;;  %2343 = vmatprep.subr.bf16.mxu1 %v6534_v44 }
 0x597   :  { %2303 = vmatpush1.bf16.msra.mxu0 %v6535_v61  ;;  %2344 = vmatpush1.bf16.msra.mxu1 %v6536_v21 }
 0x598   :  { %2304 = vmatprep.subr.bf16.mxu0 %v6537_v43  ;;  %2345 = vmatprep.subr.bf16.mxu1 %v6538_v62 }
 0x59b   :  { %2305 = vmatpush1.bf16.msra.mxu0 %v6539_v55  ;;  %2346 = vmatpush1.bf16.msra.mxu1 %v6540_v47 }
 0x59c   :  { %2306 = vmatprep.subr.bf16.mxu0 %v6541_v22  ;;  %2347 = vmatprep.subr.bf16.mxu1 %v6542_v33 }
 0x59f   :  { %2307 = vmatpush1.bf16.msra.mxu0 %v6543_v14  ;;  %2348 = vmatpush1.bf16.msra.mxu1 %v6544_v4 }
 0x5a0   :  { %2308 = vmatprep.subr.bf16.mxu0 %v6545_v12  ;;  %2349 = vmatprep.subr.bf16.mxu1 %v6546_v13 }
 0x5a3   :  { %2309 = vmatpush1.bf16.msra.mxu0 %v6547_v34  ;;  %2350 = vmatpush1.bf16.msra.mxu1 %v6548_v39 }
 0x5a4   :  { %2310 = vmatprep.subr.bf16.mxu0 %v6635_v41  ;;  %2351 = vmatprep.subr.bf16.mxu1 %v6636_v9 }
 0x5a7   :  { %2311 = vmatpush1.bf16.msra.mxu0 %v6637_v8  ;;  %2352 = vmatpush1.bf16.msra.mxu1 %v6638_v2 }
 0x5a8   :  { %2312 = vmatprep.subr.bf16.mxu0 %v6639_v1  ;;  %2353 = vmatprep.subr.bf16.mxu1 %v6640_v63 }
 0x5ab   :  { %2313 = vmatpush1.bf16.msra.mxu0 %v6641_v20  ;;  %2354 = vmatpush1.bf16.msra.mxu1 %v6642_v24 }
 0x5ac   :  { %2314 = vmatprep.subr.bf16.mxu0 %v6643_v31  ;;  %2355 = vmatprep.subr.bf16.mxu1 %v6644_v27 }
 0x5af   :  { %2315 = vmatpush1.bf16.msra.mxu0 %v6645_v56  ;;  %2356 = vmatpush1.bf16.msra.mxu1 %v6646_v32 }
 0x5b0   :  { %2316 = vmatprep.subr.bf16.mxu0 %v6647_v11  ;;  %2357 = vmatprep.subr.bf16.mxu1 %v6648_v54 }
 0x5b3   :  { %2317 = vmatpush1.bf16.msra.mxu0 %v6649_v16  ;;  %2358 = vmatpush1.bf16.msra.mxu1 %v6650_v53 }
 0x5b4   :  { %2318 = vmatprep.subr.bf16.mxu0 %v6651_v28  ;;  %2359 = vmatprep.subr.bf16.mxu1 %v6652_v29 }
 0x5b7   :  { %2319 = vmatpush1.bf16.msra.mxu0 %v6653_v5  ;;  %2360 = vmatpush1.bf16.msra.mxu1 %v6568_v52 }
 0x5b8   :  { %2320 = vmatprep.subr.bf16.mxu0 %v6569_v51  ;;  %2361 = vmatprep.subr.bf16.mxu1 %v6829_v59 }
 0x5bb   :  { %2321 = vmatpush1.bf16.msra.mxu0 %v6830_v45  ;;  %2362 = vmatpush1.bf16.msra.mxu1 %v6831_v30  ;;  %v6923_v30 = vld [vmem:[#allocation185_spill] sm:$0xff] }
 0x5bc   :  { %2322 = vmatprep.subr.bf16.mxu0 %v6832_v42  ;;  %2363 = vmatprep.subr.bf16.mxu1 %v6833_v19 }
 0x5bf   :  { %2323 = vmatpush1.bf16.msra.mxu0 %v6834_v60  ;;  %2364 = vmatpush1.bf16.msra.mxu1 %v6835_v17 }
 0x5c0   :  { %2324 = vmatprep.subr.bf16.mxu0 %v6836_v40  ;;  %2365 = vmatprep.subr.bf16.mxu1 %v6837_v18  ;;  %v6920_v18 = vld [vmem:[#allocation156_spill] sm:$0xff]  ;;  %v6921_v40 = vld [vmem:[#allocation159_spill] sm:$0xff] }
 0x5c3   :  { %2325 = vmatpush1.bf16.msra.mxu0 %v6838_v38  ;;  %2366 = vmatpush1.bf16.msra.mxu1 %v6839_v35  ;;  %v6919_v35 = vld [vmem:[#allocation157_spill] sm:$0xff] }
 0x5c4   :  { %2326 = vmatprep.subr.bf16.mxu0 %v6840_v50  ;;  %2367 = vmatprep.subr.bf16.mxu1 %v6841_v48  ;;  %v6851_v50 = vld [vmem:[#allocation142_spill] sm:$0xff]  ;;  %v6852_v48 = vld [vmem:[#allocation15_spill] sm:$0xff] }
 0x5c7   :  { %2327 = vmatpush1.bf16.msra.mxu0 %v6842_v37  ;;  %2368 = vmatpush1.bf16.msra.mxu1 %v6843_v36  ;;  %v6853_v37 = vld [vmem:[#allocation16_spill] sm:$0xff]  ;;  %v6918_v36 = vld [vmem:[#allocation155_spill] sm:$0xff] }
 0x5c8   :  { %2328 = vmatprep.subr.bf16.mxu0 %v6844_v49  ;;  %2369 = vmatprep.subr.bf16.mxu1 %v6845_v23  ;;  %v6854_v23 = vld [vmem:[#allocation17_spill] sm:$0xff]  ;;  %v6863_v49 = vld [vmem:[#allocation26_spill] sm:$0xff] }
 0x5cb   :  { %2329 = vmatpush1.bf16.msra.mxu0 %v6846_v3  ;;  %2370 = vmatpush1.bf16.msra.mxu1 %v6847_v0  ;;  %v6855_v3 = vld [vmem:[#allocation18_spill] sm:$0xff]  ;;  %v6856_v0 = vld [vmem:[#allocation19_spill] sm:$0xff] }
 0x5cc   :  { %2330 = vmatprep.subr.bf16.mxu0 %v6848_v25  ;;  %2371 = vmatprep.subr.bf16.mxu1 %v6849_v7  ;;  %v6857_v25 = vld [vmem:[#allocation20_spill] sm:$0xff]  ;;  %v6858_v7 = vld [vmem:[#allocation21_spill] sm:$0xff] }
 0x5cf   :  { %2331 = vmatpush1.bf16.msra.mxu0 %v6850_v46  ;;  %2372 = vmatpush1.bf16.msra.mxu1 %v6851_v50  ;;  %v6859_v46 = vld [vmem:[#allocation22_spill] sm:$0xff]  ;;  %v6860_v50 = vld [vmem:[#allocation23_spill] sm:$0xff] }
 0x5d0   :  { %2428 = vmatprep.subr.bf16.mxu0 %v6852_v48  ;;  %2469 = vmatprep.subr.bf16.mxu1 %v6853_v37  ;;  %v6861_v48 = vld [vmem:[#allocation24_spill] sm:$0xff]  ;;  %v6862_v37 = vld [vmem:[#allocation25_spill] sm:$0xff] }
 0x5d2   :  { %2333 = vmatmul.mubr.bf16.vlgmr.msra.gmra.mrb[68].mxu0 %v5410_v15  ;;  %2374 = vmatmul.mubr.bf16.vlgmr.msra.gmra.mrb[68].mxu1 %v5410_v15  ;;  %v6864_v15 = vld [vmem:[#allocation27_spill] sm:$0xff] }
 0x5d3   :  { %2429 = vmatpush1.bf16.msra.mxu0 %v6854_v23  ;;  %2470 = vmatpush1.bf16.msra.mxu1 %v6855_v3  ;;  %v6865_v23 = vld [vmem:[#allocation28_spill] sm:$0xff]  ;;  %v6866_v3 = vld [vmem:[#allocation29_spill] sm:$0xff] }
 0x5d4   :  { %2430 = vmatprep.subr.bf16.mxu0 %v6856_v0  ;;  %2471 = vmatprep.subr.bf16.mxu1 %v6857_v25  ;;  %v6867_v0 = vld [vmem:[#allocation30_spill] sm:$0xff]  ;;  %v6868_v25 = vld [vmem:[#allocation31_spill] sm:$0xff] }
 0x5d7   :  { %2431 = vmatpush1.bf16.msra.mxu0 %v6858_v7  ;;  %2472 = vmatpush1.bf16.msra.mxu1 %v6859_v46  ;;  %v6869_v7 = vld [vmem:[#allocation32_spill] sm:$0xff]  ;;  %v6870_v46 = vld [vmem:[#allocation33_spill] sm:$0xff] }
 0x5d8   :  { %2432 = vmatprep.subr.bf16.mxu0 %v6860_v50  ;;  %2473 = vmatprep.subr.bf16.mxu1 %v6861_v48  ;;  %v6871_v50 = vld [vmem:[#allocation34_spill] sm:$0xff]  ;;  %v6872_v48 = vld [vmem:[#allocation35_spill] sm:$0xff] }
 0x5db   :  { %2433 = vmatpush1.bf16.msra.mxu0 %v6862_v37  ;;  %2474 = vmatpush1.bf16.msra.mxu1 %v6863_v49  ;;  %v6873_v37 = vld [vmem:[#allocation36_spill] sm:$0xff]  ;;  %v6874_v49 = vld [vmem:[#allocation37_spill] sm:$0xff] }
 0x5dc   :  { %2434 = vmatprep.subr.bf16.mxu0 %v6864_v15  ;;  %2475 = vmatprep.subr.bf16.mxu1 %v6865_v23  ;;  %v6875_v15 = vld [vmem:[#allocation38_spill] sm:$0xff]  ;;  %v6876_v23 = vld [vmem:[#allocation39_spill] sm:$0xff] }
 0x5df   :  { %2435 = vmatpush1.bf16.msra.mxu0 %v6866_v3  ;;  %2476 = vmatpush1.bf16.msra.mxu1 %v6867_v0  ;;  %v6877_v3 = vld [vmem:[#allocation40_spill] sm:$0xff]  ;;  %v6878_v0 = vld [vmem:[#allocation41_spill] sm:$0xff] }
 0x5e0   :  { %2436 = vmatprep.subr.bf16.mxu0 %v6868_v25  ;;  %2477 = vmatprep.subr.bf16.mxu1 %v6869_v7  ;;  %v6879_v25 = vld [vmem:[#allocation42_spill] sm:$0xff]  ;;  %v6880_v7 = vld [vmem:[#allocation43_spill] sm:$0xff] }
 0x5e3   :  { %2437 = vmatpush1.bf16.msra.mxu0 %v6870_v46  ;;  %2478 = vmatpush1.bf16.msra.mxu1 %v6871_v50  ;;  %v6881_v46 = vld [vmem:[#allocation44_spill] sm:$0xff]  ;;  %v6882_v50 = vld [vmem:[#allocation45_spill] sm:$0xff] }
 0x5e4   :  { %2438 = vmatprep.subr.bf16.mxu0 %v6872_v48  ;;  %2479 = vmatprep.subr.bf16.mxu1 %v6873_v37  ;;  %v6883_v48 = vld [vmem:[#allocation46_spill] sm:$0xff]  ;;  %v6884_v37 = vld [vmem:[#allocation47_spill] sm:$0xff] }
 0x5e7   :  { %2439 = vmatpush1.bf16.msra.mxu0 %v6874_v49  ;;  %2480 = vmatpush1.bf16.msra.mxu1 %v6875_v15  ;;  %v6885_v49 = vld [vmem:[#allocation48_spill] sm:$0xff]  ;;  %v6886_v15 = vld [vmem:[#allocation49_spill] sm:$0xff] }
 0x5e8   :  { %2440 = vmatprep.subr.bf16.mxu0 %v6876_v23  ;;  %2481 = vmatprep.subr.bf16.mxu1 %v6877_v3  ;;  %v6887_v23 = vld [vmem:[#allocation50_spill] sm:$0xff]  ;;  %v6888_v3 = vld [vmem:[#allocation51_spill] sm:$0xff] }
 0x5eb   :  { %2441 = vmatpush1.bf16.msra.mxu0 %v6878_v0  ;;  %2482 = vmatpush1.bf16.msra.mxu1 %v6879_v25  ;;  %v6889_v0 = vld [vmem:[#allocation52_spill] sm:$0xff]  ;;  %v6890_v25 = vld [vmem:[#allocation53_spill] sm:$0xff] }
 0x5ec   :  { %2442 = vmatprep.subr.bf16.mxu0 %v6880_v7  ;;  %2483 = vmatprep.subr.bf16.mxu1 %v6881_v46  ;;  %v6891_v7 = vld [vmem:[#allocation54_spill] sm:$0xff]  ;;  %v6892_v46 = vld [vmem:[#allocation55_spill] sm:$0xff] }
 0x5ef   :  { %2443 = vmatpush1.bf16.msra.mxu0 %v6882_v50  ;;  %2484 = vmatpush1.bf16.msra.mxu1 %v6883_v48  ;;  %v6893_v50 = vld [vmem:[#allocation56_spill] sm:$0xff]  ;;  %v6894_v48 = vld [vmem:[#allocation57_spill] sm:$0xff] }
 0x5f0   :  { %2444 = vmatprep.subr.bf16.mxu0 %v6884_v37  ;;  %2485 = vmatprep.subr.bf16.mxu1 %v6885_v49  ;;  %v6895_v37 = vld [vmem:[#allocation58_spill] sm:$0xff]  ;;  %v6896_v49 = vld [vmem:[#allocation59_spill] sm:$0xff] }
 0x5f3   :  { %2445 = vmatpush1.bf16.msra.mxu0 %v6886_v15  ;;  %2486 = vmatpush1.bf16.msra.mxu1 %v6887_v23  ;;  %v6897_v15 = vld [vmem:[#allocation60_spill] sm:$0xff]  ;;  %v6898_v23 = vld [vmem:[#allocation61_spill] sm:$0xff] }
 0x5f4   :  { %2446 = vmatprep.subr.bf16.mxu0 %v6888_v3  ;;  %2487 = vmatprep.subr.bf16.mxu1 %v6889_v0  ;;  %v6899_v3 = vld [vmem:[#allocation62_spill] sm:$0xff]  ;;  %v6900_v0 = vld [vmem:[#allocation63_spill] sm:$0xff] }
 0x5f7   :  { %2447 = vmatpush1.bf16.msra.mxu0 %v6890_v25  ;;  %2488 = vmatpush1.bf16.msra.mxu1 %v6891_v7  ;;  %v6901_v25 = vld [vmem:[#allocation64_spill] sm:$0xff]  ;;  %v6902_v7 = vld [vmem:[#allocation65_spill] sm:$0xff] }
 0x5f8   :  { %2448 = vmatprep.subr.bf16.mxu0 %v6892_v46  ;;  %2489 = vmatprep.subr.bf16.mxu1 %v6893_v50  ;;  %v6903_v46 = vld [vmem:[#allocation66_spill] sm:$0xff]  ;;  %v6904_v50 = vld [vmem:[#allocation67_spill] sm:$0xff] }
 0x5fb   :  { %2449 = vmatpush1.bf16.msra.mxu0 %v6894_v48  ;;  %2490 = vmatpush1.bf16.msra.mxu1 %v6895_v37  ;;  %v6905_v48 = vld [vmem:[#allocation68_spill] sm:$0xff]  ;;  %v6906_v37 = vld [vmem:[#allocation69_spill] sm:$0xff] }
 0x5fc   :  { %2450 = vmatprep.subr.bf16.mxu0 %v6896_v49  ;;  %2491 = vmatprep.subr.bf16.mxu1 %v6897_v15  ;;  %v6907_v49 = vld [vmem:[#allocation70_spill] sm:$0xff]  ;;  %v6908_v15 = vld [vmem:[#allocation71_spill] sm:$0xff] }
 0x5ff   :  { %2451 = vmatpush1.bf16.msra.mxu0 %v6898_v23  ;;  %2492 = vmatpush1.bf16.msra.mxu1 %v6899_v3  ;;  %v6909_v23 = vld [vmem:[#allocation72_spill] sm:$0xff]  ;;  %v6910_v3 = vld [vmem:[#allocation73_spill] sm:$0xff] }
 0x600   :  { %2452 = vmatprep.subr.bf16.mxu0 %v6900_v0  ;;  %2493 = vmatprep.subr.bf16.mxu1 %v6901_v25  ;;  %v6911_v0 = vld [vmem:[#allocation74_spill] sm:$0xff]  ;;  %v6912_v25 = vld [vmem:[#allocation75_spill] sm:$0xff] }
 0x603   :  { %2453 = vmatpush1.bf16.msra.mxu0 %v6902_v7  ;;  %2494 = vmatpush1.bf16.msra.mxu1 %v6903_v46  ;;  %v6913_v7 = vld [vmem:[#allocation76_spill] sm:$0xff]  ;;  %v6914_v46 = vld [vmem:[#allocation77_spill] sm:$0xff] }
 0x604   :  { %2454 = vmatprep.subr.bf16.mxu0 %v6904_v50  ;;  %2495 = vmatprep.subr.bf16.mxu1 %v6905_v48  ;;  %v6915_v50 = vld [vmem:[#allocation78_spill] sm:$0xff]  ;;  %v6916_v48 = vld [vmem:[#allocation79_spill] sm:$0xff] }
 0x607   :  { %2455 = vmatpush1.bf16.msra.mxu0 %v6906_v37  ;;  %2496 = vmatpush1.bf16.msra.mxu1 %v6907_v49  ;;  %v6917_v37 = vld [vmem:[#allocation80_spill] sm:$0xff] }
 0x608   :  { %2456 = vmatprep.subr.bf16.mxu0 %v6908_v15  ;;  %2497 = vmatprep.subr.bf16.mxu1 %v6909_v23 }
 0x60b   :  { %2457 = vmatpush1.bf16.msra.mxu0 %v6910_v3  ;;  %2498 = vmatpush1.bf16.msra.mxu1 %v6911_v0 }
 0x60c   :  { %2458 = vmatprep.subr.bf16.mxu0 %v6912_v25  ;;  %2499 = vmatprep.subr.bf16.mxu1 %v6913_v7 }
 0x60f   :  { %2459 = vmatpush1.bf16.msra.mxu0 %v6914_v46  ;;  %2500 = vmatpush1.bf16.msra.mxu1 %v6915_v50 }
 0x610   :  { %2510 = vmatprep.subr.bf16.mxu0 %v6916_v48  ;;  %2551 = vmatprep.subr.bf16.mxu1 %v6917_v37 }
 0x665   :  { %v2252_v49 = vpop.f32.mrb[64].mxu0  ;;  %v2293_v15 = vpop.f32.mrb[64].mxu1 }
 0x666   :  { %v2382_v23 = vadd.f32 %v2252_v49, %v6918_v36  ;;  %v2384_v3 = vadd.f32 %v2293_v15, %v6919_v35  ;;  %v2254_v38 = vpop.f32.mrb[65].mxu0  ;;  %v2295_v0 = vpop.f32.mrb[65].mxu1  ;;  %v6922_v49 = vld [vmem:[#allocation183_spill] sm:$0xff] }
 0x667   :  { %v2383_v25 = vadd.f32 %v2254_v38, %v6920_v18  ;;  %v2385_v7 = vadd.f32 %v2295_v0, %v6921_v40  ;;  %v2256_v17 = vpop.f32.mrb[66].mxu0  ;;  %v2297_v46 = vpop.f32.mrb[66].mxu1 }
 0x668   :  { %v2257_v60 = vpop.f32.mrb[67].mxu0  ;;  %v2298_v50 = vpop.f32.mrb[67].mxu1  ;;  %v2398_v19 = vmul.f32 0.5, %v2384_v3  ;;  %v2390_v42 = vmul.f32 0.5, %v2382_v23  ;;  %v6924_v17 = vld [vmem:[#allocation184_spill] sm:$0xff] }
 0x669   :  { %v2399_v48 = vmul.f32 0.5, %v2385_v7  ;;  %v2391_v37 = vmul.f32 0.5, %v2383_v25  ;;  %v6925_v60 = vld [vmem:[#allocation187_spill] sm:$0xff] }
 0x66a   :  { %3857 = vtanh.f32 %v2398_v19 }
 0x66b   :  { %3859 = vtanh.f32 %v2399_v48 }
 0x66c   :  { %3861 = vtanh.f32 %v2390_v42 }
 0x66d   :  { %3863 = vtanh.f32 %v2391_v37 }
 0x674   :  { %v3858_v23 = vpop.eup %3857 }
 0x675   :  { %v3860_v42 = vpop.eup %3859  ;;  %v2402_v46 = vmul.f32 0.5, %v3858_v23 }
 0x676   :  { %v3862_v37 = vpop.eup %3861 }
 0x677   :  { %v3864_v25 = vpop.eup %3863  ;;  %v2404_v59 = vadd.f32 0.5, %v2402_v46 }
 0x678   :  { %v2395_v45 = vmul.f32 0.5, %v3864_v25 }
 0x6a5   :  { %v2334_v36 = vpop.f32.mrb[68].mxu0  ;;  %v2375_v35 = vpop.f32.mrb[68].mxu1 }
 0x6a6   :  { %v2386_v15 = vadd.f32 %v2334_v36, %v6922_v49  ;;  %v2388_v18 = vadd.f32 %v2375_v35, %v6923_v30  ;;  %v2336_v38 = vpop.f32.mrb[69].mxu0  ;;  %v2377_v40 = vpop.f32.mrb[69].mxu1  ;;  %v2403_v49 = vmul.f32 0.5, %v3860_v42  ;;  %v2394_v35 = vmul.f32 0.5, %v3862_v37 }
 0x6a7   :  { %v2387_v0 = vadd.f32 %v2336_v38, %v6924_v17  ;;  %v2389_v50 = vadd.f32 %v2377_v40, %v6925_v60  ;;  %v2338_v3 = vpop.f32.mrb[70].mxu0  ;;  %v2379_v7 = vpop.f32.mrb[70].mxu1  ;;  %v2397_v60 = vadd.f32 0.5, %v2395_v45 }
 0x6a8   :  { %3865 = vtanh.f32 %v2386_v15  ;;  %v2339_v19 = vpop.f32.mrb[71].mxu0  ;;  %v2380_v48 = vpop.f32.mrb[71].mxu1  ;;  %v2408_v36 = vmul.f32 0.5, %v2388_v18  ;;  %v2405_v38 = vadd.f32 0.5, %v2403_v49  ;;  %v2396_v40 = vadd.f32 0.5, %v2394_v35  ;;  %v6927_v35 = vld [vmem:[#allocation121_spill] sm:$0xff] }
 0x6a9   :  { %3867 = vtanh.f32 %v2387_v0  ;;  %v2409_v30 = vmul.f32 0.5, %v2389_v50  ;;  %v2416_v3 = vmul.f32 %v2404_v59, %v5404_v57 }
 0x6aa   :  { %3869 = vtanh.f32 %v2408_v36  ;;  %v2417_v0 = vmul.f32 %v2405_v38, %v5406_v10  ;;  %v6928_v38 = vld [vmem:[#allocation122_spill] sm:$0xff] }
 0x6ab   :  { %3871 = vtanh.f32 %v2409_v30  ;;  %v6926_v30 = vld [vmem:[#allocation120_spill] sm:$0xff] }
 0x6b2   :  { %v3866_v17 = vpop.eup %3865 }
 0x6b3   :  { %v3868_v15 = vpop.eup %3867  ;;  %v2418_v7 = vmul.f32 %v3866_v17, %v2396_v40  ;;  %v6929_v40 = vld [vmem:[#allocation123_spill] sm:$0xff]  ;;  %v6930_v17 = vld [vmem:[#allocation124_spill] sm:$0xff] }
 0x6b4   :  { %v2419_v19 = vmul.f32 %v3868_v15, %v2397_v60  ;;  %v3870_v50 = vpop.eup %3869  ;;  %v6931_v60 = vld [vmem:[#allocation125_spill] sm:$0xff]  ;;  %v6932_v15 = vld [vmem:[#allocation126_spill] sm:$0xff] }
 0x6b5   :  { %v5554_v23 = vadd.f32 %v2418_v7, %v2416_v3  ;;  %v3872_v48 = vpop.eup %3871  ;;  %v2412_v42 = vmul.f32 0.5, %v3870_v50  ;;  %v6933_v3 = vld [vmem:[#allocation127_spill] sm:$0xff]  ;;  %v6934_v7 = vld [vmem:[#allocation128_spill] sm:$0xff] }
 0x6b6   :  { %v5556_v18 = vadd.f32 %v2419_v19, %v2417_v0  ;;  %v2413_v37 = vmul.f32 0.5, %v3872_v48  ;;  %v6935_v0 = vld [vmem:[#allocation129_spill] sm:$0xff]  ;;  %v6936_v19 = vld [vmem:[#allocation130_spill] sm:$0xff]  ;;  %v6937_v50 = vld [vmem:[#allocation131_spill] sm:$0xff] }
 0x6b7   :  { %3873 = vtanh.f32 %v5554_v23  ;;  %v2414_v45 = vadd.f32 0.5, %v2412_v42  ;;  %v6938_v48 = vld [vmem:[#allocation132_spill] sm:$0xff]  ;;  %v6939_v42 = vld [vmem:[#allocation133_spill] sm:$0xff] }
 0x6b8   :  { %3875 = vtanh.f32 %v5556_v18  ;;  %v2415_v46 = vadd.f32 0.5, %v2413_v37  ;;  %v6940_v37 = vld [vmem:[#allocation134_spill] sm:$0xff] }
 0x6c1   :  { %v3874_v25 = vpop.eup %3873 }
 0x6c2   :  { %v3876_v57 = vpop.eup %3875  ;;  %v2424_v59 = vmul.f32 %v3874_v25, %v2414_v45  ;;  %v6941_v45 = vld [vmem:[#allocation135_spill] sm:$0xff]  ;;  %v6942_v25 = vld [vmem:[#allocation136_spill] sm:$0xff] }
 0x6c3   :  { %v2425_v36 = vmul.f32 %v3876_v57, %v2415_v46  ;;  %v6943_v46 = vld [vmem:[#allocation137_spill] sm:$0xff]  ;;  %v6944_v57 = vld [vmem:[#allocation138_spill] sm:$0xff] }
 0x6c4   :  { %v5560_v49 = vpack.c.bf16 %v2424_v59, %v2424_v59  ;;  %v6945_v59 = vld [vmem:[#allocation139_spill] sm:$0xff] }
 0x6c5   :  { %v2427_v10 = vpack.c.bf16 %v2425_v36, %v2425_v36  ;;  %v6946_v36 = vld [vmem:[#allocation140_spill] sm:$0xff] }
 0x6c7   :  { %2460 = vmatprep.mubr.bf16.mxu0 %v2427_v10  ;;  %2501 = vmatprep.mubr.bf16.mxu1 %v2427_v10 }
 0x6c8   :  { %2461 = vmatmul.mubr.bf16.vlgmr.msra.gmra.mrb[72].mxu0 %v5560_v49  ;;  %2502 = vmatmul.mubr.bf16.vlgmr.msra.gmra.mrb[72].mxu1 %v5560_v49 }
 0x6c9   :  { %2511 = vmatpush1.bf16.msra.mxu0 %v6531_v58  ;;  %2552 = vmatpush1.bf16.msra.mxu1 %v6532_v26 }
 0x6ca   :  { %2542 = vmatprep.mubr.bf16.mxu0 %v2427_v10  ;;  %2583 = vmatprep.mubr.bf16.mxu1 %v2427_v10  ;;  %v6947_v10 = vld [vmem:[#allocation141_spill] sm:$0xff] }
 0x6cb   :  { %2512 = vmatprep.subr.bf16.mxu0 %v6533_v6  ;;  %2553 = vmatprep.subr.bf16.mxu1 %v6534_v44 }
 0x6cd   :  { %2513 = vmatpush1.bf16.msra.mxu0 %v6535_v61  ;;  %2554 = vmatpush1.bf16.msra.mxu1 %v6536_v21 }
 0x6ce   :  { %2514 = vmatprep.subr.bf16.mxu0 %v6537_v43  ;;  %2555 = vmatprep.subr.bf16.mxu1 %v6538_v62 }
 0x6d1   :  { %2515 = vmatpush1.bf16.msra.mxu0 %v6539_v55  ;;  %2556 = vmatpush1.bf16.msra.mxu1 %v6540_v47 }
 0x6d2   :  { %2516 = vmatprep.subr.bf16.mxu0 %v6541_v22  ;;  %2557 = vmatprep.subr.bf16.mxu1 %v6542_v33 }
 0x6d5   :  { %2517 = vmatpush1.bf16.msra.mxu0 %v6543_v14  ;;  %2558 = vmatpush1.bf16.msra.mxu1 %v6544_v4 }
 0x6d6   :  { %2518 = vmatprep.subr.bf16.mxu0 %v6545_v12  ;;  %2559 = vmatprep.subr.bf16.mxu1 %v6546_v13 }
 0x6d9   :  { %2519 = vmatpush1.bf16.msra.mxu0 %v6547_v34  ;;  %2560 = vmatpush1.bf16.msra.mxu1 %v6548_v39 }
 0x6da   :  { %2520 = vmatprep.subr.bf16.mxu0 %v6635_v41  ;;  %2561 = vmatprep.subr.bf16.mxu1 %v6636_v9 }
 0x6dd   :  { %2521 = vmatpush1.bf16.msra.mxu0 %v6637_v8  ;;  %2562 = vmatpush1.bf16.msra.mxu1 %v6638_v2 }
 0x6de   :  { %2522 = vmatprep.subr.bf16.mxu0 %v6639_v1  ;;  %2563 = vmatprep.subr.bf16.mxu1 %v6640_v63 }
 0x6e1   :  { %2523 = vmatpush1.bf16.msra.mxu0 %v6641_v20  ;;  %2564 = vmatpush1.bf16.msra.mxu1 %v6642_v24 }
 0x6e2   :  { %2524 = vmatprep.subr.bf16.mxu0 %v6643_v31  ;;  %2565 = vmatprep.subr.bf16.mxu1 %v6644_v27 }
 0x6e5   :  { %2525 = vmatpush1.bf16.msra.mxu0 %v6645_v56  ;;  %2566 = vmatpush1.bf16.msra.mxu1 %v6646_v32 }
 0x6e6   :  { %2526 = vmatprep.subr.bf16.mxu0 %v6647_v11  ;;  %2567 = vmatprep.subr.bf16.mxu1 %v6648_v54 }
 0x6e9   :  { %2527 = vmatpush1.bf16.msra.mxu0 %v6649_v16  ;;  %2568 = vmatpush1.bf16.msra.mxu1 %v6650_v53 }
 0x6ea   :  { %2528 = vmatprep.subr.bf16.mxu0 %v6651_v28  ;;  %2569 = vmatprep.subr.bf16.mxu1 %v6652_v29 }
 0x6ed   :  { %2529 = vmatpush1.bf16.msra.mxu0 %v6653_v5  ;;  %2570 = vmatpush1.bf16.msra.mxu1 %v6568_v52 }
 0x6ee   :  { %2530 = vmatprep.subr.bf16.mxu0 %v6569_v51  ;;  %2571 = vmatprep.subr.bf16.mxu1 %v6926_v30 }
 0x6f1   :  { %2531 = vmatpush1.bf16.msra.mxu0 %v6927_v35  ;;  %2572 = vmatpush1.bf16.msra.mxu1 %v6928_v38  ;;  %v7020_v38 = vld [vmem:[#allocation189_spill] sm:$0xff] }
 0x6f2   :  { %2532 = vmatprep.subr.bf16.mxu0 %v6929_v40  ;;  %2573 = vmatprep.subr.bf16.mxu1 %v6930_v17 }
 0x6f5   :  { %2533 = vmatpush1.bf16.msra.mxu0 %v6931_v60  ;;  %2574 = vmatpush1.bf16.msra.mxu1 %v6932_v15 }
 0x6f6   :  { %2534 = vmatprep.subr.bf16.mxu0 %v6933_v3  ;;  %2575 = vmatprep.subr.bf16.mxu1 %v6934_v7  ;;  %v7017_v7 = vld [vmem:[#allocation160_spill] sm:$0xff]  ;;  %v7018_v3 = vld [vmem:[#allocation162_spill] sm:$0xff] }
 0x6f9   :  { %2535 = vmatpush1.bf16.msra.mxu0 %v6935_v0  ;;  %2576 = vmatpush1.bf16.msra.mxu1 %v6936_v19  ;;  %v7016_v19 = vld [vmem:[#allocation161_spill] sm:$0xff] }
 0x6fa   :  { %2536 = vmatprep.subr.bf16.mxu0 %v6937_v50  ;;  %2577 = vmatprep.subr.bf16.mxu1 %v6938_v48  ;;  %v6948_v50 = vld [vmem:[#allocation142_spill] sm:$0xff]  ;;  %v6949_v48 = vld [vmem:[#allocation15_spill] sm:$0xff] }
 0x6fd   :  { %2537 = vmatpush1.bf16.msra.mxu0 %v6939_v42  ;;  %2578 = vmatpush1.bf16.msra.mxu1 %v6940_v37  ;;  %v6950_v42 = vld [vmem:[#allocation16_spill] sm:$0xff]  ;;  %v7015_v37 = vld [vmem:[#allocation158_spill] sm:$0xff] }
 0x6fe   :  { %2538 = vmatprep.subr.bf16.mxu0 %v6941_v45  ;;  %2579 = vmatprep.subr.bf16.mxu1 %v6942_v25  ;;  %v6951_v25 = vld [vmem:[#allocation17_spill] sm:$0xff]  ;;  %v6960_v45 = vld [vmem:[#allocation26_spill] sm:$0xff] }
 0x701   :  { %2539 = vmatpush1.bf16.msra.mxu0 %v6943_v46  ;;  %2580 = vmatpush1.bf16.msra.mxu1 %v6944_v57  ;;  %v6952_v46 = vld [vmem:[#allocation18_spill] sm:$0xff]  ;;  %v6953_v57 = vld [vmem:[#allocation19_spill] sm:$0xff] }
 0x702   :  { %2540 = vmatprep.subr.bf16.mxu0 %v6945_v59  ;;  %2581 = vmatprep.subr.bf16.mxu1 %v6946_v36  ;;  %v6954_v59 = vld [vmem:[#allocation20_spill] sm:$0xff]  ;;  %v6955_v36 = vld [vmem:[#allocation21_spill] sm:$0xff] }
 0x705   :  { %2541 = vmatpush1.bf16.msra.mxu0 %v6947_v10  ;;  %2582 = vmatpush1.bf16.msra.mxu1 %v6948_v50  ;;  %v6956_v10 = vld [vmem:[#allocation22_spill] sm:$0xff]  ;;  %v6957_v50 = vld [vmem:[#allocation23_spill] sm:$0xff] }
 0x706   :  { %2638 = vmatprep.subr.bf16.mxu0 %v6949_v48  ;;  %2679 = vmatprep.subr.bf16.mxu1 %v6950_v42  ;;  %v6958_v48 = vld [vmem:[#allocation24_spill] sm:$0xff]  ;;  %v6959_v42 = vld [vmem:[#allocation25_spill] sm:$0xff] }
 0x708   :  { %2543 = vmatmul.mubr.bf16.vlgmr.msra.gmra.mrb[76].mxu0 %v5560_v49  ;;  %2584 = vmatmul.mubr.bf16.vlgmr.msra.gmra.mrb[76].mxu1 %v5560_v49  ;;  %v6961_v49 = vld [vmem:[#allocation27_spill] sm:$0xff] }
 0x709   :  { %2639 = vmatpush1.bf16.msra.mxu0 %v6951_v25  ;;  %2680 = vmatpush1.bf16.msra.mxu1 %v6952_v46  ;;  %v6962_v25 = vld [vmem:[#allocation28_spill] sm:$0xff]  ;;  %v6963_v46 = vld [vmem:[#allocation29_spill] sm:$0xff] }
 0x70a   :  { %2640 = vmatprep.subr.bf16.mxu0 %v6953_v57  ;;  %2681 = vmatprep.subr.bf16.mxu1 %v6954_v59  ;;  %v6964_v57 = vld [vmem:[#allocation30_spill] sm:$0xff]  ;;  %v6965_v59 = vld [vmem:[#allocation31_spill] sm:$0xff] }
 0x70d   :  { %2641 = vmatpush1.bf16.msra.mxu0 %v6955_v36  ;;  %2682 = vmatpush1.bf16.msra.mxu1 %v6956_v10  ;;  %v6966_v36 = vld [vmem:[#allocation32_spill] sm:$0xff]  ;;  %v6967_v10 = vld [vmem:[#allocation33_spill] sm:$0xff] }
 0x70e   :  { %2642 = vmatprep.subr.bf16.mxu0 %v6957_v50  ;;  %2683 = vmatprep.subr.bf16.mxu1 %v6958_v48  ;;  %v6968_v50 = vld [vmem:[#allocation34_spill] sm:$0xff]  ;;  %v6969_v48 = vld [vmem:[#allocation35_spill] sm:$0xff] }
 0x711   :  { %2643 = vmatpush1.bf16.msra.mxu0 %v6959_v42  ;;  %2684 = vmatpush1.bf16.msra.mxu1 %v6960_v45  ;;  %v6970_v42 = vld [vmem:[#allocation36_spill] sm:$0xff]  ;;  %v6971_v45 = vld [vmem:[#allocation37_spill] sm:$0xff] }
 0x712   :  { %2644 = vmatprep.subr.bf16.mxu0 %v6961_v49  ;;  %2685 = vmatprep.subr.bf16.mxu1 %v6962_v25  ;;  %v6972_v49 = vld [vmem:[#allocation38_spill] sm:$0xff]  ;;  %v6973_v25 = vld [vmem:[#allocation39_spill] sm:$0xff] }
 0x715   :  { %2645 = vmatpush1.bf16.msra.mxu0 %v6963_v46  ;;  %2686 = vmatpush1.bf16.msra.mxu1 %v6964_v57  ;;  %v6974_v46 = vld [vmem:[#allocation40_spill] sm:$0xff]  ;;  %v6975_v57 = vld [vmem:[#allocation41_spill] sm:$0xff] }
 0x716   :  { %2646 = vmatprep.subr.bf16.mxu0 %v6965_v59  ;;  %2687 = vmatprep.subr.bf16.mxu1 %v6966_v36  ;;  %v6976_v59 = vld [vmem:[#allocation42_spill] sm:$0xff]  ;;  %v6977_v36 = vld [vmem:[#allocation43_spill] sm:$0xff] }
 0x719   :  { %2647 = vmatpush1.bf16.msra.mxu0 %v6967_v10  ;;  %2688 = vmatpush1.bf16.msra.mxu1 %v6968_v50  ;;  %v6978_v10 = vld [vmem:[#allocation44_spill] sm:$0xff]  ;;  %v6979_v50 = vld [vmem:[#allocation45_spill] sm:$0xff] }
 0x71a   :  { %2648 = vmatprep.subr.bf16.mxu0 %v6969_v48  ;;  %2689 = vmatprep.subr.bf16.mxu1 %v6970_v42  ;;  %v6980_v48 = vld [vmem:[#allocation46_spill] sm:$0xff]  ;;  %v6981_v42 = vld [vmem:[#allocation47_spill] sm:$0xff] }
 0x71d   :  { %2649 = vmatpush1.bf16.msra.mxu0 %v6971_v45  ;;  %2690 = vmatpush1.bf16.msra.mxu1 %v6972_v49  ;;  %v6982_v45 = vld [vmem:[#allocation48_spill] sm:$0xff]  ;;  %v6983_v49 = vld [vmem:[#allocation49_spill] sm:$0xff] }
 0x71e   :  { %2650 = vmatprep.subr.bf16.mxu0 %v6973_v25  ;;  %2691 = vmatprep.subr.bf16.mxu1 %v6974_v46  ;;  %v6984_v25 = vld [vmem:[#allocation50_spill] sm:$0xff]  ;;  %v6985_v46 = vld [vmem:[#allocation51_spill] sm:$0xff] }
 0x721   :  { %2651 = vmatpush1.bf16.msra.mxu0 %v6975_v57  ;;  %2692 = vmatpush1.bf16.msra.mxu1 %v6976_v59  ;;  %v6986_v57 = vld [vmem:[#allocation52_spill] sm:$0xff]  ;;  %v6987_v59 = vld [vmem:[#allocation53_spill] sm:$0xff] }
 0x722   :  { %2652 = vmatprep.subr.bf16.mxu0 %v6977_v36  ;;  %2693 = vmatprep.subr.bf16.mxu1 %v6978_v10  ;;  %v6988_v36 = vld [vmem:[#allocation54_spill] sm:$0xff]  ;;  %v6989_v10 = vld [vmem:[#allocation55_spill] sm:$0xff] }
 0x725   :  { %2653 = vmatpush1.bf16.msra.mxu0 %v6979_v50  ;;  %2694 = vmatpush1.bf16.msra.mxu1 %v6980_v48  ;;  %v6990_v50 = vld [vmem:[#allocation56_spill] sm:$0xff]  ;;  %v6991_v48 = vld [vmem:[#allocation57_spill] sm:$0xff] }
 0x726   :  { %2654 = vmatprep.subr.bf16.mxu0 %v6981_v42  ;;  %2695 = vmatprep.subr.bf16.mxu1 %v6982_v45  ;;  %v6992_v42 = vld [vmem:[#allocation58_spill] sm:$0xff]  ;;  %v6993_v45 = vld [vmem:[#allocation59_spill] sm:$0xff] }
 0x729   :  { %2655 = vmatpush1.bf16.msra.mxu0 %v6983_v49  ;;  %2696 = vmatpush1.bf16.msra.mxu1 %v6984_v25  ;;  %v6994_v49 = vld [vmem:[#allocation60_spill] sm:$0xff]  ;;  %v6995_v25 = vld [vmem:[#allocation61_spill] sm:$0xff] }
 0x72a   :  { %2656 = vmatprep.subr.bf16.mxu0 %v6985_v46  ;;  %2697 = vmatprep.subr.bf16.mxu1 %v6986_v57  ;;  %v6996_v46 = vld [vmem:[#allocation62_spill] sm:$0xff]  ;;  %v6997_v57 = vld [vmem:[#allocation63_spill] sm:$0xff] }
 0x72d   :  { %2657 = vmatpush1.bf16.msra.mxu0 %v6987_v59  ;;  %2698 = vmatpush1.bf16.msra.mxu1 %v6988_v36  ;;  %v6998_v59 = vld [vmem:[#allocation64_spill] sm:$0xff]  ;;  %v6999_v36 = vld [vmem:[#allocation65_spill] sm:$0xff] }
 0x72e   :  { %2658 = vmatprep.subr.bf16.mxu0 %v6989_v10  ;;  %2699 = vmatprep.subr.bf16.mxu1 %v6990_v50  ;;  %v7000_v10 = vld [vmem:[#allocation66_spill] sm:$0xff]  ;;  %v7001_v50 = vld [vmem:[#allocation67_spill] sm:$0xff] }
 0x731   :  { %2659 = vmatpush1.bf16.msra.mxu0 %v6991_v48  ;;  %2700 = vmatpush1.bf16.msra.mxu1 %v6992_v42  ;;  %v7002_v48 = vld [vmem:[#allocation68_spill] sm:$0xff]  ;;  %v7003_v42 = vld [vmem:[#allocation69_spill] sm:$0xff] }
 0x732   :  { %2660 = vmatprep.subr.bf16.mxu0 %v6993_v45  ;;  %2701 = vmatprep.subr.bf16.mxu1 %v6994_v49  ;;  %v7004_v45 = vld [vmem:[#allocation70_spill] sm:$0xff]  ;;  %v7005_v49 = vld [vmem:[#allocation71_spill] sm:$0xff] }
 0x735   :  { %2661 = vmatpush1.bf16.msra.mxu0 %v6995_v25  ;;  %2702 = vmatpush1.bf16.msra.mxu1 %v6996_v46  ;;  %v7006_v25 = vld [vmem:[#allocation72_spill] sm:$0xff]  ;;  %v7007_v46 = vld [vmem:[#allocation73_spill] sm:$0xff] }
 0x736   :  { %2662 = vmatprep.subr.bf16.mxu0 %v6997_v57  ;;  %2703 = vmatprep.subr.bf16.mxu1 %v6998_v59  ;;  %v7008_v57 = vld [vmem:[#allocation74_spill] sm:$0xff]  ;;  %v7009_v59 = vld [vmem:[#allocation75_spill] sm:$0xff] }
 0x739   :  { %2663 = vmatpush1.bf16.msra.mxu0 %v6999_v36  ;;  %2704 = vmatpush1.bf16.msra.mxu1 %v7000_v10  ;;  %v7010_v36 = vld [vmem:[#allocation76_spill] sm:$0xff]  ;;  %v7011_v10 = vld [vmem:[#allocation77_spill] sm:$0xff] }
 0x73a   :  { %2664 = vmatprep.subr.bf16.mxu0 %v7001_v50  ;;  %2705 = vmatprep.subr.bf16.mxu1 %v7002_v48  ;;  %v7012_v50 = vld [vmem:[#allocation78_spill] sm:$0xff]  ;;  %v7013_v48 = vld [vmem:[#allocation79_spill] sm:$0xff] }
 0x73d   :  { %2665 = vmatpush1.bf16.msra.mxu0 %v7003_v42  ;;  %2706 = vmatpush1.bf16.msra.mxu1 %v7004_v45  ;;  %v7014_v42 = vld [vmem:[#allocation80_spill] sm:$0xff] }
 0x73e   :  { %2666 = vmatprep.subr.bf16.mxu0 %v7005_v49  ;;  %2707 = vmatprep.subr.bf16.mxu1 %v7006_v25 }
 0x741   :  { %2667 = vmatpush1.bf16.msra.mxu0 %v7007_v46  ;;  %2708 = vmatpush1.bf16.msra.mxu1 %v7008_v57 }
 0x742   :  { %2668 = vmatprep.subr.bf16.mxu0 %v7009_v59  ;;  %2709 = vmatprep.subr.bf16.mxu1 %v7010_v36 }
 0x745   :  { %2669 = vmatpush1.bf16.msra.mxu0 %v7011_v10  ;;  %2710 = vmatpush1.bf16.msra.mxu1 %v7012_v50 }
 0x746   :  { %2720 = vmatprep.subr.bf16.mxu0 %v7013_v48  ;;  %2761 = vmatprep.subr.bf16.mxu1 %v7014_v42 }
 0x79b   :  { %v2462_v45 = vpop.f32.mrb[72].mxu0  ;;  %v2503_v49 = vpop.f32.mrb[72].mxu1 }
 0x79c   :  { %v2592_v25 = vadd.f32 %v2462_v45, %v7015_v37  ;;  %v2594_v46 = vadd.f32 %v2503_v49, %v7016_v19  ;;  %v2464_v0 = vpop.f32.mrb[73].mxu0  ;;  %v2505_v57 = vpop.f32.mrb[73].mxu1  ;;  %v7019_v45 = vld [vmem:[#allocation186_spill] sm:$0xff] }
 0x79d   :  { %v2593_v59 = vadd.f32 %v2464_v0, %v7017_v7  ;;  %v2595_v36 = vadd.f32 %v2505_v57, %v7018_v3  ;;  %v2466_v15 = vpop.f32.mrb[74].mxu0  ;;  %v2507_v10 = vpop.f32.mrb[74].mxu1 }
 0x79e   :  { %v2467_v60 = vpop.f32.mrb[75].mxu0  ;;  %v2508_v50 = vpop.f32.mrb[75].mxu1  ;;  %v2608_v17 = vmul.f32 0.5, %v2594_v46  ;;  %v2600_v40 = vmul.f32 0.5, %v2592_v25  ;;  %v7021_v15 = vld [vmem:[#allocation188_spill] sm:$0xff] }
 0x79f   :  { %v2609_v48 = vmul.f32 0.5, %v2595_v36  ;;  %v2601_v42 = vmul.f32 0.5, %v2593_v59  ;;  %v7022_v60 = vld [vmem:[#allocation190_spill] sm:$0xff] }
 0x7a0   :  { %3877 = vtanh.f32 %v2608_v17 }
 0x7a1   :  { %3879 = vtanh.f32 %v2609_v48 }
 0x7a2   :  { %3881 = vtanh.f32 %v2600_v40 }
 0x7a3   :  { %3883 = vtanh.f32 %v2601_v42 }
 0x7aa   :  { %v3878_v25 = vpop.eup %3877 }
 0x7ab   :  { %v3880_v40 = vpop.eup %3879  ;;  %v2612_v10 = vmul.f32 0.5, %v3878_v25 }
 0x7ac   :  { %v3882_v42 = vpop.eup %3881 }
 0x7ad   :  { %v3884_v59 = vpop.eup %3883  ;;  %v2614_v30 = vadd.f32 0.5, %v2612_v10 }
 0x7ae   :  { %v2605_v35 = vmul.f32 0.5, %v3884_v59 }
 0x7db   :  { %v2544_v37 = vpop.f32.mrb[76].mxu0  ;;  %v2585_v19 = vpop.f32.mrb[76].mxu1 }
 0x7dc   :  { %v2596_v49 = vadd.f32 %v2544_v37, %v7019_v45  ;;  %v2598_v7 = vadd.f32 %v2585_v19, %v7020_v38  ;;  %v2546_v0 = vpop.f32.mrb[77].mxu0  ;;  %v2587_v3 = vpop.f32.mrb[77].mxu1  ;;  %v2613_v45 = vmul.f32 0.5, %v3880_v40  ;;  %v2604_v19 = vmul.f32 0.5, %v3882_v42 }
 0x7dd   :  { %v2597_v57 = vadd.f32 %v2546_v0, %v7021_v15  ;;  %v2599_v50 = vadd.f32 %v2587_v3, %v7022_v60  ;;  %v2548_v46 = vpop.f32.mrb[78].mxu0  ;;  %v2589_v36 = vpop.f32.mrb[78].mxu1  ;;  %v2607_v60 = vadd.f32 0.5, %v2605_v35 }
 0x7de   :  { %3885 = vtanh.f32 %v2596_v49  ;;  %v2549_v17 = vpop.f32.mrb[79].mxu0  ;;  %v2590_v48 = vpop.f32.mrb[79].mxu1  ;;  %v2618_v37 = vmul.f32 0.5, %v2598_v7  ;;  %v2615_v0 = vadd.f32 0.5, %v2613_v45  ;;  %v2606_v3 = vadd.f32 0.5, %v2604_v19  ;;  %v7024_v19 = vld [vmem:[#allocation121_spill] sm:$0xff] }
 0x7df   :  { %3887 = vtanh.f32 %v2597_v57  ;;  %v2619_v38 = vmul.f32 0.5, %v2599_v50  ;;  %v2626_v46 = vmul.f32 %v2614_v30, %v5554_v23 }
 0x7e0   :  { %3889 = vtanh.f32 %v2618_v37  ;;  %v2627_v57 = vmul.f32 %v2615_v0, %v5556_v18  ;;  %v7025_v0 = vld [vmem:[#allocation122_spill] sm:$0xff] }
 0x7e1   :  { %3891 = vtanh.f32 %v2619_v38  ;;  %v7023_v38 = vld [vmem:[#allocation120_spill] sm:$0xff] }
 0x7e8   :  { %v3886_v15 = vpop.eup %3885 }
 0x7e9   :  { %v3888_v49 = vpop.eup %3887  ;;  %v2628_v36 = vmul.f32 %v3886_v15, %v2606_v3  ;;  %v7026_v3 = vld [vmem:[#allocation123_spill] sm:$0xff]  ;;  %v7027_v15 = vld [vmem:[#allocation124_spill] sm:$0xff] }
 0x7ea   :  { %v2629_v17 = vmul.f32 %v3888_v49, %v2607_v60  ;;  %v3890_v50 = vpop.eup %3889  ;;  %v7028_v60 = vld [vmem:[#allocation125_spill] sm:$0xff]  ;;  %v7029_v49 = vld [vmem:[#allocation126_spill] sm:$0xff] }
 0x7eb   :  { %v5704_v25 = vadd.f32 %v2628_v36, %v2626_v46  ;;  %v3892_v48 = vpop.eup %3891  ;;  %v2622_v40 = vmul.f32 0.5, %v3890_v50  ;;  %v7030_v46 = vld [vmem:[#allocation127_spill] sm:$0xff]  ;;  %v7031_v36 = vld [vmem:[#allocation128_spill] sm:$0xff] }
 0x7ec   :  { %v5706_v7 = vadd.f32 %v2629_v17, %v2627_v57  ;;  %v2623_v42 = vmul.f32 0.5, %v3892_v48  ;;  %v7032_v57 = vld [vmem:[#allocation129_spill] sm:$0xff]  ;;  %v7033_v17 = vld [vmem:[#allocation130_spill] sm:$0xff]  ;;  %v7034_v50 = vld [vmem:[#allocation131_spill] sm:$0xff] }
 0x7ed   :  { %3893 = vtanh.f32 %v5704_v25  ;;  %v2624_v35 = vadd.f32 0.5, %v2622_v40  ;;  %v7035_v48 = vld [vmem:[#allocation132_spill] sm:$0xff]  ;;  %v7036_v40 = vld [vmem:[#allocation133_spill] sm:$0xff] }
 0x7ee   :  { %3895 = vtanh.f32 %v5706_v7  ;;  %v2625_v10 = vadd.f32 0.5, %v2623_v42  ;;  %v7037_v42 = vld [vmem:[#allocation134_spill] sm:$0xff] }
 0x7f7   :  { %v3894_v59 = vpop.eup %3893 }
 0x7f8   :  { %v3896_v23 = vpop.eup %3895  ;;  %v2634_v30 = vmul.f32 %v3894_v59, %v2624_v35  ;;  %v7038_v35 = vld [vmem:[#allocation135_spill] sm:$0xff]  ;;  %v7039_v59 = vld [vmem:[#allocation136_spill] sm:$0xff] }
 0x7f9   :  { %v2635_v37 = vmul.f32 %v3896_v23, %v2625_v10  ;;  %v7040_v10 = vld [vmem:[#allocation137_spill] sm:$0xff]  ;;  %v7041_v23 = vld [vmem:[#allocation138_spill] sm:$0xff] }
 0x7fa   :  { %v5710_v45 = vpack.c.bf16 %v2634_v30, %v2634_v30  ;;  %v7042_v30 = vld [vmem:[#allocation139_spill] sm:$0xff] }
 0x7fb   :  { %v2637_v18 = vpack.c.bf16 %v2635_v37, %v2635_v37  ;;  %v7043_v37 = vld [vmem:[#allocation140_spill] sm:$0xff] }
 0x7fd   :  { %2670 = vmatprep.mubr.bf16.mxu0 %v2637_v18  ;;  %2711 = vmatprep.mubr.bf16.mxu1 %v2637_v18 }
 0x7fe   :  { %2671 = vmatmul.mubr.bf16.vlgmr.msra.gmra.mrb[80].mxu0 %v5710_v45  ;;  %2712 = vmatmul.mubr.bf16.vlgmr.msra.gmra.mrb[80].mxu1 %v5710_v45 }
 0x7ff   :  { %2721 = vmatpush1.bf16.msra.mxu0 %v6531_v58  ;;  %2762 = vmatpush1.bf16.msra.mxu1 %v6532_v26 }
 0x800   :  { %2752 = vmatprep.mubr.bf16.mxu0 %v2637_v18  ;;  %2793 = vmatprep.mubr.bf16.mxu1 %v2637_v18  ;;  %v7044_v18 = vld [vmem:[#allocation141_spill] sm:$0xff] }
 0x801   :  { %2722 = vmatprep.subr.bf16.mxu0 %v6533_v6  ;;  %2763 = vmatprep.subr.bf16.mxu1 %v6534_v44 }
 0x803   :  { %2723 = vmatpush1.bf16.msra.mxu0 %v6535_v61  ;;  %2764 = vmatpush1.bf16.msra.mxu1 %v6536_v21 }
 0x804   :  { %2724 = vmatprep.subr.bf16.mxu0 %v6537_v43  ;;  %2765 = vmatprep.subr.bf16.mxu1 %v6538_v62 }
 0x807   :  { %2725 = vmatpush1.bf16.msra.mxu0 %v6539_v55  ;;  %2766 = vmatpush1.bf16.msra.mxu1 %v6540_v47 }
 0x808   :  { %2726 = vmatprep.subr.bf16.mxu0 %v6541_v22  ;;  %2767 = vmatprep.subr.bf16.mxu1 %v6542_v33 }
 0x80b   :  { %2727 = vmatpush1.bf16.msra.mxu0 %v6543_v14  ;;  %2768 = vmatpush1.bf16.msra.mxu1 %v6544_v4 }
 0x80c   :  { %2728 = vmatprep.subr.bf16.mxu0 %v6545_v12  ;;  %2769 = vmatprep.subr.bf16.mxu1 %v6546_v13 }
 0x80f   :  { %2729 = vmatpush1.bf16.msra.mxu0 %v6547_v34  ;;  %2770 = vmatpush1.bf16.msra.mxu1 %v6548_v39 }
 0x810   :  { %2730 = vmatprep.subr.bf16.mxu0 %v6635_v41  ;;  %2771 = vmatprep.subr.bf16.mxu1 %v6636_v9 }
 0x813   :  { %2731 = vmatpush1.bf16.msra.mxu0 %v6637_v8  ;;  %2772 = vmatpush1.bf16.msra.mxu1 %v6638_v2 }
 0x814   :  { %2732 = vmatprep.subr.bf16.mxu0 %v6639_v1  ;;  %2773 = vmatprep.subr.bf16.mxu1 %v6640_v63 }
 0x817   :  { %2733 = vmatpush1.bf16.msra.mxu0 %v6641_v20  ;;  %2774 = vmatpush1.bf16.msra.mxu1 %v6642_v24 }
 0x818   :  { %2734 = vmatprep.subr.bf16.mxu0 %v6643_v31  ;;  %2775 = vmatprep.subr.bf16.mxu1 %v6644_v27 }
 0x81b   :  { %2735 = vmatpush1.bf16.msra.mxu0 %v6645_v56  ;;  %2776 = vmatpush1.bf16.msra.mxu1 %v6646_v32 }
 0x81c   :  { %2736 = vmatprep.subr.bf16.mxu0 %v6647_v11  ;;  %2777 = vmatprep.subr.bf16.mxu1 %v6648_v54 }
 0x81f   :  { %2737 = vmatpush1.bf16.msra.mxu0 %v6649_v16  ;;  %2778 = vmatpush1.bf16.msra.mxu1 %v6650_v53 }
 0x820   :  { %2738 = vmatprep.subr.bf16.mxu0 %v6651_v28  ;;  %2779 = vmatprep.subr.bf16.mxu1 %v6652_v29 }
 0x823   :  { %2739 = vmatpush1.bf16.msra.mxu0 %v6653_v5  ;;  %2780 = vmatpush1.bf16.msra.mxu1 %v6568_v52 }
 0x824   :  { %2740 = vmatprep.subr.bf16.mxu0 %v6569_v51  ;;  %2781 = vmatprep.subr.bf16.mxu1 %v7023_v38 }
 0x827   :  { %2741 = vmatpush1.bf16.msra.mxu0 %v7024_v19  ;;  %2782 = vmatpush1.bf16.msra.mxu1 %v7025_v0  ;;  %v7117_v0 = vld [vmem:[#allocation193_spill] sm:$0xff] }
 0x828   :  { %2742 = vmatprep.subr.bf16.mxu0 %v7026_v3  ;;  %2783 = vmatprep.subr.bf16.mxu1 %v7027_v15 }
 0x82b   :  { %2743 = vmatpush1.bf16.msra.mxu0 %v7028_v60  ;;  %2784 = vmatpush1.bf16.msra.mxu1 %v7029_v49 }
 0x82c   :  { %2744 = vmatprep.subr.bf16.mxu0 %v7030_v46  ;;  %2785 = vmatprep.subr.bf16.mxu1 %v7031_v36  ;;  %v7114_v36 = vld [vmem:[#allocation164_spill] sm:$0xff]  ;;  %v7115_v46 = vld [vmem:[#allocation167_spill] sm:$0xff] }
 0x82f   :  { %2745 = vmatpush1.bf16.msra.mxu0 %v7032_v57  ;;  %2786 = vmatpush1.bf16.msra.mxu1 %v7033_v17  ;;  %v7113_v17 = vld [vmem:[#allocation165_spill] sm:$0xff] }
 0x830   :  { %2746 = vmatprep.subr.bf16.mxu0 %v7034_v50  ;;  %2787 = vmatprep.subr.bf16.mxu1 %v7035_v48  ;;  %v7045_v50 = vld [vmem:[#allocation142_spill] sm:$0xff]  ;;  %v7046_v48 = vld [vmem:[#allocation15_spill] sm:$0xff] }
 0x833   :  { %2747 = vmatpush1.bf16.msra.mxu0 %v7036_v40  ;;  %2788 = vmatpush1.bf16.msra.mxu1 %v7037_v42  ;;  %v7047_v40 = vld [vmem:[#allocation16_spill] sm:$0xff]  ;;  %v7112_v42 = vld [vmem:[#allocation163_spill] sm:$0xff] }
 0x834   :  { %2748 = vmatprep.subr.bf16.mxu0 %v7038_v35  ;;  %2789 = vmatprep.subr.bf16.mxu1 %v7039_v59  ;;  %v7048_v59 = vld [vmem:[#allocation17_spill] sm:$0xff]  ;;  %v7057_v35 = vld [vmem:[#allocation26_spill] sm:$0xff] }
 0x837   :  { %2749 = vmatpush1.bf16.msra.mxu0 %v7040_v10  ;;  %2790 = vmatpush1.bf16.msra.mxu1 %v7041_v23  ;;  %v7049_v10 = vld [vmem:[#allocation18_spill] sm:$0xff]  ;;  %v7050_v23 = vld [vmem:[#allocation19_spill] sm:$0xff] }
 0x838   :  { %2750 = vmatprep.subr.bf16.mxu0 %v7042_v30  ;;  %2791 = vmatprep.subr.bf16.mxu1 %v7043_v37  ;;  %v7051_v30 = vld [vmem:[#allocation20_spill] sm:$0xff]  ;;  %v7052_v37 = vld [vmem:[#allocation21_spill] sm:$0xff] }
 0x83b   :  { %2751 = vmatpush1.bf16.msra.mxu0 %v7044_v18  ;;  %2792 = vmatpush1.bf16.msra.mxu1 %v7045_v50  ;;  %v7053_v18 = vld [vmem:[#allocation22_spill] sm:$0xff]  ;;  %v7054_v50 = vld [vmem:[#allocation23_spill] sm:$0xff] }
 0x83c   :  { %2848 = vmatprep.subr.bf16.mxu0 %v7046_v48  ;;  %2889 = vmatprep.subr.bf16.mxu1 %v7047_v40  ;;  %v7055_v48 = vld [vmem:[#allocation24_spill] sm:$0xff]  ;;  %v7056_v40 = vld [vmem:[#allocation25_spill] sm:$0xff] }
 0x83e   :  { %2753 = vmatmul.mubr.bf16.vlgmr.msra.gmra.mrb[84].mxu0 %v5710_v45  ;;  %2794 = vmatmul.mubr.bf16.vlgmr.msra.gmra.mrb[84].mxu1 %v5710_v45  ;;  %v7058_v45 = vld [vmem:[#allocation27_spill] sm:$0xff] }
 0x83f   :  { %2849 = vmatpush1.bf16.msra.mxu0 %v7048_v59  ;;  %2890 = vmatpush1.bf16.msra.mxu1 %v7049_v10  ;;  %v7059_v59 = vld [vmem:[#allocation28_spill] sm:$0xff]  ;;  %v7060_v10 = vld [vmem:[#allocation29_spill] sm:$0xff] }
 0x840   :  { %2850 = vmatprep.subr.bf16.mxu0 %v7050_v23  ;;  %2891 = vmatprep.subr.bf16.mxu1 %v7051_v30  ;;  %v7061_v23 = vld [vmem:[#allocation30_spill] sm:$0xff]  ;;  %v7062_v30 = vld [vmem:[#allocation31_spill] sm:$0xff] }
 0x843   :  { %2851 = vmatpush1.bf16.msra.mxu0 %v7052_v37  ;;  %2892 = vmatpush1.bf16.msra.mxu1 %v7053_v18  ;;  %v7063_v37 = vld [vmem:[#allocation32_spill] sm:$0xff]  ;;  %v7064_v18 = vld [vmem:[#allocation33_spill] sm:$0xff] }
 0x844   :  { %2852 = vmatprep.subr.bf16.mxu0 %v7054_v50  ;;  %2893 = vmatprep.subr.bf16.mxu1 %v7055_v48  ;;  %v7065_v50 = vld [vmem:[#allocation34_spill] sm:$0xff]  ;;  %v7066_v48 = vld [vmem:[#allocation35_spill] sm:$0xff] }
 0x847   :  { %2853 = vmatpush1.bf16.msra.mxu0 %v7056_v40  ;;  %2894 = vmatpush1.bf16.msra.mxu1 %v7057_v35  ;;  %v7067_v40 = vld [vmem:[#allocation36_spill] sm:$0xff]  ;;  %v7068_v35 = vld [vmem:[#allocation37_spill] sm:$0xff] }
 0x848   :  { %2854 = vmatprep.subr.bf16.mxu0 %v7058_v45  ;;  %2895 = vmatprep.subr.bf16.mxu1 %v7059_v59  ;;  %v7069_v45 = vld [vmem:[#allocation38_spill] sm:$0xff]  ;;  %v7070_v59 = vld [vmem:[#allocation39_spill] sm:$0xff] }
 0x84b   :  { %2855 = vmatpush1.bf16.msra.mxu0 %v7060_v10  ;;  %2896 = vmatpush1.bf16.msra.mxu1 %v7061_v23  ;;  %v7071_v10 = vld [vmem:[#allocation40_spill] sm:$0xff]  ;;  %v7072_v23 = vld [vmem:[#allocation41_spill] sm:$0xff] }
 0x84c   :  { %2856 = vmatprep.subr.bf16.mxu0 %v7062_v30  ;;  %2897 = vmatprep.subr.bf16.mxu1 %v7063_v37  ;;  %v7073_v30 = vld [vmem:[#allocation42_spill] sm:$0xff]  ;;  %v7074_v37 = vld [vmem:[#allocation43_spill] sm:$0xff] }
 0x84f   :  { %2857 = vmatpush1.bf16.msra.mxu0 %v7064_v18  ;;  %2898 = vmatpush1.bf16.msra.mxu1 %v7065_v50  ;;  %v7075_v18 = vld [vmem:[#allocation44_spill] sm:$0xff]  ;;  %v7076_v50 = vld [vmem:[#allocation45_spill] sm:$0xff] }
 0x850   :  { %2858 = vmatprep.subr.bf16.mxu0 %v7066_v48  ;;  %2899 = vmatprep.subr.bf16.mxu1 %v7067_v40  ;;  %v7077_v48 = vld [vmem:[#allocation46_spill] sm:$0xff]  ;;  %v7078_v40 = vld [vmem:[#allocation47_spill] sm:$0xff] }
 0x853   :  { %2859 = vmatpush1.bf16.msra.mxu0 %v7068_v35  ;;  %2900 = vmatpush1.bf16.msra.mxu1 %v7069_v45  ;;  %v7079_v35 = vld [vmem:[#allocation48_spill] sm:$0xff]  ;;  %v7080_v45 = vld [vmem:[#allocation49_spill] sm:$0xff] }
 0x854   :  { %2860 = vmatprep.subr.bf16.mxu0 %v7070_v59  ;;  %2901 = vmatprep.subr.bf16.mxu1 %v7071_v10  ;;  %v7081_v59 = vld [vmem:[#allocation50_spill] sm:$0xff]  ;;  %v7082_v10 = vld [vmem:[#allocation51_spill] sm:$0xff] }
 0x857   :  { %2861 = vmatpush1.bf16.msra.mxu0 %v7072_v23  ;;  %2902 = vmatpush1.bf16.msra.mxu1 %v7073_v30  ;;  %v7083_v23 = vld [vmem:[#allocation52_spill] sm:$0xff]  ;;  %v7084_v30 = vld [vmem:[#allocation53_spill] sm:$0xff] }
 0x858   :  { %2862 = vmatprep.subr.bf16.mxu0 %v7074_v37  ;;  %2903 = vmatprep.subr.bf16.mxu1 %v7075_v18  ;;  %v7085_v37 = vld [vmem:[#allocation54_spill] sm:$0xff]  ;;  %v7086_v18 = vld [vmem:[#allocation55_spill] sm:$0xff] }
 0x85b   :  { %2863 = vmatpush1.bf16.msra.mxu0 %v7076_v50  ;;  %2904 = vmatpush1.bf16.msra.mxu1 %v7077_v48  ;;  %v7087_v50 = vld [vmem:[#allocation56_spill] sm:$0xff]  ;;  %v7088_v48 = vld [vmem:[#allocation57_spill] sm:$0xff] }
 0x85c   :  { %2864 = vmatprep.subr.bf16.mxu0 %v7078_v40  ;;  %2905 = vmatprep.subr.bf16.mxu1 %v7079_v35  ;;  %v7089_v40 = vld [vmem:[#allocation58_spill] sm:$0xff]  ;;  %v7090_v35 = vld [vmem:[#allocation59_spill] sm:$0xff] }
 0x85f   :  { %2865 = vmatpush1.bf16.msra.mxu0 %v7080_v45  ;;  %2906 = vmatpush1.bf16.msra.mxu1 %v7081_v59  ;;  %v7091_v45 = vld [vmem:[#allocation60_spill] sm:$0xff]  ;;  %v7092_v59 = vld [vmem:[#allocation61_spill] sm:$0xff] }
 0x860   :  { %2866 = vmatprep.subr.bf16.mxu0 %v7082_v10  ;;  %2907 = vmatprep.subr.bf16.mxu1 %v7083_v23  ;;  %v7093_v10 = vld [vmem:[#allocation62_spill] sm:$0xff]  ;;  %v7094_v23 = vld [vmem:[#allocation63_spill] sm:$0xff] }
 0x863   :  { %2867 = vmatpush1.bf16.msra.mxu0 %v7084_v30  ;;  %2908 = vmatpush1.bf16.msra.mxu1 %v7085_v37  ;;  %v7095_v30 = vld [vmem:[#allocation64_spill] sm:$0xff]  ;;  %v7096_v37 = vld [vmem:[#allocation65_spill] sm:$0xff] }
 0x864   :  { %2868 = vmatprep.subr.bf16.mxu0 %v7086_v18  ;;  %2909 = vmatprep.subr.bf16.mxu1 %v7087_v50  ;;  %v7097_v18 = vld [vmem:[#allocation66_spill] sm:$0xff]  ;;  %v7098_v50 = vld [vmem:[#allocation67_spill] sm:$0xff] }
 0x867   :  { %2869 = vmatpush1.bf16.msra.mxu0 %v7088_v48  ;;  %2910 = vmatpush1.bf16.msra.mxu1 %v7089_v40  ;;  %v7099_v48 = vld [vmem:[#allocation68_spill] sm:$0xff]  ;;  %v7100_v40 = vld [vmem:[#allocation69_spill] sm:$0xff] }
 0x868   :  { %2870 = vmatprep.subr.bf16.mxu0 %v7090_v35  ;;  %2911 = vmatprep.subr.bf16.mxu1 %v7091_v45  ;;  %v7101_v35 = vld [vmem:[#allocation70_spill] sm:$0xff]  ;;  %v7102_v45 = vld [vmem:[#allocation71_spill] sm:$0xff] }
 0x86b   :  { %2871 = vmatpush1.bf16.msra.mxu0 %v7092_v59  ;;  %2912 = vmatpush1.bf16.msra.mxu1 %v7093_v10  ;;  %v7103_v59 = vld [vmem:[#allocation72_spill] sm:$0xff]  ;;  %v7104_v10 = vld [vmem:[#allocation73_spill] sm:$0xff] }
 0x86c   :  { %2872 = vmatprep.subr.bf16.mxu0 %v7094_v23  ;;  %2913 = vmatprep.subr.bf16.mxu1 %v7095_v30  ;;  %v7105_v23 = vld [vmem:[#allocation74_spill] sm:$0xff]  ;;  %v7106_v30 = vld [vmem:[#allocation75_spill] sm:$0xff] }
 0x86f   :  { %2873 = vmatpush1.bf16.msra.mxu0 %v7096_v37  ;;  %2914 = vmatpush1.bf16.msra.mxu1 %v7097_v18  ;;  %v7107_v37 = vld [vmem:[#allocation76_spill] sm:$0xff]  ;;  %v7108_v18 = vld [vmem:[#allocation77_spill] sm:$0xff] }
 0x870   :  { %2874 = vmatprep.subr.bf16.mxu0 %v7098_v50  ;;  %2915 = vmatprep.subr.bf16.mxu1 %v7099_v48  ;;  %v7109_v50 = vld [vmem:[#allocation78_spill] sm:$0xff]  ;;  %v7110_v48 = vld [vmem:[#allocation79_spill] sm:$0xff] }
 0x873   :  { %2875 = vmatpush1.bf16.msra.mxu0 %v7100_v40  ;;  %2916 = vmatpush1.bf16.msra.mxu1 %v7101_v35  ;;  %v7111_v40 = vld [vmem:[#allocation80_spill] sm:$0xff] }
 0x874   :  { %2876 = vmatprep.subr.bf16.mxu0 %v7102_v45  ;;  %2917 = vmatprep.subr.bf16.mxu1 %v7103_v59 }
 0x877   :  { %2877 = vmatpush1.bf16.msra.mxu0 %v7104_v10  ;;  %2918 = vmatpush1.bf16.msra.mxu1 %v7105_v23 }
 0x878   :  { %2878 = vmatprep.subr.bf16.mxu0 %v7106_v30  ;;  %2919 = vmatprep.subr.bf16.mxu1 %v7107_v37 }
 0x87b   :  { %2879 = vmatpush1.bf16.msra.mxu0 %v7108_v18  ;;  %2920 = vmatpush1.bf16.msra.mxu1 %v7109_v50 }
 0x87c   :  { %2930 = vmatprep.subr.bf16.mxu0 %v7110_v48  ;;  %2971 = vmatprep.subr.bf16.mxu1 %v7111_v40 }
 0x8d1   :  { %v2672_v35 = vpop.f32.mrb[80].mxu0  ;;  %v2713_v45 = vpop.f32.mrb[80].mxu1 }
 0x8d2   :  { %v2802_v59 = vadd.f32 %v2672_v35, %v7112_v42  ;;  %v2804_v10 = vadd.f32 %v2713_v45, %v7113_v17  ;;  %v2674_v57 = vpop.f32.mrb[81].mxu0  ;;  %v2715_v23 = vpop.f32.mrb[81].mxu1  ;;  %v7116_v35 = vld [vmem:[#allocation191_spill] sm:$0xff] }
 0x8d3   :  { %v2803_v30 = vadd.f32 %v2674_v57, %v7114_v36  ;;  %v2805_v37 = vadd.f32 %v2715_v23, %v7115_v46  ;;  %v2676_v49 = vpop.f32.mrb[82].mxu0  ;;  %v2717_v18 = vpop.f32.mrb[82].mxu1 }
 0x8d4   :  { %v2677_v60 = vpop.f32.mrb[83].mxu0  ;;  %v2718_v50 = vpop.f32.mrb[83].mxu1  ;;  %v2818_v15 = vmul.f32 0.5, %v2804_v10  ;;  %v2810_v3 = vmul.f32 0.5, %v2802_v59  ;;  %v7118_v49 = vld [vmem:[#allocation192_spill] sm:$0xff] }
 0x8d5   :  { %v2819_v48 = vmul.f32 0.5, %v2805_v37  ;;  %v2811_v40 = vmul.f32 0.5, %v2803_v30  ;;  %v7119_v60 = vld [vmem:[#allocation195_spill] sm:$0xff] }
 0x8d6   :  { %3897 = vtanh.f32 %v2818_v15 }
 0x8d7   :  { %3899 = vtanh.f32 %v2819_v48 }
 0x8d8   :  { %3901 = vtanh.f32 %v2810_v3 }
 0x8d9   :  { %3903 = vtanh.f32 %v2811_v40 }
 0x8e0   :  { %v3898_v59 = vpop.eup %3897 }
 0x8e1   :  { %v3900_v3 = vpop.eup %3899  ;;  %v2822_v40 = vmul.f32 0.5, %v3898_v59 }
 0x8e2   :  { %v3902_v50 = vpop.eup %3901 }
 0x8e3   :  { %v3904_v48 = vpop.eup %3903  ;;  %v2824_v38 = vadd.f32 0.5, %v2822_v40 }
 0x8e4   :  { %v2815_v19 = vmul.f32 0.5, %v3904_v48 }
 0x911   :  { %v2754_v42 = vpop.f32.mrb[84].mxu0  ;;  %v2795_v17 = vpop.f32.mrb[84].mxu1 }
 0x912   :  { %v2806_v45 = vadd.f32 %v2754_v42, %v7116_v35  ;;  %v2808_v36 = vadd.f32 %v2795_v17, %v7117_v0  ;;  %v2756_v57 = vpop.f32.mrb[85].mxu0  ;;  %v2797_v46 = vpop.f32.mrb[85].mxu1  ;;  %v2823_v35 = vmul.f32 0.5, %v3900_v3  ;;  %v2814_v17 = vmul.f32 0.5, %v3902_v50 }
 0x913   :  { %v2807_v23 = vadd.f32 %v2756_v57, %v7118_v49  ;;  %v2809_v18 = vadd.f32 %v2797_v46, %v7119_v60  ;;  %v2758_v10 = vpop.f32.mrb[86].mxu0  ;;  %v2799_v37 = vpop.f32.mrb[86].mxu1  ;;  %v2817_v60 = vadd.f32 0.5, %v2815_v19 }
 0x914   :  { %3905 = vtanh.f32 %v2806_v45  ;;  %v2759_v15 = vpop.f32.mrb[87].mxu0  ;;  %v2800_v30 = vpop.f32.mrb[87].mxu1  ;;  %v2828_v42 = vmul.f32 0.5, %v2808_v36  ;;  %v2825_v57 = vadd.f32 0.5, %v2823_v35  ;;  %v2816_v46 = vadd.f32 0.5, %v2814_v17 }
 0x915   :  { %3907 = vtanh.f32 %v2807_v23  ;;  %v2829_v0 = vmul.f32 0.5, %v2809_v18  ;;  %v2836_v10 = vmul.f32 %v2824_v38, %v5704_v25  ;;  %v4064_v17 = vmov 0.0  }
 0x916   :  { %3909 = vtanh.f32 %v2828_v42  ;;  %v2837_v23 = vmul.f32 %v2825_v57, %v5706_v7  ;;  %v3766_v57 = vld [vmem:[%s6051_s6 + $0x8] sm:$0xff]  }
 0x917   :  { %3911 = vtanh.f32 %v2829_v0  ;;  %v3765_v0 = vld [vmem:[%s6051_s6] sm:$0xff]  }
 0x91e   :  { %v3906_v49 = vpop.eup %3905 }
 0x91f   :  { %v3908_v45 = vpop.eup %3907  ;;  %v2838_v37 = vmul.f32 %v3906_v49, %v2816_v46  ;;  %v3767_v46 = vld [vmem:[%s6051_s6 + $0x10] sm:$0xff]   ;;  %v3768_v49 = vld [vmem:[%s6051_s6 + $0x18] sm:$0xff]  }
 0x920   :  { %v2839_v15 = vmul.f32 %v3908_v45, %v2817_v60  ;;  %v3910_v18 = vpop.eup %3909  ;;  %v3769_v60 = vld [vmem:[%s6051_s6 + $0x20] sm:$0xff]   ;;  %v3770_v45 = vld [vmem:[%s6051_s6 + $0x28] sm:$0xff]  }
 0x921   :  { %v5854_v59 = vadd.f32 %v2838_v37, %v2836_v10  ;;  %v3912_v30 = vpop.eup %3911  ;;  %v2832_v3 = vmul.f32 0.5, %v3910_v18  ;;  %v7144_v18 = vld [vmem:[#allocation169_spill] sm:$0xff] }
 0x922   :  { %v5856_v36 = vadd.f32 %v2839_v15, %v2837_v23  ;;  %v2833_v50 = vmul.f32 0.5, %v3912_v30  ;;  %v7143_v23 = vld [vmem:[#allocation166_spill] sm:$0xff] }
 0x923   :  { %3913 = vtanh.f32 %v5854_v59  ;;  %v2834_v19 = vadd.f32 0.5, %v2832_v3 }
 0x924   :  { %3915 = vtanh.f32 %v5856_v36  ;;  %v2835_v40 = vadd.f32 0.5, %v2833_v50 }
 0x92d   :  { %v3914_v48 = vpop.eup %3913 }
 0x92e   :  { %v3916_v25 = vpop.eup %3915  ;;  %v2844_v38 = vmul.f32 %v3914_v48, %v2834_v19  ;;  %v7145_v19 = vld [vmem:[#allocation168_spill] sm:$0xff] }
 0x92f   :  { %v2845_v42 = vmul.f32 %v3916_v25, %v2835_v40  ;;  %v7146_v40 = vld [vmem:[#allocation170_spill] sm:$0xff] }
 0x930   :  { %v5860_v35 = vpack.c.bf16 %v2844_v38, %v2844_v38 }
 0x931   :  { %v2847_v7 = vpack.c.bf16 %v2845_v42, %v2845_v42 }
 0x933   :  { %2880 = vmatprep.mubr.bf16.mxu0 %v2847_v7  ;;  %2921 = vmatprep.mubr.bf16.mxu1 %v2847_v7 }
 0x934   :  { %2881 = vmatmul.mubr.bf16.vlgmr.msra.gmra.mrb[88].mxu0 %v5860_v35  ;;  %2922 = vmatmul.mubr.bf16.vlgmr.msra.gmra.mrb[88].mxu1 %v5860_v35 }
 0x935   :  { %2931 = vmatpush1.bf16.msra.mxu0 %v6531_v58  ;;  %2972 = vmatpush1.bf16.msra.mxu1 %v6532_v26  ;;  %v7120_v58 = vld [vmem:[#allocation120_spill] sm:$0xff]  ;;  %v7121_v26 = vld [vmem:[#allocation121_spill] sm:$0xff] }
 0x936   :  { %2962 = vmatprep.mubr.bf16.mxu0 %v2847_v7  ;;  %3003 = vmatprep.mubr.bf16.mxu1 %v2847_v7 }
 0x937   :  { %2932 = vmatprep.subr.bf16.mxu0 %v6533_v6  ;;  %2973 = vmatprep.subr.bf16.mxu1 %v6534_v44  ;;  %v7122_v6 = vld [vmem:[#allocation122_spill] sm:$0xff]  ;;  %v7123_v44 = vld [vmem:[#allocation123_spill] sm:$0xff] }
 0x939   :  { %2933 = vmatpush1.bf16.msra.mxu0 %v6535_v61  ;;  %2974 = vmatpush1.bf16.msra.mxu1 %v6536_v21  ;;  %v7124_v61 = vld [vmem:[#allocation124_spill] sm:$0xff]  ;;  %v7125_v21 = vld [vmem:[#allocation125_spill] sm:$0xff] }
 0x93a   :  { %2934 = vmatprep.subr.bf16.mxu0 %v6537_v43  ;;  %2975 = vmatprep.subr.bf16.mxu1 %v6538_v62  ;;  %v7126_v43 = vld [vmem:[#allocation126_spill] sm:$0xff]  ;;  %v7127_v62 = vld [vmem:[#allocation127_spill] sm:$0xff] }
 0x93d   :  { %2935 = vmatpush1.bf16.msra.mxu0 %v6539_v55  ;;  %2976 = vmatpush1.bf16.msra.mxu1 %v6540_v47  ;;  %v7128_v55 = vld [vmem:[#allocation128_spill] sm:$0xff]  ;;  %v7129_v47 = vld [vmem:[#allocation129_spill] sm:$0xff] }
 0x93e   :  { %2936 = vmatprep.subr.bf16.mxu0 %v6541_v22  ;;  %2977 = vmatprep.subr.bf16.mxu1 %v6542_v33  ;;  %v7130_v22 = vld [vmem:[#allocation130_spill] sm:$0xff]  ;;  %v7131_v33 = vld [vmem:[#allocation131_spill] sm:$0xff] }
 0x941   :  { %2937 = vmatpush1.bf16.msra.mxu0 %v6543_v14  ;;  %2978 = vmatpush1.bf16.msra.mxu1 %v6544_v4  ;;  %v7132_v14 = vld [vmem:[#allocation132_spill] sm:$0xff]  ;;  %v7133_v4 = vld [vmem:[#allocation133_spill] sm:$0xff] }
 0x942   :  { %2938 = vmatprep.subr.bf16.mxu0 %v6545_v12  ;;  %2979 = vmatprep.subr.bf16.mxu1 %v6546_v13  ;;  %v7134_v12 = vld [vmem:[#allocation134_spill] sm:$0xff]  ;;  %v7135_v13 = vld [vmem:[#allocation135_spill] sm:$0xff] }
 0x945   :  { %2939 = vmatpush1.bf16.msra.mxu0 %v6547_v34  ;;  %2980 = vmatpush1.bf16.msra.mxu1 %v6548_v39  ;;  %v7136_v34 = vld [vmem:[#allocation136_spill] sm:$0xff]  ;;  %v7137_v39 = vld [vmem:[#allocation137_spill] sm:$0xff] }
 0x946   :  { %2940 = vmatprep.subr.bf16.mxu0 %v6635_v41  ;;  %2981 = vmatprep.subr.bf16.mxu1 %v6636_v9  ;;  %v7140_v41 = vld [vmem:[#allocation140_spill] sm:$0xff]  ;;  %v7141_v9 = vld [vmem:[#allocation141_spill] sm:$0xff] }
 0x949   :  { %2941 = vmatpush1.bf16.msra.mxu0 %v6637_v8  ;;  %2982 = vmatpush1.bf16.msra.mxu1 %v6638_v2  ;;  %v7142_v8 = vld [vmem:[#allocation142_spill] sm:$0xff]  ;;  %v3749_v2 = vld [vmem:[%s6049_s4 + $0x40] sm:$0xff]  }
 0x94a   :  { %2942 = vmatprep.subr.bf16.mxu0 %v6639_v1  ;;  %2983 = vmatprep.subr.bf16.mxu1 %v6640_v63  ;;  %v3750_v1 = vld [vmem:[%s6049_s4] sm:$0xff]   ;;  %v3751_v63 = vld [vmem:[%s6049_s4 + $0x48] sm:$0xff]  }
 0x94d   :  { %2943 = vmatpush1.bf16.msra.mxu0 %v6641_v20  ;;  %2984 = vmatpush1.bf16.msra.mxu1 %v6642_v24  ;;  %v3752_v20 = vld [vmem:[%s6049_s4 + $0x8] sm:$0xff]   ;;  %v3753_v24 = vld [vmem:[%s6049_s4 + $0x50] sm:$0xff]  }
 0x94e   :  { %2944 = vmatprep.subr.bf16.mxu0 %v6643_v31  ;;  %2985 = vmatprep.subr.bf16.mxu1 %v6644_v27  ;;  %v3754_v31 = vld [vmem:[%s6049_s4 + $0x10] sm:$0xff]   ;;  %v3755_v27 = vld [vmem:[%s6049_s4 + $0x58] sm:$0xff]  }
 0x951   :  { %2945 = vmatpush1.bf16.msra.mxu0 %v6645_v56  ;;  %2986 = vmatpush1.bf16.msra.mxu1 %v6646_v32  ;;  %v3756_v56 = vld [vmem:[%s6049_s4 + $0x18] sm:$0xff]   ;;  %v3757_v32 = vld [vmem:[%s6049_s4 + $0x60] sm:$0xff]  }
 0x952   :  { %2946 = vmatprep.subr.bf16.mxu0 %v6647_v11  ;;  %2987 = vmatprep.subr.bf16.mxu1 %v6648_v54  ;;  %v3758_v11 = vld [vmem:[%s6049_s4 + $0x20] sm:$0xff]   ;;  %v3759_v54 = vld [vmem:[%s6049_s4 + $0x68] sm:$0xff]  }
 0x955   :  { %2947 = vmatpush1.bf16.msra.mxu0 %v6649_v16  ;;  %2988 = vmatpush1.bf16.msra.mxu1 %v6650_v53  ;;  %v3760_v16 = vld [vmem:[%s6049_s4 + $0x28] sm:$0xff]   ;;  %v3761_v53 = vld [vmem:[%s6049_s4 + $0x70] sm:$0xff]  }
 0x956   :  { %2948 = vmatprep.subr.bf16.mxu0 %v6651_v28  ;;  %2989 = vmatprep.subr.bf16.mxu1 %v6652_v29  ;;  %v3762_v28 = vld [vmem:[%s6049_s4 + $0x30] sm:$0xff]   ;;  %v3763_v29 = vld [vmem:[%s6049_s4 + $0x78] sm:$0xff]  }
 0x959   :  { %2949 = vmatpush1.bf16.msra.mxu0 %v6653_v5  ;;  %2990 = vmatpush1.bf16.msra.mxu1 %v6568_v52  ;;  %v7138_v52 = vld [vmem:[#allocation138_spill] sm:$0xff]  ;;  %v3764_v5 = vld [vmem:[%s6049_s4 + $0x38] sm:$0xff]  }
 0x95a   :  { %2950 = vmatprep.subr.bf16.mxu0 %v6569_v51  ;;  %2991 = vmatprep.subr.bf16.mxu1 %v7120_v58  ;;  %v7139_v51 = vld [vmem:[#allocation139_spill] sm:$0xff] }
 0x95d   :  { %2951 = vmatpush1.bf16.msra.mxu0 %v7121_v26  ;;  %2992 = vmatpush1.bf16.msra.mxu1 %v7122_v6 }
 0x95e   :  { %2952 = vmatprep.subr.bf16.mxu0 %v7123_v44  ;;  %2993 = vmatprep.subr.bf16.mxu1 %v7124_v61 }
 0x961   :  { %2953 = vmatpush1.bf16.msra.mxu0 %v7125_v21  ;;  %2994 = vmatpush1.bf16.msra.mxu1 %v7126_v43  ;;  %v7147_v43 = vld [vmem:[#allocation194_spill] sm:$0xff] }
 0x962   :  { %2954 = vmatprep.subr.bf16.mxu0 %v7127_v62  ;;  %2995 = vmatprep.subr.bf16.mxu1 %v7128_v55  ;;  %v7148_v55 = vld [vmem:[#allocation197_spill] sm:$0xff] }
 0x965   :  { %2955 = vmatpush1.bf16.msra.mxu0 %v7129_v47  ;;  %2996 = vmatpush1.bf16.msra.mxu1 %v7130_v22 }
 0x966   :  { %2956 = vmatprep.subr.bf16.mxu0 %v7131_v33  ;;  %2997 = vmatprep.subr.bf16.mxu1 %v7132_v14  ;;  %v7149_v14 = vld [vmem:[#allocation196_spill] sm:$0xff] }
 0x969   :  { %2957 = vmatpush1.bf16.msra.mxu0 %v7133_v4  ;;  %2998 = vmatpush1.bf16.msra.mxu1 %v7134_v12  ;;  %v7150_v12 = vld [vmem:[#allocation198_spill] sm:$0xff] }
 0x96a   :  { %2958 = vmatprep.subr.bf16.mxu0 %v7135_v13  ;;  %2999 = vmatprep.subr.bf16.mxu1 %v7136_v34 }
 0x96d   :  { %2959 = vmatpush1.bf16.msra.mxu0 %v7137_v39  ;;  %3000 = vmatpush1.bf16.msra.mxu1 %v7138_v52 }
 0x96e   :  { %2960 = vmatprep.subr.bf16.mxu0 %v7139_v51  ;;  %3001 = vmatprep.subr.bf16.mxu1 %v7140_v41 }
 0x971   :  { %2961 = vmatpush1.bf16.msra.mxu0 %v7141_v9  ;;  %3002 = vmatpush1.bf16.msra.mxu1 %v7142_v8 }
 0x972   :  { %3657 = vmatprep.subr.bf16.mxu0 %v3749_v2  ;;  %3693 = vmatprep.subr.bf16.mxu1 %v4064_v17 }
 0x974   :  { %2963 = vmatmul.mubr.bf16.vlgmr.msra.gmra.mrb[92].mxu0 %v5860_v35  ;;  %3004 = vmatmul.mubr.bf16.vlgmr.msra.gmra.mrb[92].mxu1 %v5860_v35 }
 0x975   :  { %3658 = vmatpush3.bf16.msra.mxu0 %v3750_v1  ;;  %3694 = vmatpush3.bf16.msra.mxu1 %v3765_v0 }
 0x976   :  { %3659 = vmatprep.subr.bf16.mxu0 %v3751_v63  ;;  %3695 = vmatprep.subr.bf16.mxu1 %v4064_v17 }
 0x977   :  { %3709 = vmatprep.mubr.msk.bf16.mxu1 %vm4065_vm2, %v4064_v17 }
 0x979   :  { %3660 = vmatpush3.bf16.msra.mxu0 %v3752_v20  ;;  %3696 = vmatpush3.bf16.msra.mxu1 %v3766_v57 }
 0x97a   :  { %3661 = vmatprep.subr.bf16.mxu0 %v3753_v24  ;;  %3697 = vmatprep.subr.bf16.mxu1 %v4064_v17 }
 0x97d   :  { %3662 = vmatpush3.bf16.msra.mxu0 %v3754_v31  ;;  %3698 = vmatpush3.bf16.msra.mxu1 %v3767_v46 }
 0x97e   :  { %3663 = vmatprep.subr.bf16.mxu0 %v3755_v27  ;;  %3699 = vmatprep.subr.bf16.mxu1 %v4064_v17 }
 0x981   :  { %3664 = vmatpush3.bf16.msra.mxu0 %v3756_v56  ;;  %3700 = vmatpush3.bf16.msra.mxu1 %v3768_v49 }
 0x982   :  { %3665 = vmatprep.subr.bf16.mxu0 %v3757_v32  ;;  %3701 = vmatprep.subr.bf16.mxu1 %v4064_v17 }
 0x985   :  { %3666 = vmatpush3.bf16.msra.mxu0 %v3758_v11  ;;  %3702 = vmatpush3.bf16.msra.mxu1 %v3769_v60 }
 0x986   :  { %3667 = vmatprep.subr.bf16.mxu0 %v3759_v54  ;;  %3703 = vmatprep.subr.bf16.mxu1 %v4064_v17 }
 0x989   :  { %3668 = vmatpush3.bf16.msra.mxu0 %v3760_v16  ;;  %3704 = vmatpush3.bf16.msra.mxu1 %v3770_v45 }
 0x98a   :  { %3669 = vmatprep.subr.bf16.mxu0 %v3761_v53  ;;  %3705 = vmatprep.subr.bf16.mxu1 %v4064_v17 }
 0x98d   :  { %3670 = vmatpush3.bf16.msra.mxu0 %v3762_v28 }
 0x98e   :  { %3671 = vmatprep.subr.bf16.mxu0 %v3763_v29 }
 0x991   :  { %3672 = vmatpush3.bf16.msra.mxu0 %v3764_v5 }
 0x992   :  { %3713 = vmatprep.subr.bf16.mxu0 %v4064_v17 }
 0xa07   :  { %v2882_v10 = vpop.f32.mrb[88].mxu0  ;;  %v2923_v37 = vpop.f32.mrb[88].mxu1 }
 0xa08   :  { %v3012_v15 = vadd.f32 %v2882_v10, %v7143_v23  ;;  %v3014_v30 = vadd.f32 %v2923_v37, %v7144_v18  ;;  %v2884_v3 = vpop.f32.mrb[89].mxu0  ;;  %v2925_v50 = vpop.f32.mrb[89].mxu1 }
 0xa09   :  { %v3013_v48 = vadd.f32 %v2884_v3, %v7145_v19  ;;  %v3015_v25 = vadd.f32 %v2925_v50, %v7146_v40  ;;  %v2886_v38 = vpop.f32.mrb[90].mxu0  ;;  %v2927_v42 = vpop.f32.mrb[90].mxu1  ;;  %v3772_v19 = vld [vmem:[%s6051_s6 + $0x38] sm:$0xff]   ;;  %v3774_v40 = vld [vmem:[#allocation8 + $0x8] sm:$0xff]  }
 0xa0a   :  { %v2887_v7 = vpop.f32.mrb[91].mxu0  ;;  %v2928_v35 = vpop.f32.mrb[91].mxu1  ;;  %v3028_v58 = vmul.f32 0.5, %v3014_v30  ;;  %v3020_v6 = vmul.f32 0.5, %v3012_v15  ;;  %v3625_v38 = vld [vmem:[%s6050_s5] ss:$0 sm:$0xff] }
 0xa0b   :  { %v3029_v26 = vmul.f32 0.5, %v3015_v25  ;;  %v3021_v44 = vmul.f32 0.5, %v3013_v48  ;;  %v3773_v48 = vld [vmem:[#allocation8] sm:$0xff]  }
 0xa0c   :  { %3917 = vtanh.f32 %v3028_v58 }
 0xa0d   :  { %3919 = vtanh.f32 %v3029_v26 }
 0xa0e   :  { %3921 = vtanh.f32 %v3020_v6 }
 0xa0f   :  { %3923 = vtanh.f32 %v3021_v44 }
 0xa16   :  { %v3918_v52 = vpop.eup %3917 }
 0xa17   :  { %v3920_v9 = vpop.eup %3919  ;;  %v3032_v1 = vmul.f32 0.5, %v3918_v52 }
 0xa18   :  { %v3922_v8 = vpop.eup %3921  ;;  %v3033_v20 = vmul.f32 0.5, %v3920_v9 }
 0xa19   :  { %v3924_v2 = vpop.eup %3923  ;;  %v3024_v31 = vmul.f32 0.5, %v3922_v8  ;;  %v3034_v56 = vadd.f32 0.5, %v3032_v1 }
 0xa1a   :  { %v3025_v27 = vmul.f32 0.5, %v3924_v2  ;;  %v3035_v32 = vadd.f32 0.5, %v3033_v20 }
 0xa1b   :  { %v3026_v11 = vadd.f32 0.5, %v3024_v31  ;;  %v3046_v28 = vmul.f32 %v3034_v56, %v5854_v59 }
 0xa1c   :  { %v3027_v16 = vadd.f32 0.5, %v3025_v27  ;;  %v3047_v5 = vmul.f32 %v3035_v32, %v5856_v36  ;;  %v3771_v36 = vld [vmem:[%s6051_s6 + $0x30] sm:$0xff]  }
 0xa1d   :  { %3706 = vmatpush3.bf16.msra.mxu1 %v3771_v36 }
 0xa1e   :  { %3707 = vmatprep.subr.bf16.mxu1 %v4064_v17 }
 0xa21   :  { %3708 = vmatpush3.bf16.msra.mxu1 %v3772_v19 }
 0xa47   :  { %v2964_v61 = vpop.f32.mrb[92].mxu0  ;;  %v3005_v21 = vpop.f32.mrb[92].mxu1 }
 0xa48   :  { %v3016_v62 = vadd.f32 %v2964_v61, %v7147_v43  ;;  %v3018_v47 = vadd.f32 %v3005_v21, %v7148_v55  ;;  %v2966_v22 = vpop.f32.mrb[93].mxu0  ;;  %v3007_v33 = vpop.f32.mrb[93].mxu1  ;;  %v3775_v61 = vld [vmem:[#allocation8 + $0x10] sm:$0xff]   ;;  %v3776_v21 = vld [vmem:[#allocation8 + $0x18] sm:$0xff]  }
 0xa49   :  { %v3017_v4 = vadd.f32 %v2966_v22, %v7149_v14  ;;  %v3019_v13 = vadd.f32 %v3007_v33, %v7150_v12  ;;  %v2968_v34 = vpop.f32.mrb[94].mxu0  ;;  %v3009_v39 = vpop.f32.mrb[94].mxu1  ;;  %v3642_v43 = vld [vmem:[%s6052_s7] ss:$0 sm:$0xff]  ;;  %s4025_s7 = scalar_lea.vmem %s3439_s1, 128 }
 0xa4a   :  { %3925 = vtanh.f32 %v3016_v62  ;;  %v2969_v51 = vpop.f32.mrb[95].mxu0  ;;  %v3010_v41 = vpop.f32.mrb[95].mxu1  ;;  %v3038_v63 = vmul.f32 0.5, %v3018_v47  ;;  %v3651_v12 = vld [vmem:[%s6054_s9] ss:$0 sm:$0xff]  ;;  %p4026_p4 = scmp.ne.s32.totalorder %s3439_s1, %s4025_s7  ;;  %p4031_p6 = scmp.lt.s32.totalorder %s4025_s7, %s4025_s7 }
 0xa4b   :  { %3927 = vtanh.f32 %v3017_v4  ;;  %v3039_v24 = vmul.f32 0.5, %v3019_v13 }
 0xa4c   :  { %3929 = vtanh.f32 %v3038_v63  ;;  %p4032_p7 = por %p4031_p6, %p4030_p5 }
 0xa4d   :  { %3931 = vtanh.f32 %v3039_v24 }
 0xa4e   :  { %p4033_p8 = pnand %p4032_p7, %p4026_p4 }
 0xa54   :  { %v3926_v54 = vpop.eup %3925 }
 0xa55   :  { %v3928_v53 = vpop.eup %3927  ;;  %v3048_v29 = vmul.f32 %v3926_v54, %v3026_v11 }
 0xa56   :  { %v3049_v0 = vmul.f32 %v3928_v53, %v3027_v16  ;;  %v3930_v49 = vpop.eup %3929 }
 0xa57   :  { %v3050_v57 = vadd.f32 %v3048_v29, %v3046_v28  ;;  %v3932_v60 = vpop.eup %3931  ;;  %v3042_v45 = vmul.f32 0.5, %v3930_v49 }
 0xa58   :  { %v3051_v46 = vadd.f32 %v3049_v0, %v3047_v5  ;;  %v3043_v10 = vmul.f32 0.5, %v3932_v60 }
 0xa59   :  { %3933 = vtanh.f32 %v3050_v57  ;;  %v3044_v37 = vadd.f32 0.5, %v3042_v45 }
 0xa5a   :  { %3935 = vtanh.f32 %v3051_v46  ;;  %v3045_v15 = vadd.f32 0.5, %v3043_v10 }
 0xa63   :  { %v3934_v23 = vpop.eup %3933 }
 0xa64   :  { %v3936_v18 = vpop.eup %3935  ;;  %v3054_v30 = vmul.f32 %v3934_v23, %v3044_v37 }
 0xa65   :  { %v3055_v3 = vmul.f32 %v3936_v18, %v3045_v15 }
 0xa66   :  { %v3056_v59 = vpack.c.bf16 %v3054_v30, %v3054_v30 }
 0xa67   :  { %v3057_v50 = vpack.c.bf16 %v3055_v3, %v3055_v3 }
 0xa69   :  { %3225 = vmatprep.mubr.bf16.mxu0 %v3057_v50 }
 0xa6a   :  { %3226 = vmatmul.mubr.bf16.vlgmr.msra.gmra.mrb[96].mxu0 %v3056_v59 }
 0xa6b   :  { %3721 = vmatprep.mubr.msk.bf16.mxu0 %vm4065_vm2, %v4064_v17  ;;  %3714 = vmatpush3.bf16.msra.mxu0 %v3773_v48 }
 0xa6c   :  { %3715 = vmatprep.subr.bf16.mxu0 %v4064_v17 }
 0xa6f   :  { %3716 = vmatpush3.bf16.msra.mxu0 %v3774_v40 }
 0xa70   :  { %3717 = vmatprep.subr.bf16.mxu0 %v4064_v17 }
 0xa73   :  { %3718 = vmatpush3.bf16.msra.mxu0 %v3775_v61 }
 0xa74   :  { %3719 = vmatprep.subr.bf16.mxu0 %v4064_v17 }
 0xa77   :  { %3720 = vmatpush3.bf16.msra.mxu0 %v3776_v21 }
 0xb3d   :  { %v3673_v25 = vpop.f32.mrb[96].mxu0 }
 0xb3e   :  { %v3674_v42 = vpop.f32.mrb[97].mxu0 }
 0xb3f   :  { %v3675_v7 = vadd.f32 %v3674_v42, %v3673_v25  ;;  %v3676_v35 = vpop.f32.mrb[98].mxu0 }
 0xb40   :  { %v3677_v58 = vpop.f32.mrb[99].mxu0 }
 0xb41   :  { %v3228_v26 = vadd.f32 %v3675_v7, %v3625_v38 }
 0xb43   :  { %v3233_v6 = vmax.f32 %v3228_v26, 0.0 }
 0xb45   :  { %v3234_v44 = vpack.c.bf16 %v3233_v6, %v3233_v6 }
 0xb47   :  { %3710 = vmatmul.mubr.bf16.vlgmr.msra.gmra.mrb[96].mxu1 %v3234_v44 }
 0xc1a   :  { %v3340_v62 = vpop.f32.mrb[96].mxu1 }
 0xc1b   :  { %v3341_v55 = vadd.f32 %v3642_v43, %v3340_v62  ;;  %v3711_v47 = vpop.f32.mrb[97].mxu1 }
 0xc1c   :  { %v3343_v22 = vpop.f32.mrb[98].mxu1 }
 0xc1d   :  { %v3346_v33 = vmax.f32 %v3341_v55, 0.0  ;;  %v3712_v14 = vpop.f32.mrb[99].mxu1 }
 0xc1f   :  { %v3347_v4 = vpack.c.bf16 %v3346_v33, %v3346_v33 }
 0xc21   :  { %3722 = vmatmul.mubr.msk.bf16.vlgmr.msra.gmra.mrb[100].mxu0 %vm3387_vm3, %v3347_v4 }
 0xcf4   :  { %v3425_v17 = vpop.f32.mrb[100].mxu0 }
 0xcf5   :  { %v3426_v13 = vadd.f32 %v3651_v12, %v3425_v17  ;;  %v3723_v34 = vpop.f32.mrb[101].mxu0 }
 0xcf6   :  { %v3428_v39 = vpop.f32.mrb[102].mxu0 }
 0xcf7   :  { %3431 = vst [vmem:[#allocation10] sm:$0xff] %v3426_v13  ;;  %v3724_v52 = vpop.f32.mrb[103].mxu0 }
 0xcf8   :  { %4036 = shalt.err (!%p4033_p8)
}
 0xcf9   :  { %s4037_s9 = scalar_lea.hbm %s6055_s10, 128 }
 0xcfa   :  { %p4038_p9 = scmp.ne.s32.totalorder %s6055_s10, %s4037_s9  ;;  %p4041_p10 = scmp.lt.u32.totalorder %s4037_s9, %s6055_s10 }
 0xcfc   :  { %p4043_p11 = pnand %p4041_p10, %p4038_p9 }
 0xcfe   :  { %4046 = shalt.err (!%p4043_p11)
}
 0xcff   :  { %3441 = dma.vmem_to_hbm [thread:$0]  %s3439_s1, 128, %s6055_s10, [#allocation4]  }
 0xd00   :  { %4053 = dma.done.wait [#allocation4], 128  }
 0xd01   :  { %4054 = vsyncadd [#allocation4], 4294967168 }
 0xd02   :  { %3445 = vsyncpa [#allocation3], 1 }
 0xd03   :  { %3446 = vsyncpa [#allocation6], 1 }
 0xd04   :  { %3447 = vsyncpa [#allocation9], 1 }
 0xd05   :  { %3448 = vsyncpa [#allocation4], 1 }

</bundles_post_ra>
